<compile_context>
chip_gen: v5e
topology: v5e:2x2
jax: 0.10.0
libtpu: 0.0.40
codegen_flags: <defaults>
</compile_context>

<pallas_src>
import functools

import jax
import jax.numpy as jnp
from jax.experimental import pallas as pl
from jax.experimental.pallas import tpu as pltpu


def _round_up(x, m):
    return (x + m - 1) // m * m


def _vmem_cap_bytes():
    """Generation-aware scoped-VMEM cap with headroom for compiler scratch."""
    try:
        cap = pltpu.get_tpu_info().vmem_capacity_bytes
    except Exception:
        cap = 128 << 20
    return max(min(int(cap * 0.75), cap - (16 << 20)), 32 << 20)


# ----------------------------- Pallas kernel ---------------------------------

def _signed_layer_kernel(ap_ref, an_ref, x_ref, acc_in_ref,
                         x_out_ref, acc_out_ref,
                         p_acc, q_acc, *, d_pad, alpha, tk, x_resident):
    """One signed-propagation layer, K-tiled.

    Per grid step (i = row block, k = contraction block):
      ap_ref, an_ref : (tm, tk)               bf16 blocks of A_pos / A_neg
      x_ref          : (n_pad, 2*d_pad) if resident else (tk, 2*d_pad), bf16 [x_pos | x_neg]
      acc_in_ref     : (tm, 2*d_pad)          f32 packed running sum [pos_out | neg_out]
    Written once per row block at k == last:
      x_out_ref      : (tm, 2*d_pad)  bf16 propagated [pos' | neg']
      acc_out_ref    : (tm, 2*d_pad)  f32  acc_in + alpha * propagated (aliased in place)
    """
    k = pl.program_id(1)

    @pl.when(k == 0)
    def _init():
        p_acc[...] = jnp.zeros_like(p_acc)
        q_acc[...] = jnp.zeros_like(q_acc)

    if x_resident:
        start = pl.multiple_of(k * tk, tk)
        x = x_ref[pl.ds(start, tk), :]
    else:
        x = x_ref[...]

    p_acc[...] += jnp.dot(ap_ref[...], x, preferred_element_type=jnp.float32)
    q_acc[...] += jnp.dot(an_ref[...], x, preferred_element_type=jnp.float32)

    @pl.when(k == pl.num_programs(1) - 1)
    def _finalize():
        # P = A_pos @ [xp|xn] = [Ap@xp | Ap@xn],  Q = A_neg @ [xp|xn] = [An@xp | An@xn]
        # pos' = Ap@xp + An@xn ; neg' = An@xp + Ap@xn   (lane-aligned halves, d_pad % 128 == 0)
        p = p_acc[...]
        q = q_acc[...]
        pos_new = p[:, :d_pad] + q[:, d_pad:]
        neg_new = q[:, :d_pad] + p[:, d_pad:]
        x_new = jnp.concatenate([pos_new, neg_new], axis=-1)
        x_out_ref[...] = x_new.astype(x_out_ref.dtype)
        acc_out_ref[...] = acc_in_ref[...] + alpha * x_new


def _signed_layer(a_pos_p, a_neg_p, x_packed, acc_packed, *,
                  tm, tk, d_pad, alpha, x_resident):
    n_pad, dp2 = x_packed.shape
    grid = (n_pad // tm, n_pad // tk)

    a_spec = pl.BlockSpec((tm, tk), lambda i, k: (i, k))
    if x_resident:
        # Whole packed slab DMA'd once per layer (constant block index).
        x_spec = pl.BlockSpec((n_pad, dp2), lambda i, k: (0, 0))
        x_bytes = 2 * n_pad * dp2 * 2
    else:
        x_spec = pl.BlockSpec((tk, dp2), lambda i, k: (k, 0))
        x_bytes = 2 * tk * dp2 * 2
    acc_in_spec = pl.BlockSpec((tm, dp2), lambda i, k: (i, 0))
    row_out_spec = pl.BlockSpec((tm, dp2), lambda i, k: (i, 0))

    kernel = functools.partial(_signed_layer_kernel, d_pad=d_pad, alpha=alpha,
                               tk=tk, x_resident=x_resident)

    # Scoped-VMEM estimate (already includes the 2x double-buffer factor) + small margin.
    vmem_bytes = (2 * 2 * tm * tk * 2     # A_pos + A_neg blocks (bf16), double buffered
                  + x_bytes               # packed X (resident slab or streamed block)
                  + 2 * tm * dp2 * 4      # acc_in blocks (f32)
                  + 2 * tm * dp2 * 2      # x_out blocks (bf16)
                  + 2 * tm * dp2 * 4      # acc_out blocks (f32)
                  + 2 * tm * dp2 * 4)     # f32 scratch accumulators
    vmem_limit = int(min(max(vmem_bytes + (8 << 20), 32 << 20), _vmem_cap_bytes()))

    return pl.pallas_call(
        kernel,
        out_shape=(jax.ShapeDtypeStruct((n_pad, dp2), jnp.bfloat16),
                   jax.ShapeDtypeStruct((n_pad, dp2), jnp.float32)),
        grid_spec=pltpu.PrefetchScalarGridSpec(
            num_scalar_prefetch=0,
            grid=grid,
            in_specs=[a_spec, a_spec, x_spec, acc_in_spec],
            out_specs=(row_out_spec, row_out_spec),
            scratch_shapes=[pltpu.VMEM((tm, dp2), jnp.float32),
                            pltpu.VMEM((tm, dp2), jnp.float32)],
        ),
        compiler_params=pltpu.CompilerParams(
            dimension_semantics=("parallel", "arbitrary"),
            vmem_limit_bytes=vmem_limit),
        input_output_aliases={3: 1},   # running sum is updated in place
    )(a_pos_p, a_neg_p, x_packed, acc_packed)


# ----------------------------- Forward (glue) --------------------------------

_TM = 512                         # large row tile amortizes per-step overhead
_TK_TARGETS = (2048, 1024, 512, 256)
_X_RESIDENT_MAX_BYTES = 12 << 20  # keep X in VMEM when the slab is small (fits v7x too)


def _choose_tiling(n):
    """Perf-driven tiling: prefer the largest K tile whose zero-padding overhead on the
    n^2 adjacency stream is < ~30%; 256 is the floor (only hit for tiny graphs)."""
    tm = min(_TM, _round_up(n, 256))
    for tk in _TK_TARGETS:
        quantum = max(tm, tk)             # n_pad must be a multiple of both tm and tk
        n_pad = _round_up(n, quantum)
        if n_pad * n_pad <= 1.3 * n * n or tk == _TK_TARGETS[-1]:
            return n_pad, tm, tk
    raise AssertionError("unreachable")


@functools.partial(jax.jit, static_argnames=("num_layer",))
def ponegnn_forward(params, a_pos, a_neg, num_layer=2):
    """Mirrors PoneGNN.forward: layer-wise sum of alpha-scaled propagated embeddings."""
    alpha = 1.0 / (num_layer + 1)
    ego_pos = jnp.concatenate([params["user_embedding"], params["item_embedding"]], axis=0)
    ego_neg = jnp.concatenate([params["user_neg_embedding"], params["item_neg_embedding"]], axis=0)
    n, d = ego_pos.shape

    d_pad = _round_up(d, 128)          # each signed half lane-aligned (multiple of 128)
    dp2 = 2 * d_pad                    # packed slab width
    n_pad, tm, tk = _choose_tiling(n)
    x_resident = (n_pad * dp2 * 2) <= _X_RESIDENT_MAX_BYTES

    # Adjacency: cast to bf16 once (halves the dominant HBM stream) and zero-pad.
    def pad_adj(a):
        return jnp.zeros((n_pad, n_pad), jnp.bfloat16).at[:n, :n].set(a.astype(jnp.bfloat16))

    a_pos_p = pad_adj(a_pos)
    a_neg_p = pad_adj(a_neg)

    def pack(xp, xn, dtype):
        out = jnp.zeros((n_pad, dp2), dtype)
        out = out.at[:n, :d].set(xp.astype(dtype))
        out = out.at[:n, d_pad:d_pad + d].set(xn.astype(dtype))
        return out

    # First layer reads only the positive ego embedding (x_neg contribution is zero);
    # matches the reference where ego_embeddings = (ego_pos, ego_pos) feeds the first conv.
    x_packed = pack(ego_pos, jnp.zeros_like(ego_pos), jnp.bfloat16)
    # Running output sum, packed [pos_out | neg_out], f32, updated in place each layer.
    acc_packed = pack(alpha * ego_pos, alpha * ego_neg, jnp.float32)

    for _ in range(num_layer):
        x_packed, acc_packed = _signed_layer(
            a_pos_p, a_neg_p, x_packed, acc_packed,
            tm=tm, tk=tk, d_pad=d_pad, alpha=alpha, x_resident=x_resident)

    pos_out = acc_packed[:n, :d]
    neg_out = acc_packed[:n, d_pad:d_pad + d]
    return pos_out, neg_out


# ----------------------------- Setup helpers ---------------------------------

def xavier_normal(key, shape):
    fan_out, fan_in = shape
    std = (2.0 / (fan_in + fan_out)) ** 0.5
    return std * jax.random.normal(key, shape, dtype=jnp.float32)


def build_norm_adj(edge_index, n):
    """Dense symmetric adjacency with D^{-1/2} A D^{-1/2} normalization (LightGCN style)."""
    src, dst = edge_index
    a = jnp.zeros((n, n), dtype=jnp.float32)
    a = a.at[src, dst].set(1.0)
    a = a.at[dst, src].set(1.0)
    deg = jnp.sum(a, axis=1)
    d_inv_sqrt = jnp.where(deg > 0, 1.0 / jnp.sqrt(jnp.maximum(deg, 1e-12)), 0.0)
    return a * d_inv_sqrt[:, None] * d_inv_sqrt[None, :]


# ----------------------------------- Main -------------------------------------

if __name__ == "__main__":
    # Small, module-consistent shapes.
    M, N, DIM, NUM_LAYER = 24, 40, 32, 2
    n_nodes = M + N  # 64

    key = jax.random.PRNGKey(0)
    k_ue, k_ie, k_un, k_in, k_ep, k_en = jax.random.split(key, 6)

    params = {
        "user_embedding":     xavier_normal(k_ue, (M, DIM)),
        "item_embedding":     xavier_normal(k_ie, (N, DIM)),
        "user_neg_embedding": xavier_normal(k_un, (M, DIM)),
        "item_neg_embedding": xavier_normal(k_in, (N, DIM)),
    }

    # Synthetic bipartite signed graph: user -> (item + M) edges, edge_index shape [2, E].
    E = 96
    pos_users = jax.random.randint(k_ep, (E,), 0, M)
    pos_items = jax.random.randint(jax.random.fold_in(k_ep, 1), (E,), 0, N) + M
    neg_users = jax.random.randint(k_en, (E,), 0, M)
    neg_items = jax.random.randint(jax.random.fold_in(k_en, 1), (E,), 0, N) + M
    pos_edge_index = jnp.stack([pos_users, pos_items])
    neg_edge_index = jnp.stack([neg_users, neg_items])

    a_pos = build_norm_adj(pos_edge_index, n_nodes)
    a_neg = build_norm_adj(neg_edge_index, n_nodes)

    pos_emb, neg_emb = ponegnn_forward(params, a_pos, a_neg, num_layer=NUM_LAYER)
    jax.block_until_ready((pos_emb, neg_emb))

    # Reference in plain JAX using the same bf16 quantization of A and inter-layer
    # embeddings (the only remaining difference vs the kernel is f32 accumulation order).
    alpha = 1.0 / (NUM_LAYER + 1)
    ego_p = jnp.concatenate([params["user_embedding"], params["item_embedding"]], axis=0)
    ego_n = jnp.concatenate([params["user_neg_embedding"], params["item_neg_embedding"]], axis=0)
    ap_b = a_pos.astype(jnp.bfloat16).astype(jnp.float32)
    an_b = a_neg.astype(jnp.bfloat16).astype(jnp.float32)
    xp = ego_p.astype(jnp.bfloat16).astype(jnp.float32)
    xn = jnp.zeros_like(xp)
    rp, rn = alpha * ego_p, alpha * ego_n
    for _ in range(NUM_LAYER):
        p = ap_b @ xp + an_b @ xn
        q = an_b @ xp + ap_b @ xn
        rp = rp + alpha * p
        rn = rn + alpha * q
        xp = p.astype(jnp.bfloat16).astype(jnp.float32)
        xn = q.astype(jnp.bfloat16).astype(jnp.float32)

    assert pos_emb.shape == (n_nodes, DIM) and neg_emb.shape == (n_nodes, DIM)
    assert jnp.allclose(pos_emb, rp, atol=2e-3, rtol=2e-3), float(jnp.max(jnp.abs(pos_emb - rp)))
    assert jnp.allclose(neg_emb, rn, atol=2e-3, rtol=2e-3), float(jnp.max(jnp.abs(neg_emb - rn)))

    print("KERNEL_OK")
</pallas_src>

<mosaic_0001>
module attributes {stable_mosaic.version = 11 : i64} {
  func.func @_signed_layer_kernel(%arg0: i32, %arg1: i32, %arg2: memref<256x256xbf16, #tpu.memory_space<vmem>>, %arg3: memref<256x256xbf16, #tpu.memory_space<vmem>>, %arg4: memref<256x256xbf16, #tpu.memory_space<vmem>>, %arg5: memref<256x256xf32, #tpu.memory_space<vmem>>, %arg6: memref<256x256xbf16, #tpu.memory_space<vmem>>, %arg7: memref<256x256xf32, #tpu.memory_space<vmem>>, %arg8: memref<256x256xf32, #tpu.memory_space<vmem>>, %arg9: memref<256x256xf32, #tpu.memory_space<vmem>>) attributes {dimension_semantics = [#tpu.dimension_semantics<parallel>, #tpu.dimension_semantics<arbitrary>], iteration_bounds = array<i64: 1, 1>, scalar_prefetch = 0 : i64, scratch_operands = 2 : i64, tpu.core_type = #tpu.core_type<tc>, window_params = [{transform_indices = @transform_0, window_bounds = array<i64: 256, 256>}, {transform_indices = @transform_1, window_bounds = array<i64: 256, 256>}, {pipeline_mode = #tpu.pipeline_mode<synchronous>, transform_indices = @transform_2, window_bounds = array<i64: 256, 256>}, {transform_indices = @transform_3, window_bounds = array<i64: 256, 256>}, {transform_indices = @transform_4, window_bounds = array<i64: 256, 256>}, {transform_indices = @transform_5, window_bounds = array<i64: 256, 256>}]} {
    %c0_i32 = arith.constant 0 : i32
    %0 = arith.cmpi eq, %arg1, %c0_i32 : i32
    %1 = arith.extui %0 : i1 to i32
    %c0_i32_0 = arith.constant 0 : i32
    %2 = arith.cmpi ne, %1, %c0_i32_0 : i32
    scf.if %2 {
      %cst_16 = arith.constant 0.000000e+00 : f32
      %20 = vector.broadcast %cst_16 : f32 to vector<256x256xf32>
      %c0_17 = arith.constant 0 : index
      %c0_18 = arith.constant 0 : index
      %21 = vector.load %arg8[%c0_17, %c0_18] : memref<256x256xf32, #tpu.memory_space<vmem>>, vector<256x256xf32>
      tpu.vector_store %arg8[%c0_17, %c0_18], %20 {strides = array<i32>} : memref<256x256xf32, #tpu.memory_space<vmem>>, vector<256x256xf32>,
      %cst_19 = arith.constant 0.000000e+00 : f32
      %22 = vector.broadcast %cst_19 : f32 to vector<256x256xf32>
      %c0_20 = arith.constant 0 : index
      %c0_21 = arith.constant 0 : index
      %23 = vector.load %arg9[%c0_20, %c0_21] : memref<256x256xf32, #tpu.memory_space<vmem>>, vector<256x256xf32>
      tpu.vector_store %arg9[%c0_20, %c0_21], %22 {strides = array<i32>} : memref<256x256xf32, #tpu.memory_space<vmem>>, vector<256x256xf32>,
    } else {
    }
    %c256_i32 = arith.constant 256 : i32
    %3 = arith.muli %arg1, %c256_i32 : i32
    %4 = tpu.assume_multiple %3, 256 : i32
    %5 = arith.index_cast %4 : i32 to index
    %c0 = arith.constant 0 : index
    %6 = vector.load %arg4[%5, %c0] : memref<256x256xbf16, #tpu.memory_space<vmem>>, vector<256x256xbf16>
    %c0_1 = arith.constant 0 : index
    %c0_2 = arith.constant 0 : index
    %7 = vector.load %arg8[%c0_1, %c0_2] : memref<256x256xf32, #tpu.memory_space<vmem>>, vector<256x256xf32>
    %c0_3 = arith.constant 0 : index
    %c0_4 = arith.constant 0 : index
    %8 = vector.load %arg2[%c0_3, %c0_4] : memref<256x256xbf16, #tpu.memory_space<vmem>>, vector<256x256xbf16>
    %cst = arith.constant dense<0.000000e+00> : vector<256x256xf32>
    %9 = tpu.matmul %8, %6, %cst {dimension_numbers = #tpu.dot_dimension_numbers<[1], [0], [0], [1], [0, 0, 1, 1], [], []>} : vector<256x256xbf16>, vector<256x256xbf16>, vector<256x256xf32> -> vector<256x256xf32>
    %10 = arith.addf %7, %9 : vector<256x256xf32>
    %c0_5 = arith.constant 0 : index
    %c0_6 = arith.constant 0 : index
    %11 = vector.load %arg8[%c0_5, %c0_6] : memref<256x256xf32, #tpu.memory_space<vmem>>, vector<256x256xf32>
    tpu.vector_store %arg8[%c0_5, %c0_6], %10 {strides = array<i32>} : memref<256x256xf32, #tpu.memory_space<vmem>>, vector<256x256xf32>,
    %c0_7 = arith.constant 0 : index
    %c0_8 = arith.constant 0 : index
    %12 = vector.load %arg9[%c0_7, %c0_8] : memref<256x256xf32, #tpu.memory_space<vmem>>, vector<256x256xf32>
    %c0_9 = arith.constant 0 : index
    %c0_10 = arith.constant 0 : index
    %13 = vector.load %arg3[%c0_9, %c0_10] : memref<256x256xbf16, #tpu.memory_space<vmem>>, vector<256x256xbf16>
    %cst_11 = arith.constant dense<0.000000e+00> : vector<256x256xf32>
    %14 = tpu.matmul %13, %6, %cst_11 {dimension_numbers = #tpu.dot_dimension_numbers<[1], [0], [0], [1], [0, 0, 1, 1], [], []>} : vector<256x256xbf16>, vector<256x256xbf16>, vector<256x256xf32> -> vector<256x256xf32>
    %15 = arith.addf %12, %14 : vector<256x256xf32>
    %c0_12 = arith.constant 0 : index
    %c0_13 = arith.constant 0 : index
    %16 = vector.load %arg9[%c0_12, %c0_13] : memref<256x256xf32, #tpu.memory_space<vmem>>, vector<256x256xf32>
    tpu.vector_store %arg9[%c0_12, %c0_13], %15 {strides = array<i32>} : memref<256x256xf32, #tpu.memory_space<vmem>>, vector<256x256xf32>,
    %c0_i32_14 = arith.constant 0 : i32
    %17 = arith.cmpi eq, %arg1, %c0_i32_14 : i32
    %18 = arith.extui %17 : i1 to i32
    %c0_i32_15 = arith.constant 0 : i32
    %19 = arith.cmpi ne, %18, %c0_i32_15 : i32
    scf.if %19 {
      %c0_16 = arith.constant 0 : index
      %c0_17 = arith.constant 0 : index
      %20 = vector.load %arg8[%c0_16, %c0_17] : memref<256x256xf32, #tpu.memory_space<vmem>>, vector<256x256xf32>
      %c0_18 = arith.constant 0 : index
      %c0_19 = arith.constant 0 : index
      %21 = vector.load %arg9[%c0_18, %c0_19] : memref<256x256xf32, #tpu.memory_space<vmem>>, vector<256x256xf32>
      %22 = vector.extract_strided_slice %20 {offsets = [0, 0], sizes = [256, 128], strides = [1, 1]} : vector<256x256xf32> to vector<256x128xf32>
      %23 = vector.extract_strided_slice %21 {offsets = [0, 128], sizes = [256, 128], strides = [1, 1]} : vector<256x256xf32> to vector<256x128xf32>
      %24 = arith.addf %22, %23 : vector<256x128xf32>
      %25 = vector.extract_strided_slice %21 {offsets = [0, 0], sizes = [256, 128], strides = [1, 1]} : vector<256x256xf32> to vector<256x128xf32>
      %26 = vector.extract_strided_slice %20 {offsets = [0, 128], sizes = [256, 128], strides = [1, 1]} : vector<256x256xf32> to vector<256x128xf32>
      %27 = arith.addf %25, %26 : vector<256x128xf32>
      %28 = tpu.concatenate %24, %27 in 1 : vector<256x128xf32>, vector<256x128xf32> -> vector<256x256xf32>
      %29 = arith.truncf %28 : vector<256x256xf32> to vector<256x256xbf16>
      %c0_20 = arith.constant 0 : index
      %c0_21 = arith.constant 0 : index
      %30 = vector.load %arg6[%c0_20, %c0_21] : memref<256x256xbf16, #tpu.memory_space<vmem>>, vector<256x256xbf16>
      tpu.vector_store %arg6[%c0_20, %c0_21], %29 {strides = array<i32>} : memref<256x256xbf16, #tpu.memory_space<vmem>>, vector<256x256xbf16>,
      %c0_22 = arith.constant 0 : index
      %c0_23 = arith.constant 0 : index
      %31 = vector.load %arg5[%c0_22, %c0_23] : memref<256x256xf32, #tpu.memory_space<vmem>>, vector<256x256xf32>
      %cst_24 = arith.constant 0.333333343 : f32
      %32 = vector.broadcast %cst_24 : f32 to vector<256x256xf32>
      %33 = arith.mulf %32, %28 : vector<256x256xf32>
      %34 = arith.addf %31, %33 : vector<256x256xf32>
      %c0_25 = arith.constant 0 : index
      %c0_26 = arith.constant 0 : index
      %35 = vector.load %arg7[%c0_25, %c0_26] : memref<256x256xf32, #tpu.memory_space<vmem>>, vector<256x256xf32>
      tpu.vector_store %arg7[%c0_25, %c0_26], %34 {strides = array<i32>} : memref<256x256xf32, #tpu.memory_space<vmem>>, vector<256x256xf32>,
    } else {
    }
    return
  }
  func.func @transform_0(%arg0: i32, %arg1: i32) -> (i32, i32) {
    %c0_i32 = arith.constant 0 : i32
    return %arg0, %arg1 : i32, i32
  }
  func.func @transform_1(%arg0: i32, %arg1: i32) -> (i32, i32) {
    %c0_i32 = arith.constant 0 : i32
    return %arg0, %arg1 : i32, i32
  }
  func.func @transform_2(%arg0: i32, %arg1: i32) -> (i32, i32) {
    %c0_i32 = arith.constant 0 : i32
    %c0_i32_0 = arith.constant 0 : i32
    %c0_i32_1 = arith.constant 0 : i32
    return %c0_i32, %c0_i32_0 : i32, i32
  }
  func.func @transform_3(%arg0: i32, %arg1: i32) -> (i32, i32) {
    %c0_i32 = arith.constant 0 : i32
    %c0_i32_0 = arith.constant 0 : i32
    return %arg0, %c0_i32 : i32, i32
  }
  func.func @transform_4(%arg0: i32, %arg1: i32) -> (i32, i32) {
    %c0_i32 = arith.constant 0 : i32
    %c0_i32_0 = arith.constant 0 : i32
    return %arg0, %c0_i32 : i32, i32
  }
  func.func @transform_5(%arg0: i32, %arg1: i32) -> (i32, i32) {
    %c0_i32 = arith.constant 0 : i32
    %c0_i32_0 = arith.constant 0 : i32
    return %arg0, %c0_i32 : i32, i32
  }
}

module attributes {stable_mosaic.version = 11 : i64} {
  func.func @_signed_layer_kernel(%arg0: i32, %arg1: i32, %arg2: memref<256x256xbf16, #tpu.memory_space<vmem>>, %arg3: memref<256x256xbf16, #tpu.memory_space<vmem>>, %arg4: memref<256x256xbf16, #tpu.memory_space<vmem>>, %arg5: memref<256x256xf32, #tpu.memory_space<vmem>>, %arg6: memref<256x256xbf16, #tpu.memory_space<vmem>>, %arg7: memref<256x256xf32, #tpu.memory_space<vmem>>, %arg8: memref<256x256xf32, #tpu.memory_space<vmem>>, %arg9: memref<256x256xf32, #tpu.memory_space<vmem>>) attributes {dimension_semantics = [#tpu.dimension_semantics<parallel>, #tpu.dimension_semantics<arbitrary>], iteration_bounds = array<i64: 1, 1>, scalar_prefetch = 0 : i64, scratch_operands = 2 : i64, tpu.core_type = #tpu.core_type<tc>, window_params = [{transform_indices = @transform_0, window_bounds = array<i64: 256, 256>}, {transform_indices = @transform_1, window_bounds = array<i64: 256, 256>}, {pipeline_mode = #tpu.pipeline_mode<synchronous>, transform_indices = @transform_2, window_bounds = array<i64: 256, 256>}, {transform_indices = @transform_3, window_bounds = array<i64: 256, 256>}, {transform_indices = @transform_4, window_bounds = array<i64: 256, 256>}, {transform_indices = @transform_5, window_bounds = array<i64: 256, 256>}]} {
    %c0_i32 = arith.constant 0 : i32
    %0 = arith.cmpi eq, %arg1, %c0_i32 : i32
    %1 = arith.extui %0 : i1 to i32
    %c0_i32_0 = arith.constant 0 : i32
    %2 = arith.cmpi ne, %1, %c0_i32_0 : i32
    scf.if %2 {
      %cst_16 = arith.constant 0.000000e+00 : f32
      %20 = vector.broadcast %cst_16 : f32 to vector<256x256xf32>
      %c0_17 = arith.constant 0 : index
      %c0_18 = arith.constant 0 : index
      %21 = vector.load %arg8[%c0_17, %c0_18] : memref<256x256xf32, #tpu.memory_space<vmem>>, vector<256x256xf32>
      tpu.vector_store %arg8[%c0_17, %c0_18], %20 {strides = array<i32>} : memref<256x256xf32, #tpu.memory_space<vmem>>, vector<256x256xf32>,
      %cst_19 = arith.constant 0.000000e+00 : f32
      %22 = vector.broadcast %cst_19 : f32 to vector<256x256xf32>
      %c0_20 = arith.constant 0 : index
      %c0_21 = arith.constant 0 : index
      %23 = vector.load %arg9[%c0_20, %c0_21] : memref<256x256xf32, #tpu.memory_space<vmem>>, vector<256x256xf32>
      tpu.vector_store %arg9[%c0_20, %c0_21], %22 {strides = array<i32>} : memref<256x256xf32, #tpu.memory_space<vmem>>, vector<256x256xf32>,
    } else {
    }
    %c256_i32 = arith.constant 256 : i32
    %3 = arith.muli %arg1, %c256_i32 : i32
    %4 = tpu.assume_multiple %3, 256 : i32
    %5 = arith.index_cast %4 : i32 to index
    %c0 = arith.constant 0 : index
    %6 = vector.load %arg4[%5, %c0] : memref<256x256xbf16, #tpu.memory_space<vmem>>, vector<256x256xbf16>
    %c0_1 = arith.constant 0 : index
    %c0_2 = arith.constant 0 : index
    %7 = vector.load %arg8[%c0_1, %c0_2] : memref<256x256xf32, #tpu.memory_space<vmem>>, vector<256x256xf32>
    %c0_3 = arith.constant 0 : index
    %c0_4 = arith.constant 0 : index
    %8 = vector.load %arg2[%c0_3, %c0_4] : memref<256x256xbf16, #tpu.memory_space<vmem>>, vector<256x256xbf16>
    %cst = arith.constant dense<0.000000e+00> : vector<256x256xf32>
    %9 = tpu.matmul %8, %6, %cst {dimension_numbers = #tpu.dot_dimension_numbers<[1], [0], [0], [1], [0, 0, 1, 1], [], []>} : vector<256x256xbf16>, vector<256x256xbf16>, vector<256x256xf32> -> vector<256x256xf32>
    %10 = arith.addf %7, %9 : vector<256x256xf32>
    %c0_5 = arith.constant 0 : index
    %c0_6 = arith.constant 0 : index
    %11 = vector.load %arg8[%c0_5, %c0_6] : memref<256x256xf32, #tpu.memory_space<vmem>>, vector<256x256xf32>
    tpu.vector_store %arg8[%c0_5, %c0_6], %10 {strides = array<i32>} : memref<256x256xf32, #tpu.memory_space<vmem>>, vector<256x256xf32>,
    %c0_7 = arith.constant 0 : index
    %c0_8 = arith.constant 0 : index
    %12 = vector.load %arg9[%c0_7, %c0_8] : memref<256x256xf32, #tpu.memory_space<vmem>>, vector<256x256xf32>
    %c0_9 = arith.constant 0 : index
    %c0_10 = arith.constant 0 : index
    %13 = vector.load %arg3[%c0_9, %c0_10] : memref<256x256xbf16, #tpu.memory_space<vmem>>, vector<256x256xbf16>
    %cst_11 = arith.constant dense<0.000000e+00> : vector<256x256xf32>
    %14 = tpu.matmul %13, %6, %cst_11 {dimension_numbers = #tpu.dot_dimension_numbers<[1], [0], [0], [1], [0, 0, 1, 1], [], []>} : vector<256x256xbf16>, vector<256x256xbf16>, vector<256x256xf32> -> vector<256x256xf32>
    %15 = arith.addf %12, %14 : vector<256x256xf32>
    %c0_12 = arith.constant 0 : index
    %c0_13 = arith.constant 0 : index
    %16 = vector.load %arg9[%c0_12, %c0_13] : memref<256x256xf32, #tpu.memory_space<vmem>>, vector<256x256xf32>
    tpu.vector_store %arg9[%c0_12, %c0_13], %15 {strides = array<i32>} : memref<256x256xf32, #tpu.memory_space<vmem>>, vector<256x256xf32>,
    %c0_i32_14 = arith.constant 0 : i32
    %17 = arith.cmpi eq, %arg1, %c0_i32_14 : i32
    %18 = arith.extui %17 : i1 to i32
    %c0_i32_15 = arith.constant 0 : i32
    %19 = arith.cmpi ne, %18, %c0_i32_15 : i32
    scf.if %19 {
      %c0_16 = arith.constant 0 : index
      %c0_17 = arith.constant 0 : index
      %20 = vector.load %arg8[%c0_16, %c0_17] : memref<256x256xf32, #tpu.memory_space<vmem>>, vector<256x256xf32>
      %c0_18 = arith.constant 0 : index
      %c0_19 = arith.constant 0 : index
      %21 = vector.load %arg9[%c0_18, %c0_19] : memref<256x256xf32, #tpu.memory_space<vmem>>, vector<256x256xf32>
      %22 = vector.extract_strided_slice %20 {offsets = [0, 0], sizes = [256, 128], strides = [1, 1]} : vector<256x256xf32> to vector<256x128xf32>
      %23 = vector.extract_strided_slice %21 {offsets = [0, 128], sizes = [256, 128], strides = [1, 1]} : vector<256x256xf32> to vector<256x128xf32>
      %24 = arith.addf %22, %23 : vector<256x128xf32>
      %25 = vector.extract_strided_slice %21 {offsets = [0, 0], sizes = [256, 128], strides = [1, 1]} : vector<256x256xf32> to vector<256x128xf32>
      %26 = vector.extract_strided_slice %20 {offsets = [0, 128], sizes = [256, 128], strides = [1, 1]} : vector<256x256xf32> to vector<256x128xf32>
      %27 = arith.addf %25, %26 : vector<256x128xf32>
      %28 = tpu.concatenate %24, %27 in 1 : vector<256x128xf32>, vector<256x128xf32> -> vector<256x256xf32>
      %29 = arith.truncf %28 : vector<256x256xf32> to vector<256x256xbf16>
      %c0_20 = arith.constant 0 : index
      %c0_21 = arith.constant 0 : index
      %30 = vector.load %arg6[%c0_20, %c0_21] : memref<256x256xbf16, #tpu.memory_space<vmem>>, vector<256x256xbf16>
      tpu.vector_store %arg6[%c0_20, %c0_21], %29 {strides = array<i32>} : memref<256x256xbf16, #tpu.memory_space<vmem>>, vector<256x256xbf16>,
      %c0_22 = arith.constant 0 : index
      %c0_23 = arith.constant 0 : index
      %31 = vector.load %arg5[%c0_22, %c0_23] : memref<256x256xf32, #tpu.memory_space<vmem>>, vector<256x256xf32>
      %cst_24 = arith.constant 0.333333343 : f32
      %32 = vector.broadcast %cst_24 : f32 to vector<256x256xf32>
      %33 = arith.mulf %32, %28 : vector<256x256xf32>
      %34 = arith.addf %31, %33 : vector<256x256xf32>
      %c0_25 = arith.constant 0 : index
      %c0_26 = arith.constant 0 : index
      %35 = vector.load %arg7[%c0_25, %c0_26] : memref<256x256xf32, #tpu.memory_space<vmem>>, vector<256x256xf32>
      tpu.vector_store %arg7[%c0_25, %c0_26], %34 {strides = array<i32>} : memref<256x256xf32, #tpu.memory_space<vmem>>, vector<256x256xf32>,
    } else {
    }
    return
  }
  func.func @transform_0(%arg0: i32, %arg1: i32) -> (i32, i32) {
    %c0_i32 = arith.constant 0 : i32
    return %arg0, %arg1 : i32, i32
  }
  func.func @transform_1(%arg0: i32, %arg1: i32) -> (i32, i32) {
    %c0_i32 = arith.constant 0 : i32
    return %arg0, %arg1 : i32, i32
  }
  func.func @transform_2(%arg0: i32, %arg1: i32) -> (i32, i32) {
    %c0_i32 = arith.constant 0 : i32
    %c0_i32_0 = arith.constant 0 : i32
    %c0_i32_1 = arith.constant 0 : i32
    return %c0_i32, %c0_i32_0 : i32, i32
  }
  func.func @transform_3(%arg0: i32, %arg1: i32) -> (i32, i32) {
    %c0_i32 = arith.constant 0 : i32
    %c0_i32_0 = arith.constant 0 : i32
    return %arg0, %c0_i32 : i32, i32
  }
  func.func @transform_4(%arg0: i32, %arg1: i32) -> (i32, i32) {
    %c0_i32 = arith.constant 0 : i32
    %c0_i32_0 = arith.constant 0 : i32
    return %arg0, %c0_i32 : i32, i32
  }
  func.func @transform_5(%arg0: i32, %arg1: i32) -> (i32, i32) {
    %c0_i32 = arith.constant 0 : i32
    %c0_i32_0 = arith.constant 0 : i32
    return %arg0, %c0_i32 : i32, i32
  }
}

</mosaic_0001>

<bundles_post_ra>
// kernel: ponegnn_forward.3
= control target key start
LH: loop header
LB: loop body
LE: loop exit
PB: predicated region body
PF: predicated region fallthrough
CT: control target
= control target key end

     0   :  { %s4178_s0 = inlined_call_operand.vmem [shape: bf16[256,256], index: 0, kind: input, shape index: {}]   ;;  %s4179_s1 = inlined_call_operand.vmem [shape: bf16[256,256], index: 1, kind: input, shape index: {}]   ;;  %s4180_s2 = inlined_call_operand.vmem [shape: bf16[256,256], index: 2, kind: input, shape index: {}]   ;;  %s4181_s3 = inlined_call_operand.vmem [shape: f32[256,256], index: 3, kind: input, shape index: {}, may-alias: {3,5}]   ;;  %s4182_s4 = inlined_call_operand.hbm [shape: bf16[256,256], index: 4, kind: output, shape index: {0}]   ;;  %s4183_s5 = inlined_call_operand.vmem [shape: f32[256,256], index: 5, kind: output, shape index: {1}, may-alias: {3,5}]  }
   0x1   :  { %v2555_v0 = vld [vmem:[%s4180_s2 + $0x70] sm:$0xf]  ;;  %v2768_v1 = vld [vmem:[%s4180_s2 + $0x74] sm:$0xf0]  ;;  %v2767_v5 = vld [vmem:[%s4180_s2 + $0x74] sm:$0xf] }
   0x2   :  { %v2619_v2 = vld [vmem:[%s4180_s2 + $0xf0] sm:$0xf]  ;;  %v2920_v3 = vor.u32 %v2768_v1, %v2555_v0  ;;  %v2784_v4 = vld [vmem:[%s4180_s2 + $0xf4] sm:$0xf0]  ;;  %v2557_v6 = vld [vmem:[%s4180_s2 + $0x78] sm:$0xf0] }
   0x3   :  { %v2931_v7 = vor.u32 %v2784_v4, %v2619_v2  ;;  %v2933_v8 = vor.u32 %v2767_v5, %v2557_v6  ;;  %v2783_v9 = vld [vmem:[%s4180_s2 + $0xf4] sm:$0xf]  ;;  %v2621_v10 = vld [vmem:[%s4180_s2 + $0xf8] sm:$0xf0]  ;;  %v2547_v11 = vld [vmem:[%s4180_s2 + $0x60] sm:$0xf] }
   0x4   :  { %606 = vmatpush.bf16.msra.mxu0 %v2920_v3  ;;  %v2945_v12 = vor.u32 %v2783_v9, %v2621_v10  ;;  %v2766_v13 = vld [vmem:[%s4180_s2 + $0x64] sm:$0xf0]  ;;  %v2611_v14 = vld [vmem:[%s4180_s2 + $0xe0] sm:$0xf]  ;;  %v2765_v18 = vld [vmem:[%s4180_s2 + $0x64] sm:$0xf] }
   0x5   :  { %v2782_v15 = vld [vmem:[%s4180_s2 + $0xe4] sm:$0xf0]  ;;  %695 = vmatpush.bf16.msra.mxu1 %v2931_v7  ;;  %784 = vmatpush.bf16.msra.mxu2 %v2933_v8  ;;  %v2958_v16 = vor.u32 %v2766_v13, %v2547_v11  ;;  %v2549_v19 = vld [vmem:[%s4180_s2 + $0x68] sm:$0xf0]  ;;  %v2781_v20 = vld [vmem:[%s4180_s2 + $0xe4] sm:$0xf] }
   0x6   :  { %v2960_v17 = vor.u32 %v2782_v15, %v2611_v14  ;;  %873 = vmatpush.bf16.msra.mxu3 %v2945_v12  ;;  %v2972_v21 = vor.u32 %v2765_v18, %v2549_v19  ;;  %v2613_v22 = vld [vmem:[%s4180_s2 + $0xe8] sm:$0xf0]  ;;  %v2539_v23 = vld [vmem:[%s4180_s2 + $0x50] sm:$0xf]  ;;  %v2764_v24 = vld [vmem:[%s4180_s2 + $0x54] sm:$0xf0] }
   0x7   :  { %v2983_v25 = vor.u32 %v2781_v20, %v2613_v22  ;;  %v2603_v26 = vld [vmem:[%s4180_s2 + $0xd0] sm:$0xf]  ;;  %v2780_v27 = vld [vmem:[%s4180_s2 + $0xd4] sm:$0xf0]  ;;  %v2763_v28 = vld [vmem:[%s4180_s2 + $0x54] sm:$0xf]  ;;  %v2995_v29 = vor.u32 %v2764_v24, %v2539_v23 }
   0x8   :  { %607 = vmatpush.bf16.msra.mxu0 %v2958_v16  ;;  %v2541_v30 = vld [vmem:[%s4180_s2 + $0x58] sm:$0xf0]  ;;  %v2779_v31 = vld [vmem:[%s4180_s2 + $0xd4] sm:$0xf]  ;;  %v3008_v33 = vor.u32 %v2780_v27, %v2603_v26  ;;  %v2531_v35 = vld [vmem:[%s4180_s2 + $0x40] sm:$0xf] }
   0x9   :  { %v2605_v32 = vld [vmem:[%s4180_s2 + $0xd8] sm:$0xf0]  ;;  %696 = vmatpush.bf16.msra.mxu1 %v2960_v17  ;;  %785 = vmatpush.bf16.msra.mxu2 %v2972_v21  ;;  %v3010_v34 = vor.u32 %v2763_v28, %v2541_v30  ;;  %v2762_v36 = vld [vmem:[%s4180_s2 + $0x44] sm:$0xf0]  ;;  %v2595_v37 = vld [vmem:[%s4180_s2 + $0xc0] sm:$0xf] }
   0xa   :  { %874 = vmatpush.bf16.msra.mxu3 %v2983_v25  ;;  %v3022_v38 = vor.u32 %v2779_v31, %v2605_v32  ;;  %v2778_v39 = vld [vmem:[%s4180_s2 + $0xc4] sm:$0xf0]  ;;  %v2761_v40 = vld [vmem:[%s4180_s2 + $0x44] sm:$0xf]  ;;  %v2533_v41 = vld [vmem:[%s4180_s2 + $0x48] sm:$0xf0]  ;;  %v3040_v44 = vor.u32 %v2762_v36, %v2531_v35 }
   0xb   :  { %v2777_v42 = vld [vmem:[%s4180_s2 + $0xc4] sm:$0xf]  ;;  %v2597_v43 = vld [vmem:[%s4180_s2 + $0xc8] sm:$0xf0]  ;;  %v3044_v45 = vor.u32 %v2778_v39, %v2595_v37  ;;  %v3046_v46 = vor.u32 %v2761_v40, %v2533_v41  ;;  %v2523_v47 = vld [vmem:[%s4180_s2 + $0x30] sm:$0xf] }
   0xc   :  { %608 = vmatpush.bf16.msra.mxu0 %v2995_v29  ;;  %v2760_v48 = vld [vmem:[%s4180_s2 + $0x34] sm:$0xf0]  ;;  %v2587_v49 = vld [vmem:[%s4180_s2 + $0xb0] sm:$0xf]  ;;  %v3058_v50 = vor.u32 %v2777_v42, %v2597_v43  ;;  %v2759_v52 = vld [vmem:[%s4180_s2 + $0x34] sm:$0xf] }
   0xd   :  { %697 = vmatpush.bf16.msra.mxu1 %v3008_v33  ;;  %786 = vmatpush.bf16.msra.mxu2 %v3010_v34  ;;  %v2776_v51 = vld [vmem:[%s4180_s2 + $0xb4] sm:$0xf0]  ;;  %v2525_v53 = vld [vmem:[%s4180_s2 + $0x38] sm:$0xf0]  ;;  %v2775_v54 = vld [vmem:[%s4180_s2 + $0xb4] sm:$0xf]  ;;  %v3076_v56 = vor.u32 %v2760_v48, %v2523_v47 }
   0xe   :  { %875 = vmatpush.bf16.msra.mxu3 %v3022_v38  ;;  %v2589_v55 = vld [vmem:[%s4180_s2 + $0xb8] sm:$0xf0]  ;;  %v3080_v57 = vor.u32 %v2776_v51, %v2587_v49  ;;  %v3082_v58 = vor.u32 %v2759_v52, %v2525_v53  ;;  %v2515_v59 = vld [vmem:[%s4180_s2 + $0x20] sm:$0xf]  ;;  %v2758_v60 = vld [vmem:[%s4180_s2 + $0x24] sm:$0xf0] }
   0xf   :  { %v2579_v61 = vld [vmem:[%s4180_s2 + $0xa0] sm:$0xf]  ;;  %v3094_v62 = vor.u32 %v2775_v54, %v2589_v55  ;;  %v2774_v63 = vld [vmem:[%s4180_s2 + $0xa4] sm:$0xf0]  ;;  %v2757_v0 = vld [vmem:[%s4180_s2 + $0x24] sm:$0xf]  ;;  %v3112_v5 = vor.u32 %v2758_v60, %v2515_v59 }
  0x10   :  { %609 = vmatpush.bf16.msra.mxu0 %v3040_v44  ;;  %v2517_v1 = vld [vmem:[%s4180_s2 + $0x28] sm:$0xf0]  ;;  %v2773_v2 = vld [vmem:[%s4180_s2 + $0xa4] sm:$0xf]  ;;  %v3116_v6 = vor.u32 %v2774_v63, %v2579_v61  ;;  %v2507_v10 = vld [vmem:[%s4180_s2 + $0x10] sm:$0xf] }
  0x11   :  { %698 = vmatpush.bf16.msra.mxu1 %v3044_v45  ;;  %787 = vmatpush.bf16.msra.mxu2 %v3046_v46  ;;  %v2581_v4 = vld [vmem:[%s4180_s2 + $0xa8] sm:$0xf0]  ;;  %v3118_v9 = vor.u32 %v2757_v0, %v2517_v1  ;;  %v2756_v11 = vld [vmem:[%s4180_s2 + $0x14] sm:$0xf0]  ;;  %v2571_v13 = vld [vmem:[%s4180_s2 + $0x90] sm:$0xf] }
  0x12   :  { %876 = vmatpush.bf16.msra.mxu3 %v3058_v50  ;;  %v3130_v14 = vor.u32 %v2773_v2, %v2581_v4  ;;  %v2772_v15 = vld [vmem:[%s4180_s2 + $0x94] sm:$0xf0]  ;;  %v2755_v18 = vld [vmem:[%s4180_s2 + $0x14] sm:$0xf]  ;;  %v2509_v19 = vld [vmem:[%s4180_s2 + $0x18] sm:$0xf0]  ;;  %v3148_v23 = vor.u32 %v2756_v11, %v2507_v10 }
  0x13   :  { %v2771_v20 = vld [vmem:[%s4180_s2 + $0x94] sm:$0xf]  ;;  %v2573_v22 = vld [vmem:[%s4180_s2 + $0x98] sm:$0xf0]  ;;  %v2499_v24 = vld [vmem:[%s4180_s2] sm:$0xf]  ;;  %v3155_v26 = vor.u32 %v2772_v15, %v2571_v13  ;;  %v3157_v27 = vor.u32 %v2755_v18, %v2509_v19 }
  0x14   :  { %610 = vmatpush.bf16.msra.mxu0 %v3076_v56  ;;  %v2754_v28 = vld [vmem:[%s4180_s2 + $0x4] sm:$0xf0]  ;;  %v2563_v30 = vld [vmem:[%s4180_s2 + $0x80] sm:$0xf] }
  0x15   :  { %699 = vmatpush.bf16.msra.mxu1 %v3080_v57  ;;  %788 = vmatpush.bf16.msra.mxu2 %v3082_v58 }
  0x16   :  { %877 = vmatpush.bf16.msra.mxu3 %v3094_v62 }
  0x18   :  { %611 = vmatpush.bf16.msra.mxu0 %v3112_v5 }
  0x19   :  { %700 = vmatpush.bf16.msra.mxu1 %v3116_v6  ;;  %789 = vmatpush.bf16.msra.mxu2 %v3118_v9 }
  0x1a   :  { %11 = vsyncpa [#allocation5], 0  ;;  %878 = vmatpush.bf16.msra.mxu3 %v3130_v14  ;;  %v2576_v31 = vor.u32 %v2771_v20, %v2573_v22  ;;  %v2770_v32 = vld [vmem:[%s4180_s2 + $0x84] sm:$0xf0]  ;;  %v2753_v35 = vld [vmem:[%s4180_s2 + $0x4] sm:$0xf]  ;;  %v3182_v40 = vor.u32 %v2754_v28, %v2499_v24 }
  0x1b   :  { %v2501_v36 = vld [vmem:[%s4180_s2 + $0x8] sm:$0xf0]  ;;  %v2769_v37 = vld [vmem:[%s4180_s2 + $0x84] sm:$0xf]  ;;  %v2371_v41 = vld [vmem:[%s4178_s0] sm:$0xf]  ;;  %v2564_v43 = vor.u32 %v2770_v32, %v2563_v30 }
  0x1c   :  { %v2565_v39 = vld [vmem:[%s4180_s2 + $0x88] sm:$0xf0]  ;;  %612 = vmatpush.bf16.msra.mxu0 %v3148_v23  ;;  %v2786_v42 = vld [vmem:[%s4178_s0 + $0x4] sm:$0xf0]  ;;  %v2504_v47 = vor.u32 %v2753_v35, %v2501_v36  ;;  %v2785_v48 = vld [vmem:[%s4178_s0 + $0x4] sm:$0xf] }
  0x1d   :  { %701 = vmatpush.bf16.msra.mxu1 %v3155_v26  ;;  %790 = vmatpush.bf16.msra.mxu2 %v3157_v27  ;;  %v2373_v49 = vld [vmem:[%s4178_s0 + $0x8] sm:$0xf0]  ;;  %v2568_v51 = vor.u32 %v2769_v37, %v2565_v39  ;;  %v2372_v52 = vor.u32 %v2786_v42, %v2371_v41  ;;  %v2796_v63 = vld [vmem:[%s4178_s0 + $0x54] sm:$0xf0]  ;;  %v2795_v0 = vld [vmem:[%s4178_s0 + $0x54] sm:$0xf] }
  0x1e   :  { %879 = vmatpush.bf16.msra.mxu3 %v2576_v31  ;;  %v2376_v53 = vor.u32 %v2785_v48, %v2373_v49  ;;  %v2405_v59 = vld [vmem:[%s4178_s0 + $0x48] sm:$0xf0]  ;;  %v2413_v1 = vld [vmem:[%s4178_s0 + $0x58] sm:$0xf0]  ;;  %v2800_v15 = vld [vmem:[%s4178_s0 + $0x74] sm:$0xf0] }
  0x1f   :  { %v2416_v4 = vor.u32 %v2795_v0, %v2413_v1  ;;  %v2421_v10 = vld [vmem:[%s4178_s0 + $0x68] sm:$0xf0]  ;;  %v2799_v18 = vld [vmem:[%s4178_s0 + $0x74] sm:$0xf]  ;;  %v2429_v19 = vld [vmem:[%s4178_s0 + $0x78] sm:$0xf0] }
  0x20   :  { %613 = vmatpush.bf16.msra.mxu0 %v3182_v40  ;;  %v2432_v22 = vor.u32 %v2799_v18, %v2429_v19  ;;  %v2802_v24 = vld [vmem:[%s4178_s0 + $0x84] sm:$0xf0]  ;;  %v2803_v48 = vld [vmem:[%s4178_s0 + $0x94] sm:$0xf]  ;;  %v2445_v49 = vld [vmem:[%s4178_s0 + $0x98] sm:$0xf0] }
  0x21   :  { %702 = vmatpush.bf16.msra.mxu1 %v2564_v43  ;;  %791 = vmatpush.bf16.msra.mxu2 %v2504_v47  ;;  %s2878_s13 = smov [#allocation4]   ;;  %s2351_s17 = sshll.u32 %s4182_s4, 4  ;;  %s2352_s17 = int_to_ptr.hbm [resolvable:$true] %s2351_s17 }
  0x22   :  { %880 = vmatpush.bf16.msra.mxu3 %v2568_v51  ;;  %s2349_s14 = sshll.u32 %s2878_s13, 4  ;;  %s2879_s21 = smov 128   ;;  %s2350_s14 = int_to_ptr.vmem [resolvable:$true] %s2349_s14 }
  0x23   :  { %614 = vmatmul.bf16.vlgmr.msra.gmra.mxu0 %v2372_v52  ;;  %s2880_s22 = smov 8  }
  0x24   :  { %703 = vmatmul.bf16.vlgmr.msra.gmra.mxu1 %v2376_v53  ;;  %792 = vmatmul.bf16.vlgmr.msra.gmra.mxu2 %v2372_v52 }
  0x25   :  { %1524 = vmatpush.bf16.msrb.mxu2 %v2933_v8  ;;  %881 = vmatmul.bf16.vlgmr.msra.gmra.mxu3 %v2376_v53  ;;  %v2379_v8 = vld [vmem:[%s4178_s0 + $0x10] sm:$0xf] }
  0x26   :  { %1613 = vmatpush.bf16.msrb.mxu3 %v2945_v12  ;;  %1346 = vmatpush.bf16.msrb.mxu0 %v2920_v3  ;;  %v2788_v3 = vld [vmem:[%s4178_s0 + $0x14] sm:$0xf0]  ;;  %v2381_v12 = vld [vmem:[%s4178_s0 + $0x18] sm:$0xf0] }
  0x27   :  { %1435 = vmatpush.bf16.msrb.mxu1 %v2931_v7  ;;  %v2787_v7 = vld [vmem:[%s4178_s0 + $0x14] sm:$0xf] }
  0x29   :  { %1525 = vmatpush.bf16.msrb.mxu2 %v2972_v21  ;;  %v2387_v21 = vld [vmem:[%s4178_s0 + $0x20] sm:$0xf] }
  0x2a   :  { %1614 = vmatpush.bf16.msrb.mxu3 %v2983_v25  ;;  %1347 = vmatpush.bf16.msrb.mxu0 %v2958_v16  ;;  %v2380_v16 = vor.u32 %v2788_v3, %v2379_v8  ;;  %v2790_v25 = vld [vmem:[%s4178_s0 + $0x24] sm:$0xf0]  ;;  %v2448_v3 = vor.u32 %v2803_v48, %v2445_v49 }
  0x2b   :  { %1436 = vmatpush.bf16.msrb.mxu1 %v2960_v17  ;;  %v2384_v17 = vor.u32 %v2787_v7, %v2381_v12 }
  0x2d   :  { %1526 = vmatpush.bf16.msrb.mxu2 %v3010_v34  ;;  %v2388_v34 = vor.u32 %v2790_v25, %v2387_v21 }
  0x2e   :  { %1615 = vmatpush.bf16.msrb.mxu3 %v3022_v38  ;;  %1348 = vmatpush.bf16.msrb.mxu0 %v2995_v29  ;;  %v2789_v29 = vld [vmem:[%s4178_s0 + $0x24] sm:$0xf] }
  0x2f   :  { %1437 = vmatpush.bf16.msrb.mxu1 %v3008_v33  ;;  %v2389_v33 = vld [vmem:[%s4178_s0 + $0x28] sm:$0xf0] }
  0x30   :  { %v2392_v38 = vor.u32 %v2789_v29, %v2389_v33 }
  0x31   :  { %1527 = vmatpush.bf16.msrb.mxu2 %v3046_v46  ;;  %v2791_v46 = vld [vmem:[%s4178_s0 + $0x34] sm:$0xf] }
  0x32   :  { %1616 = vmatpush.bf16.msrb.mxu3 %v3058_v50  ;;  %1349 = vmatpush.bf16.msrb.mxu0 %v3040_v44  ;;  %v2395_v44 = vld [vmem:[%s4178_s0 + $0x30] sm:$0xf]  ;;  %v2397_v50 = vld [vmem:[%s4178_s0 + $0x38] sm:$0xf0] }
  0x33   :  { %1438 = vmatpush.bf16.msrb.mxu1 %v3044_v45  ;;  %619 = vmatmul.bf16.gmra.mxu0 %v2380_v16  ;;  %v2792_v45 = vld [vmem:[%s4178_s0 + $0x34] sm:$0xf0]  ;;  %v2400_v55 = vor.u32 %v2791_v46, %v2397_v50  ;;  %v2453_v46 = vld [vmem:[%s4178_s0 + $0xa8] sm:$0xf0] }
  0x34   :  { %708 = vmatmul.bf16.gmra.mxu1 %v2384_v17  ;;  %797 = vmatmul.bf16.gmra.mxu2 %v2380_v16  ;;  %v2396_v54 = vor.u32 %v2792_v45, %v2395_v44  ;;  %v2806_v44 = vld [vmem:[%s4178_s0 + $0xa4] sm:$0xf0]  ;;  %v2805_v45 = vld [vmem:[%s4178_s0 + $0xa4] sm:$0xf] }
  0x35   :  { %1528 = vmatpush.bf16.msrb.mxu2 %v3082_v58  ;;  %886 = vmatmul.bf16.gmra.mxu3 %v2384_v17  ;;  %v2793_v58 = vld [vmem:[%s4178_s0 + $0x44] sm:$0xf] }
  0x36   :  { %1617 = vmatpush.bf16.msrb.mxu3 %v3094_v62  ;;  %1350 = vmatpush.bf16.msrb.mxu0 %v3076_v56  ;;  %v2403_v56 = vld [vmem:[%s4178_s0 + $0x40] sm:$0xf]  ;;  %v2408_v61 = vor.u32 %v2793_v58, %v2405_v59  ;;  %v2411_v62 = vld [vmem:[%s4178_s0 + $0x50] sm:$0xf] }
  0x37   :  { %1439 = vmatpush.bf16.msrb.mxu1 %v3080_v57  ;;  %v2794_v57 = vld [vmem:[%s4178_s0 + $0x44] sm:$0xf0]  ;;  %v2412_v2 = vor.u32 %v2796_v63, %v2411_v62 }
  0x38   :  { %v2404_v60 = vor.u32 %v2794_v57, %v2403_v56  ;;  %v2456_v57 = vor.u32 %v2805_v45, %v2453_v46 }
  0x39   :  { %1529 = vmatpush.bf16.msrb.mxu2 %v3118_v9  ;;  %v2797_v9 = vld [vmem:[%s4178_s0 + $0x64] sm:$0xf] }
  0x3a   :  { %1618 = vmatpush.bf16.msrb.mxu3 %v3130_v14  ;;  %1351 = vmatpush.bf16.msrb.mxu0 %v3112_v5  ;;  %v2419_v5 = vld [vmem:[%s4178_s0 + $0x60] sm:$0xf]  ;;  %v2424_v13 = vor.u32 %v2797_v9, %v2421_v10  ;;  %v2427_v14 = vld [vmem:[%s4178_s0 + $0x70] sm:$0xf]  ;;  %v2461_v9 = vld [vmem:[%s4178_s0 + $0xb8] sm:$0xf0] }
  0x3b   :  { %1440 = vmatpush.bf16.msrb.mxu1 %v3116_v6  ;;  %v2798_v6 = vld [vmem:[%s4178_s0 + $0x64] sm:$0xf0]  ;;  %v2428_v20 = vor.u32 %v2800_v15, %v2427_v14 }
  0x3c   :  { %v2420_v11 = vor.u32 %v2798_v6, %v2419_v5  ;;  %v2808_v5 = vld [vmem:[%s4178_s0 + $0xb4] sm:$0xf0]  ;;  %v2807_v6 = vld [vmem:[%s4178_s0 + $0xb4] sm:$0xf] }
  0x3d   :  { %1530 = vmatpush.bf16.msrb.mxu2 %v3157_v27  ;;  %v2437_v27 = vld [vmem:[%s4178_s0 + $0x88] sm:$0xf0]  ;;  %v2464_v15 = vor.u32 %v2807_v6, %v2461_v9  ;;  %v2814_v6 = vld [vmem:[%s4178_s0 + $0xe4] sm:$0xf0]  ;;  %v2813_v9 = vld [vmem:[%s4178_s0 + $0xe4] sm:$0xf] }
  0x3e   :  { %1619 = vmatpush.bf16.msrb.mxu3 %v2576_v31  ;;  %1352 = vmatpush.bf16.msrb.mxu0 %v3148_v23  ;;  %v2435_v23 = vld [vmem:[%s4178_s0 + $0x80] sm:$0xf] }
  0x3f   :  { %1441 = vmatpush.bf16.msrb.mxu1 %v3155_v26  ;;  %v2801_v26 = vld [vmem:[%s4178_s0 + $0x84] sm:$0xf]  ;;  %v2436_v28 = vor.u32 %v2802_v24, %v2435_v23 }
  0x40   :  { %v2440_v31 = vor.u32 %v2801_v26, %v2437_v27 }
  0x41   :  { %1531 = vmatpush.bf16.msrb.mxu2 %v2504_v47  ;;  %v2804_v47 = vld [vmem:[%s4178_s0 + $0x94] sm:$0xf0] }
  0x42   :  { %1620 = vmatpush.bf16.msrb.mxu3 %v2568_v51  ;;  %1353 = vmatpush.bf16.msrb.mxu0 %v3182_v40 }
  0x43   :  { %1442 = vmatpush.bf16.msrb.mxu1 %v2564_v43  ;;  %624 = vmatmul.bf16.gmra.mxu0 %v2388_v34  ;;  %v2443_v43 = vld [vmem:[%s4178_s0 + $0x90] sm:$0xf] }
  0x44   :  { %713 = vmatmul.bf16.gmra.mxu1 %v2392_v38  ;;  %802 = vmatmul.bf16.gmra.mxu2 %v2388_v34  ;;  %v2444_v52 = vor.u32 %v2804_v47, %v2443_v43 }
  0x45   :  { %891 = vmatmul.bf16.gmra.mxu3 %v2392_v38  ;;  %v2451_v38 = vld [vmem:[%s4178_s0 + $0xa0] sm:$0xf] }
  0x53   :  { %629 = vmatmul.bf16.gmra.mxu0 %v2396_v54 }
  0x54   :  { %718 = vmatmul.bf16.gmra.mxu1 %v2400_v55  ;;  %807 = vmatmul.bf16.gmra.mxu2 %v2396_v54  ;;  %v2452_v54 = vor.u32 %v2806_v44, %v2451_v38  ;;  %v2477_v38 = vld [vmem:[%s4178_s0 + $0xd8] sm:$0xf0] }
  0x55   :  { %896 = vmatmul.bf16.gmra.mxu3 %v2400_v55 }
  0x63   :  { %634 = vmatmul.bf16.gmra.mxu0 %v2404_v60 }
  0x64   :  { %723 = vmatmul.bf16.gmra.mxu1 %v2408_v61  ;;  %812 = vmatmul.bf16.gmra.mxu2 %v2404_v60 }
  0x65   :  { %901 = vmatmul.bf16.gmra.mxu3 %v2408_v61 }
  0x73   :  { %639 = vmatmul.bf16.gmra.mxu0 %v2412_v2 }
  0x74   :  { %728 = vmatmul.bf16.gmra.mxu1 %v2416_v4  ;;  %817 = vmatmul.bf16.gmra.mxu2 %v2412_v2 }
  0x75   :  { %906 = vmatmul.bf16.gmra.mxu3 %v2416_v4  ;;  %v2459_v4 = vld [vmem:[%s4178_s0 + $0xb0] sm:$0xf] }
  0x83   :  { %644 = vmatmul.bf16.gmra.mxu0 %v2420_v11 }
  0x84   :  { %733 = vmatmul.bf16.gmra.mxu1 %v2424_v13  ;;  %822 = vmatmul.bf16.gmra.mxu2 %v2420_v11  ;;  %v2460_v11 = vor.u32 %v2808_v5, %v2459_v4  ;;  %v2483_v5 = vld [vmem:[%s4178_s0 + $0xe0] sm:$0xf] }
  0x85   :  { %911 = vmatmul.bf16.gmra.mxu3 %v2424_v13 }
  0x93   :  { %649 = vmatmul.bf16.gmra.mxu0 %v2428_v20 }
  0x94   :  { %738 = vmatmul.bf16.gmra.mxu1 %v2432_v22  ;;  %827 = vmatmul.bf16.gmra.mxu2 %v2428_v20 }
  0x95   :  { %916 = vmatmul.bf16.gmra.mxu3 %v2432_v22 }
  0xa0   :  { %v615_v30 = vpop.f32.mrf.mxu0 }
  0xa1   :  { %v704_v32 = vpop.f32.mrf.mxu1 }
  0xa2   :  { %v3323_v35 = vadd.f32 %v704_v32, %v615_v30  ;;  %v2467_v30 = vld [vmem:[%s4178_s0 + $0xc0] sm:$0xf]  ;;  %v2809_v32 = vld [vmem:[%s4178_s0 + $0xc4] sm:$0xf] }
  0xa3   :  { %654 = vmatmul.bf16.gmra.mxu0 %v2436_v28 }
  0xa4   :  { %743 = vmatmul.bf16.gmra.mxu1 %v2440_v31  ;;  %832 = vmatmul.bf16.gmra.mxu2 %v2436_v28 }
  0xa5   :  { %921 = vmatmul.bf16.gmra.mxu3 %v2440_v31  ;;  %v2810_v31 = vld [vmem:[%s4178_s0 + $0xc4] sm:$0xf0] }
  0xa7   :  { %v793_v36 = vpop.f32.mrf.mxu2 }
  0xa8   :  { %v882_v37 = vpop.f32.mrf.mxu3  ;;  %v617_v39 = vpop.f32.mrf.mxu0 }
  0xa9   :  { %v3325_v40 = vadd.f32 %v882_v37, %v793_v36  ;;  %v706_v41 = vpop.f32.mrf.mxu1  ;;  %v2469_v36 = vld [vmem:[%s4178_s0 + $0xc8] sm:$0xf0] }
  0xaa   :  { %v3327_v42 = vadd.f32 %v706_v41, %v617_v39  ;;  %v2468_v39 = vor.u32 %v2810_v31, %v2467_v30  ;;  %v2472_v47 = vor.u32 %v2809_v32, %v2469_v36 }
  0xaf   :  { %v795_v51 = vpop.f32.mrf.mxu2 }
  0xb0   :  { %v884_v53 = vpop.f32.mrf.mxu3  ;;  %v620_v8 = vpop.f32.mrf.mxu0 }
  0xb1   :  { %v3341_v7 = vadd.f32 %v884_v53, %v795_v51  ;;  %v709_v12 = vpop.f32.mrf.mxu1 }
  0xb2   :  { %v3343_v16 = vadd.f32 %v709_v12, %v620_v8 }
  0xb3   :  { %659 = vmatmul.bf16.gmra.mxu0 %v2444_v52 }
  0xb4   :  { %748 = vmatmul.bf16.gmra.mxu1 %v2448_v3  ;;  %837 = vmatmul.bf16.gmra.mxu2 %v2444_v52 }
  0xb5   :  { %926 = vmatmul.bf16.gmra.mxu3 %v2448_v3 }
  0xb7   :  { %v798_v17 = vpop.f32.mrf.mxu2 }
  0xb8   :  { %v887_v21 = vpop.f32.mrf.mxu3  ;;  %v622_v25 = vpop.f32.mrf.mxu0 }
  0xb9   :  { %v3345_v29 = vadd.f32 %v887_v21, %v798_v17  ;;  %v711_v33 = vpop.f32.mrf.mxu1  ;;  %v2475_v21 = vld [vmem:[%s4178_s0 + $0xd0] sm:$0xf] }
  0xba   :  { %v3347_v34 = vadd.f32 %v711_v33, %v622_v25  ;;  %v2812_v25 = vld [vmem:[%s4178_s0 + $0xd4] sm:$0xf0]  ;;  %v2811_v33 = vld [vmem:[%s4178_s0 + $0xd4] sm:$0xf] }
  0xbb   :  { %v2476_v45 = vor.u32 %v2812_v25, %v2475_v21 }
  0xbf   :  { %v800_v50 = vpop.f32.mrf.mxu2 }
  0xc0   :  { %v889_v55 = vpop.f32.mrf.mxu3  ;;  %v625_v56 = vpop.f32.mrf.mxu0 }
  0xc1   :  { %v3361_v58 = vadd.f32 %v889_v55, %v800_v50  ;;  %v714_v59 = vpop.f32.mrf.mxu1 }
  0xc2   :  { %v3363_v60 = vadd.f32 %v714_v59, %v625_v56 }
  0xc3   :  { %664 = vmatmul.bf16.gmra.mxu0 %v2452_v54 }
  0xc4   :  { %753 = vmatmul.bf16.gmra.mxu1 %v2456_v57  ;;  %842 = vmatmul.bf16.gmra.mxu2 %v2452_v54  ;;  %v2480_v54 = vor.u32 %v2811_v33, %v2477_v38 }
  0xc5   :  { %931 = vmatmul.bf16.gmra.mxu3 %v2456_v57 }
  0xc7   :  { %v803_v61 = vpop.f32.mrf.mxu2 }
  0xc8   :  { %v892_v62 = vpop.f32.mrf.mxu3  ;;  %v627_v63 = vpop.f32.mrf.mxu0 }
  0xc9   :  { %v3365_v0 = vadd.f32 %v892_v62, %v803_v61  ;;  %v716_v1 = vpop.f32.mrf.mxu1 }
  0xca   :  { %v3367_v2 = vadd.f32 %v716_v1, %v627_v63 }
  0xcf   :  { %v805_v10 = vpop.f32.mrf.mxu2 }
  0xd0   :  { %v894_v13 = vpop.f32.mrf.mxu3  ;;  %v630_v14 = vpop.f32.mrf.mxu0 }
  0xd1   :  { %v3381_v18 = vadd.f32 %v894_v13, %v805_v10  ;;  %v719_v19 = vpop.f32.mrf.mxu1  ;;  %v2485_v10 = vld [vmem:[%s4178_s0 + $0xe8] sm:$0xf0]  ;;  %v2484_v13 = vor.u32 %v2814_v6, %v2483_v5 }
  0xd2   :  { %v3383_v20 = vadd.f32 %v719_v19, %v630_v14  ;;  %v2488_v19 = vor.u32 %v2813_v9, %v2485_v10 }
  0xd3   :  { %669 = vmatmul.bf16.gmra.mxu0 %v2460_v11 }
  0xd4   :  { %758 = vmatmul.bf16.gmra.mxu1 %v2464_v15  ;;  %847 = vmatmul.bf16.gmra.mxu2 %v2460_v11 }
  0xd5   :  { %936 = vmatmul.bf16.gmra.mxu3 %v2464_v15 }
  0xd7   :  { %v808_v22 = vpop.f32.mrf.mxu2 }
  0xd8   :  { %v897_v23 = vpop.f32.mrf.mxu3  ;;  %v632_v24 = vpop.f32.mrf.mxu0 }
  0xd9   :  { %v3385_v26 = vadd.f32 %v897_v23, %v808_v22  ;;  %v721_v27 = vpop.f32.mrf.mxu1 }
  0xda   :  { %v3387_v28 = vadd.f32 %v721_v27, %v632_v24 }
  0xdf   :  { %v810_v37 = vpop.f32.mrf.mxu2 }
  0xe0   :  { %v899_v41 = vpop.f32.mrf.mxu3  ;;  %v635_v43 = vpop.f32.mrf.mxu0 }
  0xe1   :  { %v3401_v48 = vadd.f32 %v899_v41, %v810_v37  ;;  %v724_v49 = vpop.f32.mrf.mxu1  ;;  %v2816_v41 = vld [vmem:[%s4178_s0 + $0xf4] sm:$0xf0] }
  0xe2   :  { %v3403_v51 = vadd.f32 %v724_v49, %v635_v43  ;;  %v2815_v43 = vld [vmem:[%s4178_s0 + $0xf4] sm:$0xf] }
  0xe3   :  { %674 = vmatmul.bf16.gmra.mxu0 %v2468_v39 }
  0xe4   :  { %763 = vmatmul.bf16.gmra.mxu1 %v2472_v47  ;;  %852 = vmatmul.bf16.gmra.mxu2 %v2468_v39  ;;  %v2491_v39 = vld [vmem:[%s4178_s0 + $0xf0] sm:$0xf] }
  0xe5   :  { %941 = vmatmul.bf16.gmra.mxu3 %v2472_v47  ;;  %v2493_v47 = vld [vmem:[%s4178_s0 + $0xf8] sm:$0xf0] }
  0xe7   :  { %v813_v52 = vpop.f32.mrf.mxu2 }
  0xe8   :  { %v902_v53 = vpop.f32.mrf.mxu3  ;;  %v637_v8 = vpop.f32.mrf.mxu0 }
  0xe9   :  { %v3405_v3 = vadd.f32 %v902_v53, %v813_v52  ;;  %v726_v12 = vpop.f32.mrf.mxu1  ;;  %v2492_v52 = vor.u32 %v2816_v41, %v2491_v39  ;;  %v2820_v39 = vld [vmem:[%s4179_s1 + $0x14] sm:$0xf0]  ;;  %v2819_v41 = vld [vmem:[%s4179_s1 + $0x14] sm:$0xf] }
  0xea   :  { %v3407_v17 = vadd.f32 %v726_v12, %v637_v8  ;;  %v2496_v12 = vor.u32 %v2815_v43, %v2493_v47  ;;  %v2637_v43 = vld [vmem:[%s4179_s1 + $0x18] sm:$0xf0] }
  0xef   :  { %v815_v44 = vpop.f32.mrf.mxu2 }
  0xf0   :  { %v904_v46 = vpop.f32.mrf.mxu3  ;;  %v640_v50 = vpop.f32.mrf.mxu0 }
  0xf1   :  { %v3421_v55 = vadd.f32 %v904_v46, %v815_v44  ;;  %v729_v56 = vpop.f32.mrf.mxu1 }
  0xf2   :  { %v3423_v57 = vadd.f32 %v729_v56, %v640_v50  ;;  %v2627_v56 = vld [vmem:[%s4179_s1] sm:$0xf] }
  0xf3   :  { %679 = vmatmul.bf16.gmra.mxu0 %v2476_v45 }
  0xf4   :  { %768 = vmatmul.bf16.gmra.mxu1 %v2480_v54  ;;  %857 = vmatmul.bf16.gmra.mxu2 %v2476_v45 }
  0xf5   :  { %946 = vmatmul.bf16.gmra.mxu3 %v2480_v54 }
  0xf7   :  { %v818_v59 = vpop.f32.mrf.mxu2 }
  0xf8   :  { %v907_v61 = vpop.f32.mrf.mxu3  ;;  %v642_v62 = vpop.f32.mrf.mxu0 }
  0xf9   :  { %v3425_v63 = vadd.f32 %v907_v61, %v818_v59  ;;  %v731_v1 = vpop.f32.mrf.mxu1  ;;  %v2818_v59 = vld [vmem:[%s4179_s1 + $0x4] sm:$0xf0]  ;;  %v2817_v61 = vld [vmem:[%s4179_s1 + $0x4] sm:$0xf] }
  0xfa   :  { %v3427_v4 = vadd.f32 %v731_v1, %v642_v62  ;;  %v2629_v62 = vld [vmem:[%s4179_s1 + $0x8] sm:$0xf0]  ;;  %v2628_v5 = vor.u32 %v2818_v59, %v2627_v56 }
  0xfb   :  { %v2632_v10 = vor.u32 %v2817_v61, %v2629_v62  ;;  %v2643_v62 = vld [vmem:[%s4179_s1 + $0x20] sm:$0xf] }
  0xff   :  { %v820_v11 = vpop.f32.mrf.mxu2 }
 0x100   :  { %v909_v14 = vpop.f32.mrf.mxu3  ;;  %v645_v15 = vpop.f32.mrf.mxu0 }
 0x101   :  { %v3441_v22 = vadd.f32 %v909_v14, %v820_v11  ;;  %v734_v23 = vpop.f32.mrf.mxu1 }
 0x102   :  { %v3443_v24 = vadd.f32 %v734_v23, %v645_v15 }
 0x103   :  { %684 = vmatmul.bf16.gmra.mxu0 %v2484_v13 }
 0x104   :  { %773 = vmatmul.bf16.gmra.mxu1 %v2488_v19  ;;  %862 = vmatmul.bf16.gmra.mxu2 %v2484_v13 }
 0x105   :  { %951 = vmatmul.bf16.gmra.mxu3 %v2488_v19 }
 0x107   :  { %v823_v27 = vpop.f32.mrf.mxu2 }
 0x108   :  { %v912_v30 = vpop.f32.mrf.mxu3  ;;  %v647_v31 = vpop.f32.mrf.mxu0 }
 0x109   :  { %v3445_v32 = vadd.f32 %v912_v30, %v823_v27  ;;  %v736_v36 = vpop.f32.mrf.mxu1 }
 0x10a   :  { %v3447_v37 = vadd.f32 %v736_v36, %v647_v31  ;;  %v2635_v36 = vld [vmem:[%s4179_s1 + $0x10] sm:$0xf] }
 0x10f   :  { %v825_v49 = vpop.f32.mrf.mxu2 }
 0x110   :  { %v914_v53 = vpop.f32.mrf.mxu3  ;;  %v650_v8 = vpop.f32.mrf.mxu0 }
 0x111   :  { %v3461_v21 = vadd.f32 %v914_v53, %v825_v49  ;;  %v739_v25 = vpop.f32.mrf.mxu1  ;;  %v2636_v49 = vor.u32 %v2820_v39, %v2635_v36 }
 0x112   :  { %v3463_v33 = vadd.f32 %v739_v25, %v650_v8  ;;  %v2640_v8 = vor.u32 %v2819_v41, %v2637_v43 }
 0x113   :  { %689 = vmatmul.bf16.gmra.mxu0 %v2492_v52 }
 0x114   :  { %778 = vmatmul.bf16.gmra.mxu1 %v2496_v12  ;;  %867 = vmatmul.bf16.gmra.mxu2 %v2492_v52 }
 0x115   :  { %956 = vmatmul.bf16.gmra.mxu3 %v2496_v12 }
 0x117   :  { %v828_v38 = vpop.f32.mrf.mxu2 }
 0x118   :  { %v917_v44 = vpop.f32.mrf.mxu3  ;;  %v652_v45 = vpop.f32.mrf.mxu0 }
 0x119   :  { %v3465_v46 = vadd.f32 %v917_v44, %v828_v38  ;;  %v741_v50 = vpop.f32.mrf.mxu1 }
 0x11a   :  { %v3467_v54 = vadd.f32 %v741_v50, %v652_v45 }
 0x11f   :  { %v830_v1 = vpop.f32.mrf.mxu2 }
 0x120   :  { %v919_v6 = vpop.f32.mrf.mxu3  ;;  %v655_v9 = vpop.f32.mrf.mxu0 }
 0x121   :  { %v3481_v11 = vadd.f32 %v919_v6, %v830_v1  ;;  %v744_v13 = vpop.f32.mrf.mxu1  ;;  %v2822_v1 = vld [vmem:[%s4179_s1 + $0x24] sm:$0xf0]  ;;  %v2645_v6 = vld [vmem:[%s4179_s1 + $0x28] sm:$0xf0] }
 0x122   :  { %v3483_v14 = vadd.f32 %v744_v13, %v655_v9 }
 0x123   :  { %1354 = vmatmul.bf16.vlgmr.msrb.gmra.mxu0 %v2628_v5 }
 0x124   :  { %1443 = vmatmul.bf16.vlgmr.msrb.gmra.mxu1 %v2632_v10  ;;  %1532 = vmatmul.bf16.vlgmr.msrb.gmra.mxu2 %v2628_v5  ;;  %v2821_v5 = vld [vmem:[%s4179_s1 + $0x24] sm:$0xf] }
 0x125   :  { %1621 = vmatmul.bf16.vlgmr.msrb.gmra.mxu3 %v2632_v10  ;;  %v2644_v10 = vor.u32 %v2822_v1, %v2643_v62 }
 0x127   :  { %v833_v15 = vpop.f32.mrf.mxu2 }
 0x128   :  { %v922_v19 = vpop.f32.mrf.mxu3  ;;  %v657_v23 = vpop.f32.mrf.mxu0 }
 0x129   :  { %v3485_v27 = vadd.f32 %v922_v19, %v833_v15  ;;  %v746_v30 = vpop.f32.mrf.mxu1  ;;  %v2648_v19 = vor.u32 %v2821_v5, %v2645_v6 }
 0x12a   :  { %v3487_v31 = vadd.f32 %v746_v30, %v657_v23 }
 0x12f   :  { %v835_v47 = vpop.f32.mrf.mxu2 }
 0x130   :  { %v924_v52 = vpop.f32.mrf.mxu3  ;;  %v660_v53 = vpop.f32.mrf.mxu0 }
 0x131   :  { %v3501_v12 = vadd.f32 %v924_v52, %v835_v47  ;;  %v749_v25 = vpop.f32.mrf.mxu1 }
 0x132   :  { %v3503_v38 = vadd.f32 %v749_v25, %v660_v53  ;;  %v2651_v53 = vld [vmem:[%s4179_s1 + $0x30] sm:$0xf]  ;;  %v2823_v25 = vld [vmem:[%s4179_s1 + $0x34] sm:$0xf] }
 0x133   :  { %1359 = vmatmul.bf16.gmra.mxu0 %v2636_v49 }
 0x134   :  { %1448 = vmatmul.bf16.gmra.mxu1 %v2640_v8  ;;  %1537 = vmatmul.bf16.gmra.mxu2 %v2636_v49 }
 0x135   :  { %1626 = vmatmul.bf16.gmra.mxu3 %v2640_v8  ;;  %v2824_v8 = vld [vmem:[%s4179_s1 + $0x34] sm:$0xf0] }
 0x137   :  { %v838_v44 = vpop.f32.mrf.mxu2 }
 0x138   :  { %v927_v45 = vpop.f32.mrf.mxu3  ;;  %v662_v50 = vpop.f32.mrf.mxu0 }
 0x139   :  { %v3505_v56 = vadd.f32 %v927_v45, %v838_v44  ;;  %v751_v59 = vpop.f32.mrf.mxu1  ;;  %v2653_v44 = vld [vmem:[%s4179_s1 + $0x38] sm:$0xf0] }
 0x13a   :  { %v3507_v61 = vadd.f32 %v751_v59, %v662_v50  ;;  %v2652_v50 = vor.u32 %v2824_v8, %v2651_v53  ;;  %v2656_v1 = vor.u32 %v2823_v25, %v2653_v44  ;;  %v2661_v53 = vld [vmem:[%s4179_s1 + $0x48] sm:$0xf0] }
 0x13f   :  { %v840_v9 = vpop.f32.mrf.mxu2 }
 0x140   :  { %v929_v13 = vpop.f32.mrf.mxu3  ;;  %v665_v15 = vpop.f32.mrf.mxu0 }
 0x141   :  { %v3521_v23 = vadd.f32 %v929_v13, %v840_v9  ;;  %v754_v30 = vpop.f32.mrf.mxu1 }
 0x142   :  { %v3523_v36 = vadd.f32 %v754_v30, %v665_v15 }
 0x143   :  { %1364 = vmatmul.bf16.gmra.mxu0 %v2644_v10 }
 0x144   :  { %1453 = vmatmul.bf16.gmra.mxu1 %v2648_v19  ;;  %1542 = vmatmul.bf16.gmra.mxu2 %v2644_v10 }
 0x145   :  { %1631 = vmatmul.bf16.gmra.mxu3 %v2648_v19 }
 0x147   :  { %v843_v39 = vpop.f32.mrf.mxu2 }
 0x148   :  { %v932_v41 = vpop.f32.mrf.mxu3  ;;  %v667_v43 = vpop.f32.mrf.mxu0 }
 0x149   :  { %v3525_v47 = vadd.f32 %v932_v41, %v843_v39  ;;  %v756_v49 = vpop.f32.mrf.mxu1  ;;  %v2659_v41 = vld [vmem:[%s4179_s1 + $0x40] sm:$0xf] }
 0x14a   :  { %v3527_v52 = vadd.f32 %v756_v49, %v667_v43  ;;  %v2826_v43 = vld [vmem:[%s4179_s1 + $0x44] sm:$0xf0]  ;;  %v2825_v49 = vld [vmem:[%s4179_s1 + $0x44] sm:$0xf] }
 0x14b   :  { %v2660_v25 = vor.u32 %v2826_v43, %v2659_v41  ;;  %v2667_v41 = vld [vmem:[%s4179_s1 + $0x50] sm:$0xf]  ;;  %v2828_v43 = vld [vmem:[%s4179_s1 + $0x54] sm:$0xf0] }
 0x14f   :  { %v845_v45 = vpop.f32.mrf.mxu2 }
 0x150   :  { %v934_v59 = vpop.f32.mrf.mxu3  ;;  %v670_v62 = vpop.f32.mrf.mxu0 }
 0x151   :  { %v3541_v5 = vadd.f32 %v934_v59, %v845_v45  ;;  %v759_v6 = vpop.f32.mrf.mxu1 }
 0x152   :  { %v3543_v9 = vadd.f32 %v759_v6, %v670_v62 }
 0x153   :  { %1369 = vmatmul.bf16.gmra.mxu0 %v2652_v50 }
 0x154   :  { %1458 = vmatmul.bf16.gmra.mxu1 %v2656_v1  ;;  %1547 = vmatmul.bf16.gmra.mxu2 %v2652_v50  ;;  %v2664_v50 = vor.u32 %v2825_v49, %v2661_v53  ;;  %v2827_v49 = vld [vmem:[%s4179_s1 + $0x54] sm:$0xf]  ;;  %v2669_v53 = vld [vmem:[%s4179_s1 + $0x58] sm:$0xf0] }
 0x155   :  { %1636 = vmatmul.bf16.gmra.mxu3 %v2656_v1 }
 0x157   :  { %v848_v10 = vpop.f32.mrf.mxu2 }
 0x158   :  { %v937_v13 = vpop.f32.mrf.mxu3  ;;  %v672_v15 = vpop.f32.mrf.mxu0 }
 0x159   :  { %v3545_v19 = vadd.f32 %v937_v13, %v848_v10  ;;  %v761_v30 = vpop.f32.mrf.mxu1 }
 0x15a   :  { %v3547_v39 = vadd.f32 %v761_v30, %v672_v15 }
 0x15c   :  { %4184 = vst [vmem:[#allocation7_spill] sm:$0xff] %v3547_v39 }
 0x15f   :  { %v850_v8 = vpop.f32.mrf.mxu2 }
 0x160   :  { %v939_v44 = vpop.f32.mrf.mxu3  ;;  %v675_v45 = vpop.f32.mrf.mxu0 }
 0x161   :  { %v3561_v59 = vadd.f32 %v939_v44, %v850_v8  ;;  %v764_v62 = vpop.f32.mrf.mxu1 }
 0x162   :  { %v3563_v1 = vadd.f32 %v764_v62, %v675_v45 }
 0x163   :  { %4185 = vst [vmem:[#allocation8_spill] sm:$0xff] %v3561_v59  ;;  %1374 = vmatmul.bf16.gmra.mxu0 %v2660_v25 }
 0x164   :  { %4186 = vst [vmem:[#allocation9_spill] sm:$0xff] %v3563_v1  ;;  %1463 = vmatmul.bf16.gmra.mxu1 %v2664_v50  ;;  %1552 = vmatmul.bf16.gmra.mxu2 %v2660_v25  ;;  %v2668_v25 = vor.u32 %v2828_v43, %v2667_v41  ;;  %v2675_v41 = vld [vmem:[%s4179_s1 + $0x60] sm:$0xf]  ;;  %v2830_v43 = vld [vmem:[%s4179_s1 + $0x64] sm:$0xf0] }
 0x165   :  { %1641 = vmatmul.bf16.gmra.mxu3 %v2664_v50  ;;  %v2672_v50 = vor.u32 %v2827_v49, %v2669_v53  ;;  %v2829_v49 = vld [vmem:[%s4179_s1 + $0x64] sm:$0xf]  ;;  %v2677_v53 = vld [vmem:[%s4179_s1 + $0x68] sm:$0xf0] }
 0x167   :  { %v853_v6 = vpop.f32.mrf.mxu2 }
 0x168   :  { %v942_v10 = vpop.f32.mrf.mxu3  ;;  %v677_v13 = vpop.f32.mrf.mxu0 }
 0x169   :  { %v3565_v15 = vadd.f32 %v942_v10, %v853_v6  ;;  %v766_v30 = vpop.f32.mrf.mxu1 }
 0x16a   :  { %v3567_v39 = vadd.f32 %v766_v30, %v677_v13 }
 0x16b   :  { %4187 = vst [vmem:[#allocation10_spill] sm:$0xff] %v3565_v15 }
 0x16c   :  { %4188 = vst [vmem:[#allocation11_spill] sm:$0xff] %v3567_v39 }
 0x16f   :  { %v855_v8 = vpop.f32.mrf.mxu2 }
 0x170   :  { %v944_v44 = vpop.f32.mrf.mxu3  ;;  %v680_v45 = vpop.f32.mrf.mxu0 }
 0x171   :  { %v3581_v62 = vadd.f32 %v944_v44, %v855_v8  ;;  %v769_v6 = vpop.f32.mrf.mxu1  ;;  %v2680_v44 = vor.u32 %v2829_v49, %v2677_v53  ;;  %v2831_v49 = vld [vmem:[%s4179_s1 + $0x74] sm:$0xf]  ;;  %v2685_v53 = vld [vmem:[%s4179_s1 + $0x78] sm:$0xf0] }
 0x172   :  { %v3583_v10 = vadd.f32 %v769_v6, %v680_v45 }
 0x173   :  { %4189 = vst [vmem:[#allocation12_spill] sm:$0xff] %v3581_v62  ;;  %1379 = vmatmul.bf16.gmra.mxu0 %v2668_v25 }
 0x174   :  { %4190 = vst [vmem:[#allocation13_spill] sm:$0xff] %v3583_v10  ;;  %1468 = vmatmul.bf16.gmra.mxu1 %v2672_v50  ;;  %1557 = vmatmul.bf16.gmra.mxu2 %v2668_v25  ;;  %v2676_v25 = vor.u32 %v2830_v43, %v2675_v41  ;;  %v2683_v41 = vld [vmem:[%s4179_s1 + $0x70] sm:$0xf]  ;;  %v2832_v43 = vld [vmem:[%s4179_s1 + $0x74] sm:$0xf0] }
 0x175   :  { %1646 = vmatmul.bf16.gmra.mxu3 %v2672_v50 }
 0x177   :  { %v858_v13 = vpop.f32.mrf.mxu2 }
 0x178   :  { %v947_v30 = vpop.f32.mrf.mxu3  ;;  %v682_v39 = vpop.f32.mrf.mxu0 }
 0x179   :  { %v3585_v1 = vadd.f32 %v947_v30, %v858_v13  ;;  %v771_v15 = vpop.f32.mrf.mxu1 }
 0x17a   :  { %v3587_v59 = vadd.f32 %v771_v15, %v682_v39 }
 0x17b   :  { %4191 = vst [vmem:[#allocation14_spill] sm:$0xff] %v3585_v1 }
 0x17c   :  { %4192 = vst [vmem:[#allocation15_spill] sm:$0xff] %v3587_v59 }
 0x17f   :  { %v860_v8 = vpop.f32.mrf.mxu2 }
 0x180   :  { %v949_v39 = vpop.f32.mrf.mxu3  ;;  %v685_v15 = vpop.f32.mrf.mxu0 }
 0x181   :  { %v3601_v45 = vadd.f32 %v949_v39, %v860_v8  ;;  %v774_v50 = vpop.f32.mrf.mxu1  ;;  %v2688_v39 = vor.u32 %v2831_v49, %v2685_v53  ;;  %v2833_v49 = vld [vmem:[%s4179_s1 + $0x84] sm:$0xf]  ;;  %v2693_v53 = vld [vmem:[%s4179_s1 + $0x88] sm:$0xf0] }
 0x182   :  { %v3603_v6 = vadd.f32 %v774_v50, %v685_v15 }
 0x183   :  { %4193 = vst [vmem:[#allocation16_spill] sm:$0xff] %v3601_v45  ;;  %1384 = vmatmul.bf16.gmra.mxu0 %v2676_v25 }
 0x184   :  { %4194 = vst [vmem:[#allocation17_spill] sm:$0xff] %v3603_v6  ;;  %1473 = vmatmul.bf16.gmra.mxu1 %v2680_v44  ;;  %1562 = vmatmul.bf16.gmra.mxu2 %v2676_v25  ;;  %v2684_v25 = vor.u32 %v2832_v43, %v2683_v41  ;;  %v2691_v41 = vld [vmem:[%s4179_s1 + $0x80] sm:$0xf]  ;;  %v2834_v43 = vld [vmem:[%s4179_s1 + $0x84] sm:$0xf0] }
 0x185   :  { %1651 = vmatmul.bf16.gmra.mxu3 %v2680_v44 }
 0x187   :  { %v863_v13 = vpop.f32.mrf.mxu2 }
 0x188   :  { %v952_v30 = vpop.f32.mrf.mxu3  ;;  %v687_v59 = vpop.f32.mrf.mxu0 }
 0x189   :  { %v3605_v10 = vadd.f32 %v952_v30, %v863_v13  ;;  %v776_v1 = vpop.f32.mrf.mxu1 }
 0x18a   :  { %v3607_v62 = vadd.f32 %v776_v1, %v687_v59 }
 0x18b   :  { %4195 = vst [vmem:[#allocation18_spill] sm:$0xff] %v3605_v10 }
 0x18c   :  { %4196 = vst [vmem:[#allocation19_spill] sm:$0xff] %v3607_v62 }
 0x18f   :  { %v865_v8 = vpop.f32.mrf.mxu2 }
 0x190   :  { %v954_v59 = vpop.f32.mrf.mxu3  ;;  %v690_v1 = vpop.f32.mrf.mxu0 }
 0x191   :  { %v3621_v15 = vadd.f32 %v954_v59, %v865_v8  ;;  %v779_v44 = vpop.f32.mrf.mxu1  ;;  %v2696_v59 = vor.u32 %v2833_v49, %v2693_v53 }
 0x192   :  { %v3623_v50 = vadd.f32 %v779_v44, %v690_v1 }
 0x193   :  { %1389 = vmatmul.bf16.gmra.mxu0 %v2684_v25 }
 0x194   :  { %4197 = vst [vmem:[#allocation20_spill] sm:$0xff] %v3623_v50  ;;  %1478 = vmatmul.bf16.gmra.mxu1 %v2688_v39  ;;  %1567 = vmatmul.bf16.gmra.mxu2 %v2684_v25  ;;  %v2692_v25 = vor.u32 %v2834_v43, %v2691_v41 }
 0x195   :  { %1656 = vmatmul.bf16.gmra.mxu3 %v2688_v39 }
 0x197   :  { %v868_v13 = vpop.f32.mrf.mxu2 }
 0x198   :  { %v957_v30 = vpop.f32.mrf.mxu3  ;;  %v692_v62 = vpop.f32.mrf.mxu0 }
 0x199   :  { %v3625_v6 = vadd.f32 %v957_v30, %v868_v13  ;;  %v781_v10 = vpop.f32.mrf.mxu1  ;;  %v2090_v30 = vld [vmem:[%s4181_s3 + $0x8] sm:$0xff] }
 0x19a   :  { %v3627_v45 = vadd.f32 %v781_v10, %v692_v62 }
 0x19b   :  { %4198 = vst [vmem:[#allocation21_spill] sm:$0xff] %v3625_v6 }
 0x19c   :  { %4199 = vst [vmem:[#allocation22_spill] sm:$0xff] %v3627_v45 }
 0x19f   :  { %v870_v8 = vpop.f32.mrf.mxu2 }
 0x1a0   :  { %v959_v62 = vpop.f32.mrf.mxu3  ;;  %v1355_v10 = vpop.f32.mrf.mxu0 }
 0x1a1   :  { %v3641_v1 = vadd.f32 %v959_v62, %v870_v8  ;;  %v1444_v39 = vpop.f32.mrf.mxu1 }
 0x1a2   :  { %v1445_v44 = vadd.f32 %v1444_v39, %v1355_v10 }
 0x1a3   :  { %4200 = vst [vmem:[#allocation23_spill] sm:$0xff] %v3641_v1  ;;  %1394 = vmatmul.bf16.gmra.mxu0 %v2692_v25 }
 0x1a4   :  { %v1993_v13 = vadd.f32 %v1445_v44, %v3325_v40  ;;  %1483 = vmatmul.bf16.gmra.mxu1 %v2696_v59  ;;  %1572 = vmatmul.bf16.gmra.mxu2 %v2692_v25 }
 0x1a5   :  { %1661 = vmatmul.bf16.gmra.mxu3 %v2696_v59  ;;  %v2835_v59 = vld [vmem:[%s4179_s1 + $0x94] sm:$0xf] }
 0x1a6   :  { %v2154_v45 = vmul.f32 0.33333334, %v1993_v13 }
 0x1a7   :  { %v1533_v50 = vpop.f32.mrf.mxu2 }
 0x1a8   :  { %v2218_v41 = vadd.f32 %v2154_v45, %v2090_v30  ;;  %v1622_v43 = vpop.f32.mrf.mxu3  ;;  %v1357_v6 = vpop.f32.mrf.mxu0 }
 0x1a9   :  { %v1623_v49 = vadd.f32 %v1622_v43, %v1533_v50  ;;  %v1446_v53 = vpop.f32.mrf.mxu1  ;;  %v2699_v50 = vld [vmem:[%s4179_s1 + $0x90] sm:$0xf] }
 0x1aa   :  { %2282 = vst [vmem:[%s4183_s5 + $0x8] sm:$0xff] %v2218_v41  ;;  %v1447_v8 = vadd.f32 %v1446_v53, %v1357_v6  ;;  %v2836_v6 = vld [vmem:[%s4179_s1 + $0x94] sm:$0xf0] }
 0x1ab   :  { %v1961_v40 = vadd.f32 %v1623_v49, %v3323_v35  ;;  %v2700_v41 = vor.u32 %v2836_v6, %v2699_v50 }
 0x1ac   :  { %v1994_v62 = vadd.f32 %v1447_v8, %v3341_v7  ;;  %v2701_v7 = vld [vmem:[%s4179_s1 + $0x98] sm:$0xf0] }
 0x1ad   :  { %v2025_v10 = vpack.c.bf16 %v1993_v13, %v1961_v40  ;;  %v2153_v35 = vmul.f32 0.33333334, %v1961_v40  ;;  %v2704_v8 = vor.u32 %v2835_v59, %v2701_v7 }
 0x1ae   :  { %v2156_v39 = vmul.f32 0.33333334, %v1994_v62 }
 0x1af   :  { %2057 = vst [vmem:[#allocation4] sm:$0xff] %v2025_v10  ;;  %v1535_v30 = vpop.f32.mrf.mxu2 }
 0x1b0   :  { %v1624_v49 = vpop.f32.mrf.mxu3  ;;  %v1360_v53 = vpop.f32.mrf.mxu0 }
 0x1b1   :  { %v2089_v25 = vld [vmem:[%s4181_s3] sm:$0xff]  ;;  %v2092_v45 = vld [vmem:[%s4181_s3 + $0x18] sm:$0xff]  ;;  %v1625_v13 = vadd.f32 %v1624_v49, %v1535_v30  ;;  %v1449_v40 = vpop.f32.mrf.mxu1 }
 0x1b2   :  { %v2217_v44 = vadd.f32 %v2153_v35, %v2089_v25  ;;  %v2220_v43 = vadd.f32 %v2156_v39, %v2092_v45  ;;  %v1450_v1 = vadd.f32 %v1449_v40, %v1360_v53 }
 0x1b3   :  { %v1962_v10 = vadd.f32 %v1625_v13, %v3327_v42  ;;  %1399 = vmatmul.bf16.gmra.mxu0 %v2700_v41  ;;  %v2838_v13 = vld [vmem:[%s4179_s1 + $0xa4] sm:$0xf0] }
 0x1b4   :  { %2281 = vst [vmem:[%s4183_s5] sm:$0xff] %v2217_v44  ;;  %v1995_v45 = vadd.f32 %v1450_v1, %v3345_v29  ;;  %1488 = vmatmul.bf16.gmra.mxu1 %v2704_v8  ;;  %1577 = vmatmul.bf16.gmra.mxu2 %v2700_v41 }
 0x1b5   :  { %2284 = vst [vmem:[%s4183_s5 + $0x18] sm:$0xff] %v2220_v43  ;;  %v2026_v50 = vpack.c.bf16 %v1994_v62, %v1962_v10  ;;  %v2155_v6 = vmul.f32 0.33333334, %v1962_v10  ;;  %1666 = vmatmul.bf16.gmra.mxu3 %v2704_v8  ;;  %v2707_v8 = vld [vmem:[%s4179_s1 + $0xa0] sm:$0xf] }
 0x1b6   :  { %v2158_v59 = vmul.f32 0.33333334, %v1995_v45  ;;  %v2837_v10 = vld [vmem:[%s4179_s1 + $0xa4] sm:$0xf] }
 0x1b7   :  { %2058 = vst [vmem:[#allocation4 + $0x8] sm:$0xff] %v2026_v50  ;;  %v1538_v42 = vpop.f32.mrf.mxu2 }
 0x1b8   :  { %v1627_v44 = vpop.f32.mrf.mxu3  ;;  %v1362_v30 = vpop.f32.mrf.mxu0 }
 0x1b9   :  { %v1628_v29 = vadd.f32 %v1627_v44, %v1538_v42  ;;  %v1451_v1 = vpop.f32.mrf.mxu1 }
 0x1ba   :  { %v1452_v62 = vadd.f32 %v1451_v1, %v1362_v30 }
 0x1bb   :  { %v1963_v41 = vadd.f32 %v1628_v29, %v3343_v16 }
 0x1bc   :  { %v2091_v25 = vld [vmem:[%s4181_s3 + $0x10] sm:$0xff]  ;;  %v2094_v35 = vld [vmem:[%s4181_s3 + $0x28] sm:$0xff]  ;;  %v1996_v49 = vadd.f32 %v1452_v62, %v3361_v58 }
 0x1bd   :  { %v2219_v7 = vadd.f32 %v2155_v6, %v2091_v25  ;;  %v2222_v39 = vadd.f32 %v2158_v59, %v2094_v35  ;;  %v2027_v40 = vpack.c.bf16 %v1995_v45, %v1963_v41  ;;  %v2157_v16 = vmul.f32 0.33333334, %v1963_v41  ;;  %v2709_v58 = vld [vmem:[%s4179_s1 + $0xa8] sm:$0xf0] }
 0x1be   :  { %v2160_v25 = vmul.f32 0.33333334, %v1996_v49  ;;  %v2708_v35 = vor.u32 %v2838_v13, %v2707_v8 }
 0x1bf   :  { %2283 = vst [vmem:[%s4183_s5 + $0x10] sm:$0xff] %v2219_v7  ;;  %v1540_v6 = vpop.f32.mrf.mxu2 }
 0x1c0   :  { %2286 = vst [vmem:[%s4183_s5 + $0x28] sm:$0xff] %v2222_v39  ;;  %v1629_v7 = vpop.f32.mrf.mxu3  ;;  %v1365_v42 = vpop.f32.mrf.mxu0  ;;  %v2712_v39 = vor.u32 %v2837_v10, %v2709_v58 }
 0x1c1   :  { %2059 = vst [vmem:[#allocation4 + $0x10] sm:$0xff] %v2027_v40  ;;  %v1630_v45 = vadd.f32 %v1629_v7, %v1540_v6  ;;  %v1454_v44 = vpop.f32.mrf.mxu1  ;;  %v2840_v7 = vld [vmem:[%s4179_s1 + $0xb4] sm:$0xf0] }
 0x1c2   :  { %v1455_v30 = vadd.f32 %v1454_v44, %v1365_v42 }
 0x1c3   :  { %v1964_v29 = vadd.f32 %v1630_v45, %v3347_v34  ;;  %1404 = vmatmul.bf16.gmra.mxu0 %v2708_v35 }
 0x1c4   :  { %v1997_v62 = vadd.f32 %v1455_v30, %v3365_v0  ;;  %1493 = vmatmul.bf16.gmra.mxu1 %v2712_v39  ;;  %1582 = vmatmul.bf16.gmra.mxu2 %v2708_v35 }
 0x1c5   :  { %v2028_v41 = vpack.c.bf16 %v1996_v49, %v1964_v29  ;;  %1671 = vmatmul.bf16.gmra.mxu3 %v2712_v39  ;;  %v2839_v39 = vld [vmem:[%s4179_s1 + $0xb4] sm:$0xf] }
 0x1c6   :  { %v2162_v8 = vmul.f32 0.33333334, %v1997_v62 }
 0x1c7   :  { %v2093_v43 = vld [vmem:[%s4181_s3 + $0x20] sm:$0xff]  ;;  %v2096_v53 = vld [vmem:[%s4181_s3 + $0x38] sm:$0xff]  ;;  %2060 = vst [vmem:[#allocation4 + $0x18] sm:$0xff] %v2028_v41  ;;  %v1543_v34 = vpop.f32.mrf.mxu2 }
 0x1c8   :  { %v2221_v50 = vadd.f32 %v2157_v16, %v2093_v43  ;;  %v2224_v59 = vadd.f32 %v2160_v25, %v2096_v53  ;;  %v2159_v43 = vmul.f32 0.33333334, %v1964_v29  ;;  %v1632_v16 = vpop.f32.mrf.mxu3  ;;  %v1367_v10 = vpop.f32.mrf.mxu0 }
 0x1c9   :  { %v1633_v0 = vadd.f32 %v1632_v16, %v1543_v34  ;;  %v1456_v58 = vpop.f32.mrf.mxu1 }
 0x1ca   :  { %2285 = vst [vmem:[%s4183_s5 + $0x20] sm:$0xff] %v2221_v50  ;;  %v1457_v49 = vadd.f32 %v1456_v58, %v1367_v10 }
 0x1cb   :  { %2288 = vst [vmem:[%s4183_s5 + $0x38] sm:$0xff] %v2224_v59  ;;  %v1965_v25 = vadd.f32 %v1633_v0, %v3363_v60  ;;  %v2715_v59 = vld [vmem:[%s4179_s1 + $0xb0] sm:$0xf] }
 0x1cc   :  { %v1998_v6 = vadd.f32 %v1457_v49, %v3381_v18  ;;  %v2717_v18 = vld [vmem:[%s4179_s1 + $0xb8] sm:$0xf0]  ;;  %v2716_v29 = vor.u32 %v2840_v7, %v2715_v59 }
 0x1cd   :  { %v2029_v42 = vpack.c.bf16 %v1997_v62, %v1965_v25  ;;  %v2161_v60 = vmul.f32 0.33333334, %v1965_v25 }
 0x1ce   :  { %v2164_v45 = vmul.f32 0.33333334, %v1998_v6 }
 0x1cf   :  { %2061 = vst [vmem:[#allocation4 + $0x20] sm:$0xff] %v2029_v42  ;;  %v1545_v30 = vpop.f32.mrf.mxu2 }
 0x1d0   :  { %v1634_v41 = vpop.f32.mrf.mxu3 }
 0x1d1   :  { %v1635_v62 = vadd.f32 %v1634_v41, %v1545_v30 }
 0x1d2   :  { %v2095_v1 = vld [vmem:[%s4181_s3 + $0x30] sm:$0xff]  ;;  %v2098_v53 = vld [vmem:[%s4181_s3 + $0x48] sm:$0xff] }
 0x1d3   :  { %v2223_v13 = vadd.f32 %v2159_v43, %v2095_v1  ;;  %v2226_v40 = vadd.f32 %v2162_v8, %v2098_v53  ;;  %v1370_v43 = vpop.f32.mrf.mxu0  ;;  %v2720_v53 = vor.u32 %v2839_v39, %v2717_v18  ;;  %v1459_v8 = vpop.f32.mrf.mxu1  ;;  %v1966_v34 = vadd.f32 %v1635_v62, %v3367_v2  ;;  %1409 = vmatmul.bf16.gmra.mxu0 %v2716_v29 }
 0x1d4   :  { %1587 = vmatmul.bf16.gmra.mxu2 %v2716_v29  ;;  %v2841_v29 = vld [vmem:[%s4179_s1 + $0xc4] sm:$0xf] }
 0x1d5   :  { %2287 = vst [vmem:[%s4183_s5 + $0x30] sm:$0xff] %v2223_v13  ;;  %v1460_v13 = vadd.f32 %v1459_v8, %v1370_v43  ;;  %1498 = vmatmul.bf16.gmra.mxu1 %v2720_v53  ;;  %v2030_v10 = vpack.c.bf16 %v1998_v6, %v1966_v34  ;;  %v2163_v0 = vmul.f32 0.33333334, %v1966_v34  ;;  %1676 = vmatmul.bf16.gmra.mxu3 %v2720_v53 }
 0x1d6   :  { %2290 = vst [vmem:[%s4183_s5 + $0x48] sm:$0xff] %v2226_v40 }
 0x1d7   :  { %v1999_v16 = vadd.f32 %v1460_v13, %v3385_v26  ;;  %2062 = vst [vmem:[#allocation4 + $0x28] sm:$0xff] %v2030_v10  ;;  %v1548_v2 = vpop.f32.mrf.mxu2 }
 0x1d9   :  { %v2166_v49 = vmul.f32 0.33333334, %v1999_v16 }
 0x1db   :  { %v1372_v59 = vpop.f32.mrf.mxu0  ;;  %v1461_v7 = vpop.f32.mrf.mxu1 }
 0x1dc   :  { %v1462_v6 = vadd.f32 %v1461_v7, %v1372_v59 }
 0x1dd   :  { %v2097_v50 = vld [vmem:[%s4181_s3 + $0x40] sm:$0xff]  ;;  %v2100_v35 = vld [vmem:[%s4181_s3 + $0x58] sm:$0xff] }
 0x1de   :  { %v2225_v44 = vadd.f32 %v2161_v60, %v2097_v50  ;;  %v2228_v1 = vadd.f32 %v2164_v45, %v2100_v35  ;;  %v1637_v35 = vpop.f32.mrf.mxu3  ;;  %v2000_v39 = vadd.f32 %v1462_v6, %v3401_v48  ;;  %v2723_v45 = vld [vmem:[%s4179_s1 + $0xc0] sm:$0xf]  ;;  %v2725_v48 = vld [vmem:[%s4179_s1 + $0xc8] sm:$0xf0] }
 0x1df   :  { %v1638_v26 = vadd.f32 %v1637_v35, %v1548_v2  ;;  %v1550_v43 = vpop.f32.mrf.mxu2  ;;  %v2728_v34 = vor.u32 %v2841_v29, %v2725_v48  ;;  %v2843_v48 = vld [vmem:[%s4179_s1 + $0xd4] sm:$0xf] }
 0x1e0   :  { %2289 = vst [vmem:[%s4183_s5 + $0x40] sm:$0xff] %v2225_v44  ;;  %v2842_v44 = vld [vmem:[%s4179_s1 + $0xc4] sm:$0xf0] }
 0x1e1   :  { %2292 = vst [vmem:[%s4183_s5 + $0x58] sm:$0xff] %v2228_v1  ;;  %v1967_v42 = vadd.f32 %v1638_v26, %v3383_v20  ;;  %v2168_v1 = vmul.f32 0.33333334, %v2000_v39  ;;  %v2724_v53 = vor.u32 %v2842_v44, %v2723_v45 }
 0x1e3   :  { %v2031_v30 = vpack.c.bf16 %v1999_v16, %v1967_v42  ;;  %v2165_v20 = vmul.f32 0.33333334, %v1967_v42  ;;  %v1375_v13 = vpop.f32.mrf.mxu0  ;;  %v1464_v16 = vpop.f32.mrf.mxu1  ;;  %1414 = vmatmul.bf16.gmra.mxu0 %v2724_v53 }
 0x1e4   :  { %v1465_v10 = vadd.f32 %v1464_v16, %v1375_v13  ;;  %1592 = vmatmul.bf16.gmra.mxu2 %v2724_v53 }
 0x1e5   :  { %2063 = vst [vmem:[#allocation4 + $0x30] sm:$0xff] %v2031_v30  ;;  %1503 = vmatmul.bf16.gmra.mxu1 %v2728_v34  ;;  %1681 = vmatmul.bf16.gmra.mxu3 %v2728_v34  ;;  %v2731_v30 = vld [vmem:[%s4179_s1 + $0xd0] sm:$0xf] }
 0x1e6   :  { %v1639_v8 = vpop.f32.mrf.mxu3 }
 0x1e8   :  { %v2099_v40 = vld [vmem:[%s4181_s3 + $0x50] sm:$0xff]  ;;  %v2102_v58 = vld [vmem:[%s4181_s3 + $0x68] sm:$0xff] }
 0x1e9   :  { %v2227_v25 = vadd.f32 %v2163_v0, %v2099_v40  ;;  %v2230_v50 = vadd.f32 %v2166_v49, %v2102_v58  ;;  %v1640_v40 = vadd.f32 %v1639_v8, %v1550_v43  ;;  %v2001_v49 = vadd.f32 %v1465_v10, %v3405_v3 }
 0x1eb   :  { %2291 = vst [vmem:[%s4183_s5 + $0x50] sm:$0xff] %v2227_v25  ;;  %v1968_v0 = vadd.f32 %v1640_v40, %v3387_v28  ;;  %v2170_v35 = vmul.f32 0.33333334, %v2001_v49  ;;  %v1553_v28 = vpop.f32.mrf.mxu2  ;;  %v1377_v6 = vpop.f32.mrf.mxu0 }
 0x1ec   :  { %2294 = vst [vmem:[%s4183_s5 + $0x68] sm:$0xff] %v2230_v50  ;;  %v1466_v42 = vpop.f32.mrf.mxu1 }
 0x1ed   :  { %v2032_v25 = vpack.c.bf16 %v2000_v39, %v1968_v0  ;;  %v2167_v2 = vmul.f32 0.33333334, %v1968_v0 }
 0x1ee   :  { %v1642_v7 = vpop.f32.mrf.mxu3 }
 0x1ef   :  { %2064 = vst [vmem:[#allocation4 + $0x38] sm:$0xff] %v2032_v25  ;;  %v1643_v3 = vadd.f32 %v1642_v7, %v1553_v28 }
 0x1f1   :  { %v1969_v39 = vadd.f32 %v1643_v3, %v3403_v51 }
 0x1f3   :  { %v2101_v60 = vld [vmem:[%s4181_s3 + $0x60] sm:$0xff]  ;;  %v2104_v18 = vld [vmem:[%s4181_s3 + $0x78] sm:$0xff]  ;;  %v2033_v29 = vpack.c.bf16 %v2001_v49, %v1969_v39  ;;  %v2169_v51 = vmul.f32 0.33333334, %v1969_v39  ;;  %v1555_v43 = vpop.f32.mrf.mxu2  ;;  %v1380_v13 = vpop.f32.mrf.mxu0 }
 0x1f4   :  { %v2229_v41 = vadd.f32 %v2165_v20, %v2101_v60  ;;  %v2232_v62 = vadd.f32 %v2168_v1, %v2104_v18  ;;  %v1467_v60 = vadd.f32 %v1466_v42, %v1377_v6  ;;  %v2844_v20 = vld [vmem:[%s4179_s1 + $0xd4] sm:$0xf0]  ;;  %v1469_v16 = vpop.f32.mrf.mxu1 }
 0x1f5   :  { %2065 = vst [vmem:[#allocation4 + $0x40] sm:$0xff] %v2033_v29  ;;  %v2732_v53 = vor.u32 %v2844_v20, %v2731_v30  ;;  %v1470_v10 = vadd.f32 %v1469_v16, %v1380_v13  ;;  %v2845_v20 = vld [vmem:[%s4179_s1 + $0xe4] sm:$0xf] }
 0x1f6   :  { %2293 = vst [vmem:[%s4183_s5 + $0x60] sm:$0xff] %v2229_v41  ;;  %v2002_v45 = vadd.f32 %v1467_v60, %v3421_v55  ;;  %v2733_v55 = vld [vmem:[%s4179_s1 + $0xd8] sm:$0xf0]  ;;  %v1644_v8 = vpop.f32.mrf.mxu3 }
 0x1f7   :  { %2296 = vst [vmem:[%s4183_s5 + $0x78] sm:$0xff] %v2232_v62  ;;  %v2736_v34 = vor.u32 %v2843_v48, %v2733_v55  ;;  %v1645_v40 = vadd.f32 %v1644_v8, %v1555_v43  ;;  %1419 = vmatmul.bf16.gmra.mxu0 %v2732_v53  ;;  %v2003_v49 = vadd.f32 %v1470_v10, %v3425_v63 }
 0x1f8   :  { %v2172_v1 = vmul.f32 0.33333334, %v2002_v45  ;;  %1597 = vmatmul.bf16.gmra.mxu2 %v2732_v53 }
 0x1f9   :  { %v1970_v0 = vadd.f32 %v1645_v40, %v3407_v17  ;;  %1508 = vmatmul.bf16.gmra.mxu1 %v2736_v34  ;;  %1686 = vmatmul.bf16.gmra.mxu3 %v2736_v34 }
 0x1fb   :  { %v2034_v25 = vpack.c.bf16 %v2002_v45, %v1970_v0  ;;  %v1558_v17 = vpop.f32.mrf.mxu2  ;;  %v1382_v7 = vpop.f32.mrf.mxu0  ;;  %v2739_v45 = vld [vmem:[%s4179_s1 + $0xe0] sm:$0xf] }
 0x1fc   :  { %v1471_v6 = vpop.f32.mrf.mxu1 }
 0x1fd   :  { %2066 = vst [vmem:[#allocation4 + $0x48] sm:$0xff] %v2034_v25  ;;  %v1472_v3 = vadd.f32 %v1471_v6, %v1382_v7  ;;  %v2747_v6 = vld [vmem:[%s4179_s1 + $0xf0] sm:$0xf] }
 0x1fe   :  { %v2103_v58 = vld [vmem:[%s4181_s3 + $0x70] sm:$0xff]  ;;  %v2106_v50 = vld [vmem:[%s4181_s3 + $0x88] sm:$0xff] }
 0x1ff   :  { %v2231_v59 = vadd.f32 %v2167_v2, %v2103_v58  ;;  %v2234_v26 = vadd.f32 %v2170_v35, %v2106_v50  ;;  %v2171_v2 = vmul.f32 0.33333334, %v1970_v0  ;;  %v2174_v35 = vmul.f32 0.33333334, %v2003_v49 }
 0x200   :  { %v2004_v39 = vadd.f32 %v1472_v3, %v3441_v22  ;;  %v2741_v22 = vld [vmem:[%s4179_s1 + $0xe8] sm:$0xf0]  ;;  %v2848_v3 = vld [vmem:[%s4179_s1 + $0xf4] sm:$0xf0] }
 0x201   :  { %2295 = vst [vmem:[%s4183_s5 + $0x70] sm:$0xff] %v2231_v59  ;;  %v2744_v53 = vor.u32 %v2845_v20, %v2741_v22 }
 0x202   :  { %2298 = vst [vmem:[%s4183_s5 + $0x88] sm:$0xff] %v2234_v26  ;;  %v1647_v26 = vpop.f32.mrf.mxu3  ;;  %v2176_v29 = vmul.f32 0.33333334, %v2004_v39 }
 0x203   :  { %v1648_v63 = vadd.f32 %v1647_v26, %v1558_v17  ;;  %v1560_v48 = vpop.f32.mrf.mxu2  ;;  %v1385_v43 = vpop.f32.mrf.mxu0 }
 0x204   :  { %v1474_v8 = vpop.f32.mrf.mxu1 }
 0x205   :  { %v1971_v42 = vadd.f32 %v1648_v63, %v3423_v57  ;;  %v1475_v13 = vadd.f32 %v1474_v8, %v1385_v43 }
 0x207   :  { %v2035_v30 = vpack.c.bf16 %v2003_v49, %v1971_v42  ;;  %v2173_v57 = vmul.f32 0.33333334, %v1971_v42  ;;  %v2005_v16 = vadd.f32 %v1475_v13, %v3445_v32 }
 0x209   :  { %v2105_v18 = vld [vmem:[%s4181_s3 + $0x80] sm:$0xff]  ;;  %v2108_v44 = vld [vmem:[%s4181_s3 + $0x98] sm:$0xff]  ;;  %2067 = vst [vmem:[#allocation4 + $0x50] sm:$0xff] %v2035_v30  ;;  %1513 = vmatmul.bf16.gmra.mxu1 %v2744_v53  ;;  %1691 = vmatmul.bf16.gmra.mxu3 %v2744_v53  ;;  %v2178_v49 = vmul.f32 0.33333334, %v2005_v16 }
 0x20a   :  { %v2233_v41 = vadd.f32 %v2169_v51, %v2105_v18  ;;  %v2236_v62 = vadd.f32 %v2172_v1, %v2108_v44  ;;  %v2846_v44 = vld [vmem:[%s4179_s1 + $0xe4] sm:$0xf0] }
 0x20b   :  { %v2740_v55 = vor.u32 %v2846_v44, %v2739_v45  ;;  %v2748_v44 = vor.u32 %v2848_v3, %v2747_v6 }
 0x20c   :  { %2297 = vst [vmem:[%s4183_s5 + $0x80] sm:$0xff] %v2233_v41  ;;  %v1649_v41 = vpop.f32.mrf.mxu3 }
 0x20d   :  { %2300 = vst [vmem:[%s4183_s5 + $0x98] sm:$0xff] %v2236_v62  ;;  %v1650_v62 = vadd.f32 %v1649_v41, %v1560_v48  ;;  %1424 = vmatmul.bf16.gmra.mxu0 %v2740_v55  ;;  %1602 = vmatmul.bf16.gmra.mxu2 %v2740_v55 }
 0x20f   :  { %v1972_v34 = vadd.f32 %v1650_v62, %v3427_v4  ;;  %v1563_v4 = vpop.f32.mrf.mxu2 }
 0x211   :  { %v2036_v10 = vpack.c.bf16 %v2004_v39, %v1972_v34  ;;  %v2175_v0 = vmul.f32 0.33333334, %v1972_v34 }
 0x213   :  { %2068 = vst [vmem:[#allocation4 + $0x58] sm:$0xff] %v2036_v10 }
 0x214   :  { %v2107_v58 = vld [vmem:[%s4181_s3 + $0x90] sm:$0xff]  ;;  %v2110_v50 = vld [vmem:[%s4181_s3 + $0xa8] sm:$0xff] }
 0x215   :  { %v2235_v59 = vadd.f32 %v2171_v2, %v2107_v58  ;;  %v2238_v28 = vadd.f32 %v2174_v35, %v2110_v50  ;;  %v1652_v50 = vpop.f32.mrf.mxu3  ;;  %v1387_v35 = vpop.f32.mrf.mxu0 }
 0x216   :  { %v1653_v32 = vadd.f32 %v1652_v50, %v1563_v4 }
 0x217   :  { %2299 = vst [vmem:[%s4183_s5 + $0x90] sm:$0xff] %v2235_v59  ;;  %v1476_v59 = vpop.f32.mrf.mxu1  ;;  %v1565_v45 = vpop.f32.mrf.mxu2 }
 0x218   :  { %2302 = vst [vmem:[%s4183_s5 + $0xa8] sm:$0xff] %v2238_v28  ;;  %v1477_v17 = vadd.f32 %v1476_v59, %v1387_v35  ;;  %v1973_v28 = vadd.f32 %v1653_v32, %v3443_v24 }
 0x21a   :  { %v2006_v7 = vadd.f32 %v1477_v17, %v3461_v21  ;;  %v2037_v42 = vpack.c.bf16 %v2005_v16, %v1973_v28  ;;  %v2177_v24 = vmul.f32 0.33333334, %v1973_v28  ;;  %v2749_v21 = vld [vmem:[%s4179_s1 + $0xf8] sm:$0xf0] }
 0x21c   :  { %v2180_v39 = vmul.f32 0.33333334, %v2006_v7  ;;  %2069 = vst [vmem:[#allocation4 + $0x60] sm:$0xff] %v2037_v42 }
 0x21d   :  { %v1390_v20 = vpop.f32.mrf.mxu0  ;;  %1429 = vmatmul.bf16.gmra.mxu0 %v2748_v44  ;;  %1607 = vmatmul.bf16.gmra.mxu2 %v2748_v44 }
 0x21f   :  { %v2109_v60 = vld [vmem:[%s4181_s3 + $0xa0] sm:$0xff]  ;;  %v2112_v18 = vld [vmem:[%s4181_s3 + $0xb8] sm:$0xff] }
 0x220   :  { %v2237_v51 = vadd.f32 %v2173_v57, %v2109_v60  ;;  %v2240_v1 = vadd.f32 %v2176_v29, %v2112_v18  ;;  %v2847_v60 = vld [vmem:[%s4179_s1 + $0xf4] sm:$0xf]  ;;  %v1654_v57 = vpop.f32.mrf.mxu3 }
 0x221   :  { %v2752_v22 = vor.u32 %v2847_v60, %v2749_v21  ;;  %v1655_v29 = vadd.f32 %v1654_v57, %v1565_v45 }
 0x222   :  { %2301 = vst [vmem:[%s4183_s5 + $0xa0] sm:$0xff] %v2237_v51  ;;  %v1479_v51 = vpop.f32.mrf.mxu1 }
 0x223   :  { %2304 = vst [vmem:[%s4183_s5 + $0xb8] sm:$0xff] %v2240_v1  ;;  %v1480_v48 = vadd.f32 %v1479_v51, %v1390_v20  ;;  %v1974_v55 = vadd.f32 %v1655_v29, %v3447_v37  ;;  %1518 = vmatmul.bf16.gmra.mxu1 %v2752_v22  ;;  %1696 = vmatmul.bf16.gmra.mxu3 %v2752_v22  ;;  %v1568_v37 = vpop.f32.mrf.mxu2 }
 0x225   :  { %v2007_v41 = vadd.f32 %v1480_v48, %v3465_v46  ;;  %v2038_v43 = vpack.c.bf16 %v2006_v7, %v1974_v55  ;;  %v2179_v53 = vmul.f32 0.33333334, %v1974_v55  ;;  %v1392_v16 = vpop.f32.mrf.mxu0 }
 0x227   :  { %v2182_v8 = vmul.f32 0.33333334, %v2007_v41  ;;  %2070 = vst [vmem:[#allocation4 + $0x68] sm:$0xff] %v2038_v43 }
 0x22a   :  { %v2111_v40 = vld [vmem:[%s4181_s3 + $0xb0] sm:$0xff]  ;;  %v2114_v58 = vld [vmem:[%s4181_s3 + $0xc8] sm:$0xff]  ;;  %v1481_v10 = vpop.f32.mrf.mxu1 }
 0x22b   :  { %v2239_v25 = vadd.f32 %v2175_v0, %v2111_v40  ;;  %v2242_v2 = vadd.f32 %v2178_v49, %v2114_v58  ;;  %v1657_v40 = vpop.f32.mrf.mxu3  ;;  %v1482_v0 = vadd.f32 %v1481_v10, %v1392_v16  ;;  %v1570_v59 = vpop.f32.mrf.mxu2 }
 0x22c   :  { %v1658_v46 = vadd.f32 %v1657_v40, %v1568_v37 }
 0x22d   :  { %2303 = vst [vmem:[%s4183_s5 + $0xb0] sm:$0xff] %v2239_v25  ;;  %v2008_v25 = vadd.f32 %v1482_v0, %v3481_v11 }
 0x22e   :  { %2306 = vst [vmem:[%s4183_s5 + $0xc8] sm:$0xff] %v2242_v2  ;;  %v1975_v58 = vadd.f32 %v1658_v46, %v3463_v33 }
 0x22f   :  { %v2184_v35 = vmul.f32 0.33333334, %v2008_v25 }
 0x230   :  { %v2039_v4 = vpack.c.bf16 %v2007_v41, %v1975_v58  ;;  %v2181_v2 = vmul.f32 0.33333334, %v1975_v58 }
 0x232   :  { %2071 = vst [vmem:[#allocation4 + $0x70] sm:$0xff] %v2039_v4  ;;  %v1484_v7 = vpop.f32.mrf.mxu1 }
 0x233   :  { %v1659_v28 = vpop.f32.mrf.mxu3 }
 0x234   :  { %v1660_v33 = vadd.f32 %v1659_v28, %v1570_v59 }
 0x235   :  { %v2113_v26 = vld [vmem:[%s4181_s3 + $0xc0] sm:$0xff]  ;;  %v2116_v63 = vld [vmem:[%s4181_s3 + $0xd8] sm:$0xff] }
 0x236   :  { %v2241_v18 = vadd.f32 %v2177_v24, %v2113_v26  ;;  %v2244_v30 = vadd.f32 %v2180_v39, %v2116_v63  ;;  %v1395_v26 = vpop.f32.mrf.mxu0  ;;  %v1976_v63 = vadd.f32 %v1660_v33, %v3467_v54 }
 0x237   :  { %v1485_v11 = vadd.f32 %v1484_v7, %v1395_v26 }
 0x238   :  { %2305 = vst [vmem:[%s4183_s5 + $0xc0] sm:$0xff] %v2241_v18  ;;  %v2040_v42 = vpack.c.bf16 %v2008_v25, %v1976_v63  ;;  %v2183_v24 = vmul.f32 0.33333334, %v1976_v63  ;;  %v1573_v18 = vpop.f32.mrf.mxu2 }
 0x239   :  { %2308 = vst [vmem:[%s4183_s5 + $0xd8] sm:$0xff] %v2244_v30  ;;  %v2009_v3 = vadd.f32 %v1485_v11, %v3485_v27 }
 0x23a   :  { %2072 = vst [vmem:[#allocation4 + $0x78] sm:$0xff] %v2040_v42  ;;  %v1486_v57 = vpop.f32.mrf.mxu1 }
 0x23b   :  { %v2186_v21 = vmul.f32 0.33333334, %v2009_v3  ;;  %v1662_v44 = vpop.f32.mrf.mxu3 }
 0x23c   :  { %v1663_v54 = vadd.f32 %v1662_v44, %v1573_v18 }
 0x23e   :  { %v1397_v30 = vpop.f32.mrf.mxu0  ;;  %v1977_v20 = vadd.f32 %v1663_v54, %v3483_v14 }
 0x23f   :  { %v1487_v27 = vadd.f32 %v1486_v57, %v1397_v30 }
 0x240   :  { %v2115_v1 = vld [vmem:[%s4181_s3 + $0xd0] sm:$0xff]  ;;  %v2118_v62 = vld [vmem:[%s4181_s3 + $0xe8] sm:$0xff]  ;;  %v2041_v51 = vpack.c.bf16 %v2009_v3, %v1977_v20  ;;  %v2185_v48 = vmul.f32 0.33333334, %v1977_v20  ;;  %v1575_v43 = vpop.f32.mrf.mxu2 }
 0x241   :  { %v2243_v13 = vadd.f32 %v2179_v53, %v2115_v1  ;;  %v2246_v34 = vadd.f32 %v2182_v8, %v2118_v62  ;;  %v2010_v29 = vadd.f32 %v1487_v27, %v3501_v12 }
 0x242   :  { %2073 = vst [vmem:[#allocation4 + $0x80] sm:$0xff] %v2041_v51 }
 0x243   :  { %2307 = vst [vmem:[%s4183_s5 + $0xd0] sm:$0xff] %v2243_v13  ;;  %v2188_v1 = vmul.f32 0.33333334, %v2010_v29  ;;  %v1664_v62 = vpop.f32.mrf.mxu3  ;;  %v1489_v13 = vpop.f32.mrf.mxu1 }
 0x244   :  { %2310 = vst [vmem:[%s4183_s5 + $0xe8] sm:$0xff] %v2246_v34  ;;  %v1665_v14 = vadd.f32 %v1664_v62, %v1575_v43 }
 0x246   :  { %v1400_v8 = vpop.f32.mrf.mxu0  ;;  %v1978_v37 = vadd.f32 %v1665_v14, %v3487_v31 }
 0x247   :  { %v1490_v12 = vadd.f32 %v1489_v13, %v1400_v8 }
 0x248   :  { %v2042_v16 = vpack.c.bf16 %v2010_v29, %v1978_v37  ;;  %v2187_v46 = vmul.f32 0.33333334, %v1978_v37 }
 0x249   :  { %v2011_v40 = vadd.f32 %v1490_v12, %v3505_v56 }
 0x24a   :  { %2074 = vst [vmem:[#allocation4 + $0x88] sm:$0xff] %v2042_v16 }
 0x24b   :  { %v2117_v49 = vld [vmem:[%s4181_s3 + $0xe0] sm:$0xff]  ;;  %v2120_v50 = vld [vmem:[%s4181_s3 + $0xf8] sm:$0xff]  ;;  %v2190_v0 = vmul.f32 0.33333334, %v2011_v40  ;;  %v1667_v4 = vpop.f32.mrf.mxu3 }
 0x24c   :  { %v2245_v32 = vadd.f32 %v2181_v2, %v2117_v49  ;;  %v2248_v17 = vadd.f32 %v2184_v35, %v2120_v50  ;;  %v1578_v49 = vpop.f32.mrf.mxu2  ;;  %v1491_v50 = vpop.f32.mrf.mxu1 }
 0x24d   :  { %v1668_v31 = vadd.f32 %v1667_v4, %v1578_v49 }
 0x24e   :  { %2309 = vst [vmem:[%s4183_s5 + $0xe0] sm:$0xff] %v2245_v32  ;;  %v1402_v2 = vpop.f32.mrf.mxu0 }
 0x24f   :  { %2312 = vst [vmem:[%s4183_s5 + $0xf8] sm:$0xff] %v2248_v17  ;;  %v1492_v56 = vadd.f32 %v1491_v50, %v1402_v2  ;;  %v1979_v35 = vadd.f32 %v1668_v31, %v3503_v38 }
 0x251   :  { %v2012_v59 = vadd.f32 %v1492_v56, %v3521_v23  ;;  %v2043_v17 = vpack.c.bf16 %v2011_v40, %v1979_v35  ;;  %v2189_v28 = vmul.f32 0.33333334, %v1979_v35  ;;  %v4201_v35 = vld [vmem:[#allocation8_spill] sm:$0xff] }
 0x253   :  { %v2192_v33 = vmul.f32 0.33333334, %v2012_v59  ;;  %2075 = vst [vmem:[#allocation4 + $0x90] sm:$0xff] %v2043_v17 }
 0x254   :  { %v1580_v11 = vpop.f32.mrf.mxu2  ;;  %v1494_v42 = vpop.f32.mrf.mxu1 }
 0x256   :  { %v2119_v6 = vld [vmem:[%s4181_s3 + $0xf0] sm:$0xff]  ;;  %v2122_v60 = vld [vmem:[%s4181_s3 + $0x108] sm:$0xff]  ;;  %v1405_v3 = vpop.f32.mrf.mxu0 }
 0x257   :  { %v2247_v39 = vadd.f32 %v2183_v24, %v2119_v6  ;;  %v2250_v45 = vadd.f32 %v2186_v21, %v2122_v60  ;;  %v1669_v6 = vpop.f32.mrf.mxu3  ;;  %v1495_v23 = vadd.f32 %v1494_v42, %v1405_v3  ;;  %v4202_v42 = vld [vmem:[#allocation7_spill] sm:$0xff] }
 0x258   :  { %v1670_v38 = vadd.f32 %v1669_v6, %v1580_v11 }
 0x259   :  { %2311 = vst [vmem:[%s4183_s5 + $0xf0] sm:$0xff] %v2247_v39  ;;  %v2013_v21 = vadd.f32 %v1495_v23, %v3525_v47 }
 0x25a   :  { %2314 = vst [vmem:[%s4183_s5 + $0x108] sm:$0xff] %v2250_v45  ;;  %v1980_v24 = vadd.f32 %v1670_v38, %v3507_v61 }
 0x25b   :  { %v2194_v44 = vmul.f32 0.33333334, %v2013_v21 }
 0x25c   :  { %v2044_v39 = vpack.c.bf16 %v2012_v59, %v1980_v24  ;;  %v2191_v18 = vmul.f32 0.33333334, %v1980_v24  ;;  %v1583_v54 = vpop.f32.mrf.mxu2 }
 0x25e   :  { %2076 = vst [vmem:[#allocation4 + $0x98] sm:$0xff] %v2044_v39  ;;  %v1407_v20 = vpop.f32.mrf.mxu0 }
 0x25f   :  { %v1672_v27 = vpop.f32.mrf.mxu3 }
 0x260   :  { %v1673_v61 = vadd.f32 %v1672_v27, %v1583_v54 }
 0x261   :  { %v2121_v22 = vld [vmem:[%s4181_s3 + $0x100] sm:$0xff]  ;;  %v2124_v55 = vld [vmem:[%s4181_s3 + $0x118] sm:$0xff] }
 0x262   :  { %v2249_v41 = vadd.f32 %v2185_v48, %v2121_v22  ;;  %v2252_v53 = vadd.f32 %v2188_v1, %v2124_v55  ;;  %v1496_v22 = vpop.f32.mrf.mxu1  ;;  %v1981_v29 = vadd.f32 %v1673_v61, %v3523_v36 }
 0x263   :  { %v1497_v47 = vadd.f32 %v1496_v22, %v1407_v20 }
 0x264   :  { %2313 = vst [vmem:[%s4183_s5 + $0x100] sm:$0xff] %v2249_v41  ;;  %v2045_v55 = vpack.c.bf16 %v2013_v21, %v1981_v29  ;;  %v2193_v1 = vmul.f32 0.33333334, %v1981_v29  ;;  %v1585_v62 = vpop.f32.mrf.mxu2  ;;  %v4204_v29 = vld [vmem:[#allocation9_spill] sm:$0xff] }
 0x265   :  { %2316 = vst [vmem:[%s4183_s5 + $0x118] sm:$0xff] %v2252_v53  ;;  %v2014_v48 = vadd.f32 %v1497_v47, %v3541_v5 }
 0x266   :  { %2077 = vst [vmem:[#allocation4 + $0xa0] sm:$0xff] %v2045_v55  ;;  %v1410_v13 = vpop.f32.mrf.mxu0  ;;  %v4205_v55 = vld [vmem:[#allocation12_spill] sm:$0xff] }
 0x267   :  { %v2196_v43 = vmul.f32 0.33333334, %v2014_v48  ;;  %v1674_v14 = vpop.f32.mrf.mxu3 }
 0x268   :  { %v1675_v36 = vadd.f32 %v1674_v14, %v1585_v62 }
 0x26a   :  { %v1499_v12 = vpop.f32.mrf.mxu1  ;;  %v1982_v37 = vadd.f32 %v1675_v36, %v3527_v52 }
 0x26b   :  { %v1500_v5 = vadd.f32 %v1499_v12, %v1410_v13 }
 0x26c   :  { %v2123_v34 = vld [vmem:[%s4181_s3 + $0x110] sm:$0xff]  ;;  %v2126_v10 = vld [vmem:[%s4181_s3 + $0x128] sm:$0xff]  ;;  %v2046_v16 = vpack.c.bf16 %v2014_v48, %v1982_v37  ;;  %v1588_v49 = vpop.f32.mrf.mxu2 }
 0x26d   :  { %v2251_v58 = vadd.f32 %v2187_v46, %v2123_v34  ;;  %v2254_v25 = vadd.f32 %v2190_v0, %v2126_v10  ;;  %v2015_v40 = vadd.f32 %v1500_v5, %v3545_v19  ;;  %v2195_v46 = vmul.f32 0.33333334, %v1982_v37 }
 0x26e   :  { %2078 = vst [vmem:[#allocation4 + $0xa8] sm:$0xff] %v2046_v16  ;;  %v1412_v2 = vpop.f32.mrf.mxu0 }
 0x26f   :  { %2315 = vst [vmem:[%s4183_s5 + $0x110] sm:$0xff] %v2251_v58  ;;  %v2198_v0 = vmul.f32 0.33333334, %v2015_v40  ;;  %v1677_v4 = vpop.f32.mrf.mxu3 }
 0x270   :  { %2318 = vst [vmem:[%s4183_s5 + $0x128] sm:$0xff] %v2254_v25  ;;  %v1678_v52 = vadd.f32 %v1677_v4, %v1588_v49 }
 0x272   :  { %v1501_v31 = vpop.f32.mrf.mxu1  ;;  %v1983_v50 = vadd.f32 %v1678_v52, %v3543_v9 }
 0x273   :  { %v1502_v19 = vadd.f32 %v1501_v31, %v1412_v2 }
 0x274   :  { %v2047_v59 = vpack.c.bf16 %v2015_v40, %v1983_v50  ;;  %v2197_v17 = vmul.f32 0.33333334, %v1983_v50  ;;  %v4206_v40 = vld [vmem:[#allocation11_spill] sm:$0xff] }
 0x276   :  { %2079 = vst [vmem:[#allocation4 + $0xb0] sm:$0xff] %v2047_v59  ;;  %v1415_v6 = vpop.f32.mrf.mxu0  ;;  %v4208_v59 = vld [vmem:[#allocation13_spill] sm:$0xff] }
 0x277   :  { %v2125_v32 = vld [vmem:[%s4181_s3 + $0x120] sm:$0xff]  ;;  %v2128_v26 = vld [vmem:[%s4181_s3 + $0x138] sm:$0xff] }
 0x278   :  { %v2253_v7 = vadd.f32 %v2189_v28, %v2125_v32  ;;  %v2256_v63 = vadd.f32 %v2192_v33, %v2128_v26  ;;  %v2016_v32 = vadd.f32 %v1502_v19, %v4201_v35 }
 0x27a   :  { %2317 = vst [vmem:[%s4183_s5 + $0x120] sm:$0xff] %v2253_v7  ;;  %v2200_v26 = vmul.f32 0.33333334, %v2016_v32  ;;  %v1590_v7 = vpop.f32.mrf.mxu2  ;;  %v1504_v3 = vpop.f32.mrf.mxu1 }
 0x27b   :  { %2320 = vst [vmem:[%s4183_s5 + $0x138] sm:$0xff] %v2256_v63  ;;  %v1679_v63 = vpop.f32.mrf.mxu3  ;;  %v1505_v38 = vadd.f32 %v1504_v3, %v1415_v6 }
 0x27c   :  { %v1680_v9 = vadd.f32 %v1679_v63, %v1590_v7 }
 0x27e   :  { %v1984_v23 = vadd.f32 %v1680_v9, %v4202_v42  ;;  %v1417_v20 = vpop.f32.mrf.mxu0 }
 0x280   :  { %v2048_v39 = vpack.c.bf16 %v2016_v32, %v1984_v23 }
 0x282   :  { %v2127_v60 = vld [vmem:[%s4181_s3 + $0x130] sm:$0xff]  ;;  %v2130_v45 = vld [vmem:[%s4181_s3 + $0x148] sm:$0xff]  ;;  %2080 = vst [vmem:[#allocation4 + $0xb8] sm:$0xff] %v2048_v39  ;;  %v1593_v54 = vpop.f32.mrf.mxu2  ;;  %v1506_v22 = vpop.f32.mrf.mxu1  ;;  %v4210_v39 = vld [vmem:[#allocation15_spill] sm:$0xff] }
 0x283   :  { %v2255_v30 = vadd.f32 %v2191_v18, %v2127_v60  ;;  %v2258_v57 = vadd.f32 %v2194_v44, %v2130_v45  ;;  %v4203_v60 = vld [vmem:[#allocation10_spill] sm:$0xff]  ;;  %v2199_v18 = vmul.f32 0.33333334, %v1984_v23  ;;  %v1682_v27 = vpop.f32.mrf.mxu3  ;;  %v1507_v47 = vadd.f32 %v1506_v22, %v1417_v20 }
 0x284   :  { %v2017_v21 = vadd.f32 %v1505_v38, %v4203_v60  ;;  %v1683_v61 = vadd.f32 %v1682_v27, %v1593_v54 }
 0x285   :  { %2319 = vst [vmem:[%s4183_s5 + $0x130] sm:$0xff] %v2255_v30 }
 0x286   :  { %2322 = vst [vmem:[%s4183_s5 + $0x148] sm:$0xff] %v2258_v57  ;;  %v2202_v44 = vmul.f32 0.33333334, %v2017_v21  ;;  %v1420_v12 = vpop.f32.mrf.mxu0 }
 0x28a   :  { %v1595_v14 = vpop.f32.mrf.mxu2  ;;  %v1509_v37 = vpop.f32.mrf.mxu1 }
 0x28b   :  { %v1684_v36 = vpop.f32.mrf.mxu3 }
 0x28c   :  { %v1685_v5 = vadd.f32 %v1684_v36, %v1595_v14 }
 0x28d   :  { %v2129_v51 = vld [vmem:[%s4181_s3 + $0x140] sm:$0xff]  ;;  %v2132_v41 = vld [vmem:[%s4181_s3 + $0x158] sm:$0xff] }
 0x28e   :  { %v2257_v53 = vadd.f32 %v2193_v1, %v2129_v51  ;;  %v2260_v8 = vadd.f32 %v2196_v43, %v2132_v41  ;;  %v1985_v51 = vadd.f32 %v1683_v61, %v4204_v29  ;;  %v2018_v1 = vadd.f32 %v1507_v47, %v4205_v55  ;;  %v1422_v50 = vpop.f32.mrf.mxu0 }
 0x28f   :  { %v1986_v16 = vadd.f32 %v1685_v5, %v4206_v40 }
 0x290   :  { %2321 = vst [vmem:[%s4183_s5 + $0x140] sm:$0xff] %v2257_v53  ;;  %v2049_v41 = vpack.c.bf16 %v2017_v21, %v1985_v51  ;;  %v2201_v43 = vmul.f32 0.33333334, %v1985_v51  ;;  %v2204_v62 = vmul.f32 0.33333334, %v2018_v1 }
 0x291   :  { %2324 = vst [vmem:[%s4183_s5 + $0x158] sm:$0xff] %v2260_v8  ;;  %v2203_v49 = vmul.f32 0.33333334, %v1986_v16 }
 0x292   :  { %2081 = vst [vmem:[#allocation4 + $0xc0] sm:$0xff] %v2049_v41  ;;  %v1598_v52 = vpop.f32.mrf.mxu2  ;;  %v1511_v35 = vpop.f32.mrf.mxu1  ;;  %v4212_v41 = vld [vmem:[#allocation17_spill] sm:$0xff] }
 0x293   :  { %v1687_v19 = vpop.f32.mrf.mxu3  ;;  %v1512_v32 = vadd.f32 %v1511_v35, %v1422_v50 }
 0x296   :  { %v1425_v23 = vpop.f32.mrf.mxu0 }
 0x298   :  { %v2131_v34 = vld [vmem:[%s4181_s3 + $0x150] sm:$0xff]  ;;  %v2134_v10 = vld [vmem:[%s4181_s3 + $0x168] sm:$0xff] }
 0x299   :  { %v2259_v58 = vadd.f32 %v2195_v46, %v2131_v34  ;;  %v2262_v25 = vadd.f32 %v2198_v0, %v2134_v10  ;;  %v1510_v34 = vadd.f32 %v1509_v37, %v1420_v12  ;;  %v4207_v10 = vld [vmem:[#allocation14_spill] sm:$0xff] }
 0x29a   :  { %v1600_v3 = vpop.f32.mrf.mxu2  ;;  %v1514_v60 = vpop.f32.mrf.mxu1 }
 0x29b   :  { %2323 = vst [vmem:[%s4183_s5 + $0x150] sm:$0xff] %v2259_v58  ;;  %v2019_v0 = vadd.f32 %v1510_v34, %v4207_v10  ;;  %v2050_v58 = vpack.c.bf16 %v2018_v1, %v1986_v16  ;;  %v1689_v42 = vpop.f32.mrf.mxu3  ;;  %v1515_v21 = vadd.f32 %v1514_v60, %v1425_v23  ;;  %v4213_v10 = vld [vmem:[#allocation19_spill] sm:$0xff] }
 0x29c   :  { %2326 = vst [vmem:[%s4183_s5 + $0x168] sm:$0xff] %v2262_v25 }
 0x29d   :  { %v2206_v4 = vmul.f32 0.33333334, %v2019_v0  ;;  %2082 = vst [vmem:[#allocation4 + $0xc8] sm:$0xff] %v2050_v58 }
 0x29e   :  { %v1427_v51 = vpop.f32.mrf.mxu0 }
 0x2a2   :  { %v1603_v22 = vpop.f32.mrf.mxu2  ;;  %v1516_v55 = vpop.f32.mrf.mxu1 }
 0x2a3   :  { %v2133_v56 = vld [vmem:[%s4181_s3 + $0x160] sm:$0xff]  ;;  %v2136_v28 = vld [vmem:[%s4181_s3 + $0x178] sm:$0xff]  ;;  %v1692_v29 = vpop.f32.mrf.mxu3  ;;  %v1517_v1 = vadd.f32 %v1516_v55, %v1427_v51 }
 0x2a4   :  { %v2261_v33 = vadd.f32 %v2197_v17, %v2133_v56  ;;  %v2264_v11 = vadd.f32 %v2200_v26, %v2136_v28  ;;  %v1688_v56 = vadd.f32 %v1687_v19, %v1598_v52  ;;  %v4209_v26 = vld [vmem:[#allocation16_spill] sm:$0xff] }
 0x2a6   :  { %2325 = vst [vmem:[%s4183_s5 + $0x160] sm:$0xff] %v2261_v33  ;;  %v1987_v17 = vadd.f32 %v1688_v56, %v4208_v59  ;;  %v2020_v33 = vadd.f32 %v1512_v32, %v4209_v26  ;;  %v1430_v40 = vpop.f32.mrf.mxu0  ;;  %v4215_v26 = vld [vmem:[#allocation20_spill] sm:$0xff] }
 0x2a7   :  { %2328 = vst [vmem:[%s4183_s5 + $0x178] sm:$0xff] %v2264_v11 }
 0x2a8   :  { %v2051_v7 = vpack.c.bf16 %v2019_v0, %v1987_v17  ;;  %v2205_v11 = vmul.f32 0.33333334, %v1987_v17  ;;  %v2208_v6 = vmul.f32 0.33333334, %v2020_v33 }
 0x2aa   :  { %2083 = vst [vmem:[#allocation4 + $0xd0] sm:$0xff] %v2051_v7  ;;  %v1605_v5 = vpop.f32.mrf.mxu2 }
 0x2ab   :  { %v1694_v34 = vpop.f32.mrf.mxu3 }
 0x2ac   :  { %v1695_v16 = vadd.f32 %v1694_v34, %v1605_v5 }
 0x2ae   :  { %v2135_v24 = vld [vmem:[%s4181_s3 + $0x170] sm:$0xff]  ;;  %v2138_v45 = vld [vmem:[%s4181_s3 + $0x188] sm:$0xff]  ;;  %v1990_v0 = vadd.f32 %v1695_v16, %v4213_v10  ;;  %v1432_v32 = vpop.f32.mrf.mxu0 }
 0x2af   :  { %v2263_v30 = vadd.f32 %v2199_v18, %v2135_v24  ;;  %v2266_v57 = vadd.f32 %v2202_v44, %v2138_v45  ;;  %v1690_v24 = vadd.f32 %v1689_v42, %v1600_v3  ;;  %v4211_v44 = vld [vmem:[#allocation18_spill] sm:$0xff] }
 0x2b1   :  { %2327 = vst [vmem:[%s4183_s5 + $0x170] sm:$0xff] %v2263_v30  ;;  %v1988_v18 = vadd.f32 %v1690_v24, %v4210_v39  ;;  %v2021_v30 = vadd.f32 %v1515_v21, %v4211_v44  ;;  %v4217_v39 = vld [vmem:[#allocation22_spill] sm:$0xff] }
 0x2b2   :  { %2330 = vst [vmem:[%s4183_s5 + $0x188] sm:$0xff] %v2266_v57  ;;  %v1608_v50 = vpop.f32.mrf.mxu2 }
 0x2b3   :  { %v2052_v54 = vpack.c.bf16 %v2020_v33, %v1988_v18  ;;  %v2207_v57 = vmul.f32 0.33333334, %v1988_v18  ;;  %v2210_v20 = vmul.f32 0.33333334, %v2021_v30  ;;  %v1697_v35 = vpop.f32.mrf.mxu3 }
 0x2b4   :  { %v1698_v59 = vadd.f32 %v1697_v35, %v1608_v50 }
 0x2b5   :  { %2084 = vst [vmem:[#allocation4 + $0xd8] sm:$0xff] %v2052_v54 }
 0x2b6   :  { %v1991_v33 = vadd.f32 %v1698_v59, %v4215_v26 }
 0x2b9   :  { %v2137_v48 = vld [vmem:[%s4181_s3 + $0x180] sm:$0xff]  ;;  %v2140_v53 = vld [vmem:[%s4181_s3 + $0x198] sm:$0xff] }
 0x2ba   :  { %v2265_v8 = vadd.f32 %v2201_v43, %v2137_v48  ;;  %v2268_v13 = vadd.f32 %v2204_v62, %v2140_v53  ;;  %v1693_v48 = vadd.f32 %v1692_v29, %v1603_v22  ;;  %v2022_v62 = vadd.f32 %v1517_v1, %v3621_v15  ;;  %v1610_v23 = vpop.f32.mrf.mxu2 }
 0x2bb   :  { %v1699_v60 = vpop.f32.mrf.mxu3 }
 0x2bc   :  { %2329 = vst [vmem:[%s4183_s5 + $0x180] sm:$0xff] %v2265_v8  ;;  %v1989_v43 = vadd.f32 %v1693_v48, %v4212_v41  ;;  %v2212_v36 = vmul.f32 0.33333334, %v2022_v62  ;;  %v1700_v21 = vadd.f32 %v1699_v60, %v1610_v23 }
 0x2bd   :  { %2332 = vst [vmem:[%s4183_s5 + $0x198] sm:$0xff] %v2268_v13 }
 0x2be   :  { %v2053_v8 = vpack.c.bf16 %v2021_v30, %v1989_v43  ;;  %v2209_v14 = vmul.f32 0.33333334, %v1989_v43  ;;  %v1992_v18 = vadd.f32 %v1700_v21, %v4217_v39 }
 0x2c0   :  { %2085 = vst [vmem:[#allocation4 + $0xe0] sm:$0xff] %v2053_v8  ;;  %v2215_v30 = vmul.f32 0.33333334, %v1992_v18 }
 0x2c4   :  { %v2139_v46 = vld [vmem:[%s4181_s3 + $0x190] sm:$0xff]  ;;  %v2142_v25 = vld [vmem:[%s4181_s3 + $0x1a8] sm:$0xff] }
 0x2c5   :  { %v2267_v2 = vadd.f32 %v2203_v49, %v2139_v46  ;;  %v2270_v31 = vadd.f32 %v2206_v4, %v2142_v25  ;;  %v1519_v46 = vpop.f32.mrf.mxu1  ;;  %v4214_v49 = vld [vmem:[#allocation21_spill] sm:$0xff]  ;;  %v2054_v4 = vpack.c.bf16 %v2022_v62, %v1990_v0 }
 0x2c6   :  { %v1520_v15 = vadd.f32 %v1519_v46, %v1430_v40 }
 0x2c7   :  { %2331 = vst [vmem:[%s4183_s5 + $0x190] sm:$0xff] %v2267_v2  ;;  %v2211_v2 = vmul.f32 0.33333334, %v1990_v0 }
 0x2c8   :  { %2334 = vst [vmem:[%s4183_s5 + $0x1a8] sm:$0xff] %v2270_v31  ;;  %v2023_v25 = vadd.f32 %v1520_v15, %v4214_v49 }
 0x2c9   :  { %2086 = vst [vmem:[#allocation4 + $0xe8] sm:$0xff] %v2054_v4 }
 0x2ca   :  { %v2214_v31 = vmul.f32 0.33333334, %v2023_v25 }
 0x2cd   :  { %v1521_v17 = vpop.f32.mrf.mxu1 }
 0x2cf   :  { %v2141_v28 = vld [vmem:[%s4181_s3 + $0x1a0] sm:$0xff]  ;;  %v2144_v63 = vld [vmem:[%s4181_s3 + $0x1b8] sm:$0xff] }
 0x2d0   :  { %v2269_v9 = vadd.f32 %v2205_v11, %v2141_v28  ;;  %v2272_v38 = vadd.f32 %v2208_v6, %v2144_v63  ;;  %v1522_v28 = vadd.f32 %v1521_v17, %v1432_v32  ;;  %v4216_v11 = vld [vmem:[#allocation23_spill] sm:$0xff]  ;;  %v2055_v6 = vpack.c.bf16 %v2023_v25, %v1991_v33 }
 0x2d2   :  { %2333 = vst [vmem:[%s4183_s5 + $0x1a0] sm:$0xff] %v2269_v9  ;;  %v2024_v63 = vadd.f32 %v1522_v28, %v4216_v11  ;;  %v2213_v9 = vmul.f32 0.33333334, %v1991_v33 }
 0x2d3   :  { %2336 = vst [vmem:[%s4183_s5 + $0x1b8] sm:$0xff] %v2272_v38 }
 0x2d4   :  { %v2216_v38 = vmul.f32 0.33333334, %v2024_v63  ;;  %2087 = vst [vmem:[#allocation4 + $0xf0] sm:$0xff] %v2055_v6  ;;  %v2056_v44 = vpack.c.bf16 %v2024_v63, %v1992_v18 }
 0x2d6   :  { %2088 = vst [vmem:[#allocation4 + $0xf8] sm:$0xff] %v2056_v44 }
 0x2d7   :  { %2357 = dma.vmem_to_hbm [thread:$0]  %s2350_s14, 4096, %s2352_s17, [#allocation5], %s2879_s21, %s2879_s21, %s2880_s22  }
 0x2da   :  { %v2143_v45 = vld [vmem:[%s4181_s3 + $0x1b0] sm:$0xff]  ;;  %v2146_v27 = vld [vmem:[%s4181_s3 + $0x1c8] sm:$0xff] }
 0x2db   :  { %v2271_v61 = vadd.f32 %v2207_v57, %v2143_v45  ;;  %v2274_v47 = vadd.f32 %v2210_v20, %v2146_v27 }
 0x2dd   :  { %2335 = vst [vmem:[%s4183_s5 + $0x1b0] sm:$0xff] %v2271_v61 }
 0x2de   :  { %2338 = vst [vmem:[%s4183_s5 + $0x1c8] sm:$0xff] %v2274_v47 }
 0x2e5   :  { %v2145_v53 = vld [vmem:[%s4181_s3 + $0x1c0] sm:$0xff]  ;;  %v2148_v13 = vld [vmem:[%s4181_s3 + $0x1d8] sm:$0xff] }
 0x2e6   :  { %v2273_v12 = vadd.f32 %v2209_v14, %v2145_v53  ;;  %v2276_v37 = vadd.f32 %v2212_v36, %v2148_v13 }
 0x2e8   :  { %2337 = vst [vmem:[%s4183_s5 + $0x1c0] sm:$0xff] %v2273_v12 }
 0x2e9   :  { %2340 = vst [vmem:[%s4183_s5 + $0x1d8] sm:$0xff] %v2276_v37 }
 0x2f0   :  { %v2147_v58 = vld [vmem:[%s4181_s3 + $0x1d0] sm:$0xff]  ;;  %v2150_v52 = vld [vmem:[%s4181_s3 + $0x1e8] sm:$0xff] }
 0x2f1   :  { %v2275_v19 = vadd.f32 %v2211_v2, %v2147_v58  ;;  %v2278_v56 = vadd.f32 %v2214_v31, %v2150_v52 }
 0x2f3   :  { %2339 = vst [vmem:[%s4183_s5 + $0x1d0] sm:$0xff] %v2275_v19 }
 0x2f4   :  { %2342 = vst [vmem:[%s4183_s5 + $0x1e8] sm:$0xff] %v2278_v56 }
 0x2fb   :  { %v2149_v7 = vld [vmem:[%s4181_s3 + $0x1e0] sm:$0xff]  ;;  %v2152_v3 = vld [vmem:[%s4181_s3 + $0x1f8] sm:$0xff] }
 0x2fc   :  { %v2277_v42 = vadd.f32 %v2213_v9, %v2149_v7  ;;  %v2280_v24 = vadd.f32 %v2216_v38, %v2152_v3 }
 0x2fe   :  { %2341 = vst [vmem:[%s4183_s5 + $0x1e0] sm:$0xff] %v2277_v42 }
 0x2ff   :  { %2344 = vst [vmem:[%s4183_s5 + $0x1f8] sm:$0xff] %v2280_v24 }
 0x306   :  { %v2151_v45 = vld [vmem:[%s4181_s3 + $0x1f0] sm:$0xff] }
 0x307   :  { %v2279_v54 = vadd.f32 %v2215_v30, %v2151_v45 }
 0x309   :  { %2343 = vst [vmem:[%s4183_s5 + $0x1f0] sm:$0xff] %v2279_v54 }
 0x30a   :  { %2876 = dma.done.wait [#allocation5], 4096  }
 0x30b   :  { %2877 = vsyncadd [#allocation5], 4294963200 }
 0x30c   :  { %2366 = vsyncpa [#allocation5], 1 }

// kernel: ponegnn_forward.2
= control target key start
LH: loop header
LB: loop body
LE: loop exit
PB: predicated region body
PF: predicated region fallthrough
CT: control target
= control target key end

     0   :  { %s4224_s2 = inlined_call_operand.vmem [shape: bf16[256,256], index: 2, kind: input, shape index: {}]   ;;  %s4225_s0 = inlined_call_operand.vmem [shape: bf16[256,256], index: 0, kind: input, shape index: {}]   ;;  %s4226_s1 = inlined_call_operand.vmem [shape: bf16[256,256], index: 1, kind: input, shape index: {}]   ;;  %s4227_s3 = inlined_call_operand.vmem [shape: f32[256,256], index: 3, kind: input, shape index: {}, may-alias: {3,5}]   ;;  %s4228_s5 = inlined_call_operand.vmem [shape: f32[256,256], index: 5, kind: output, shape index: {1}, may-alias: {3,5}]   ;;  %s4229_s4 = inlined_call_operand.vmem [shape: bf16[256,256], index: 4, kind: output, shape index: {0}]  }
   0x1   :  { %v2540_v0 = vld [vmem:[%s4224_s2 + $0x70] sm:$0xf]  ;;  %v2753_v1 = vld [vmem:[%s4224_s2 + $0x74] sm:$0xf0]  ;;  %v2752_v5 = vld [vmem:[%s4224_s2 + $0x74] sm:$0xf] }
   0x2   :  { %v2604_v2 = vld [vmem:[%s4224_s2 + $0xf0] sm:$0xf]  ;;  %v2873_v3 = vor.u32 %v2753_v1, %v2540_v0  ;;  %v2769_v4 = vld [vmem:[%s4224_s2 + $0xf4] sm:$0xf0]  ;;  %v2542_v6 = vld [vmem:[%s4224_s2 + $0x78] sm:$0xf0] }
   0x3   :  { %v2884_v7 = vor.u32 %v2769_v4, %v2604_v2  ;;  %v2886_v8 = vor.u32 %v2752_v5, %v2542_v6  ;;  %v2768_v9 = vld [vmem:[%s4224_s2 + $0xf4] sm:$0xf]  ;;  %v2606_v10 = vld [vmem:[%s4224_s2 + $0xf8] sm:$0xf0]  ;;  %v2532_v11 = vld [vmem:[%s4224_s2 + $0x60] sm:$0xf] }
   0x4   :  { %605 = vmatpush.bf16.msra.mxu0 %v2873_v3  ;;  %v2898_v12 = vor.u32 %v2768_v9, %v2606_v10  ;;  %v2751_v13 = vld [vmem:[%s4224_s2 + $0x64] sm:$0xf0]  ;;  %v2596_v14 = vld [vmem:[%s4224_s2 + $0xe0] sm:$0xf]  ;;  %v2750_v18 = vld [vmem:[%s4224_s2 + $0x64] sm:$0xf] }
   0x5   :  { %v2767_v15 = vld [vmem:[%s4224_s2 + $0xe4] sm:$0xf0]  ;;  %694 = vmatpush.bf16.msra.mxu1 %v2884_v7  ;;  %783 = vmatpush.bf16.msra.mxu2 %v2886_v8  ;;  %v2911_v16 = vor.u32 %v2751_v13, %v2532_v11  ;;  %v2534_v19 = vld [vmem:[%s4224_s2 + $0x68] sm:$0xf0]  ;;  %v2766_v20 = vld [vmem:[%s4224_s2 + $0xe4] sm:$0xf] }
   0x6   :  { %v2913_v17 = vor.u32 %v2767_v15, %v2596_v14  ;;  %872 = vmatpush.bf16.msra.mxu3 %v2898_v12  ;;  %v2925_v21 = vor.u32 %v2750_v18, %v2534_v19  ;;  %v2598_v22 = vld [vmem:[%s4224_s2 + $0xe8] sm:$0xf0]  ;;  %v2524_v23 = vld [vmem:[%s4224_s2 + $0x50] sm:$0xf]  ;;  %v2749_v24 = vld [vmem:[%s4224_s2 + $0x54] sm:$0xf0] }
   0x7   :  { %v2936_v25 = vor.u32 %v2766_v20, %v2598_v22  ;;  %v2588_v26 = vld [vmem:[%s4224_s2 + $0xd0] sm:$0xf]  ;;  %v2765_v27 = vld [vmem:[%s4224_s2 + $0xd4] sm:$0xf0]  ;;  %v2748_v28 = vld [vmem:[%s4224_s2 + $0x54] sm:$0xf]  ;;  %v2948_v29 = vor.u32 %v2749_v24, %v2524_v23 }
   0x8   :  { %606 = vmatpush.bf16.msra.mxu0 %v2911_v16  ;;  %v2526_v30 = vld [vmem:[%s4224_s2 + $0x58] sm:$0xf0]  ;;  %v2764_v31 = vld [vmem:[%s4224_s2 + $0xd4] sm:$0xf]  ;;  %v2961_v33 = vor.u32 %v2765_v27, %v2588_v26  ;;  %v2516_v35 = vld [vmem:[%s4224_s2 + $0x40] sm:$0xf] }
   0x9   :  { %v2590_v32 = vld [vmem:[%s4224_s2 + $0xd8] sm:$0xf0]  ;;  %695 = vmatpush.bf16.msra.mxu1 %v2913_v17  ;;  %784 = vmatpush.bf16.msra.mxu2 %v2925_v21  ;;  %v2963_v34 = vor.u32 %v2748_v28, %v2526_v30  ;;  %v2747_v36 = vld [vmem:[%s4224_s2 + $0x44] sm:$0xf0]  ;;  %v2580_v37 = vld [vmem:[%s4224_s2 + $0xc0] sm:$0xf] }
   0xa   :  { %873 = vmatpush.bf16.msra.mxu3 %v2936_v25  ;;  %v2975_v38 = vor.u32 %v2764_v31, %v2590_v32  ;;  %v2763_v39 = vld [vmem:[%s4224_s2 + $0xc4] sm:$0xf0]  ;;  %v2746_v40 = vld [vmem:[%s4224_s2 + $0x44] sm:$0xf]  ;;  %v2518_v41 = vld [vmem:[%s4224_s2 + $0x48] sm:$0xf0]  ;;  %v2993_v44 = vor.u32 %v2747_v36, %v2516_v35 }
   0xb   :  { %v2762_v42 = vld [vmem:[%s4224_s2 + $0xc4] sm:$0xf]  ;;  %v2582_v43 = vld [vmem:[%s4224_s2 + $0xc8] sm:$0xf0]  ;;  %v2997_v45 = vor.u32 %v2763_v39, %v2580_v37  ;;  %v2999_v46 = vor.u32 %v2746_v40, %v2518_v41  ;;  %v2508_v47 = vld [vmem:[%s4224_s2 + $0x30] sm:$0xf] }
   0xc   :  { %607 = vmatpush.bf16.msra.mxu0 %v2948_v29  ;;  %v2745_v48 = vld [vmem:[%s4224_s2 + $0x34] sm:$0xf0]  ;;  %v2572_v49 = vld [vmem:[%s4224_s2 + $0xb0] sm:$0xf]  ;;  %v3011_v50 = vor.u32 %v2762_v42, %v2582_v43  ;;  %v2744_v52 = vld [vmem:[%s4224_s2 + $0x34] sm:$0xf] }
   0xd   :  { %696 = vmatpush.bf16.msra.mxu1 %v2961_v33  ;;  %785 = vmatpush.bf16.msra.mxu2 %v2963_v34  ;;  %v2761_v51 = vld [vmem:[%s4224_s2 + $0xb4] sm:$0xf0]  ;;  %v2510_v53 = vld [vmem:[%s4224_s2 + $0x38] sm:$0xf0]  ;;  %v2760_v54 = vld [vmem:[%s4224_s2 + $0xb4] sm:$0xf]  ;;  %v3029_v56 = vor.u32 %v2745_v48, %v2508_v47 }
   0xe   :  { %874 = vmatpush.bf16.msra.mxu3 %v2975_v38  ;;  %v2574_v55 = vld [vmem:[%s4224_s2 + $0xb8] sm:$0xf0]  ;;  %v3033_v57 = vor.u32 %v2761_v51, %v2572_v49  ;;  %v3035_v58 = vor.u32 %v2744_v52, %v2510_v53  ;;  %v2500_v59 = vld [vmem:[%s4224_s2 + $0x20] sm:$0xf]  ;;  %v2743_v60 = vld [vmem:[%s4224_s2 + $0x24] sm:$0xf0] }
   0xf   :  { %v2564_v61 = vld [vmem:[%s4224_s2 + $0xa0] sm:$0xf]  ;;  %v3047_v62 = vor.u32 %v2760_v54, %v2574_v55  ;;  %v2759_v63 = vld [vmem:[%s4224_s2 + $0xa4] sm:$0xf0]  ;;  %v2742_v0 = vld [vmem:[%s4224_s2 + $0x24] sm:$0xf]  ;;  %v3065_v5 = vor.u32 %v2743_v60, %v2500_v59 }
  0x10   :  { %608 = vmatpush.bf16.msra.mxu0 %v2993_v44  ;;  %v2502_v1 = vld [vmem:[%s4224_s2 + $0x28] sm:$0xf0]  ;;  %v2758_v2 = vld [vmem:[%s4224_s2 + $0xa4] sm:$0xf]  ;;  %v3069_v6 = vor.u32 %v2759_v63, %v2564_v61  ;;  %v2492_v10 = vld [vmem:[%s4224_s2 + $0x10] sm:$0xf] }
  0x11   :  { %697 = vmatpush.bf16.msra.mxu1 %v2997_v45  ;;  %786 = vmatpush.bf16.msra.mxu2 %v2999_v46  ;;  %v2566_v4 = vld [vmem:[%s4224_s2 + $0xa8] sm:$0xf0]  ;;  %v3071_v9 = vor.u32 %v2742_v0, %v2502_v1  ;;  %v2741_v11 = vld [vmem:[%s4224_s2 + $0x14] sm:$0xf0]  ;;  %v2556_v13 = vld [vmem:[%s4224_s2 + $0x90] sm:$0xf] }
  0x12   :  { %875 = vmatpush.bf16.msra.mxu3 %v3011_v50  ;;  %v3083_v14 = vor.u32 %v2758_v2, %v2566_v4  ;;  %v2757_v15 = vld [vmem:[%s4224_s2 + $0x94] sm:$0xf0]  ;;  %v2740_v18 = vld [vmem:[%s4224_s2 + $0x14] sm:$0xf]  ;;  %v2494_v19 = vld [vmem:[%s4224_s2 + $0x18] sm:$0xf0]  ;;  %v3101_v23 = vor.u32 %v2741_v11, %v2492_v10 }
  0x13   :  { %v2756_v20 = vld [vmem:[%s4224_s2 + $0x94] sm:$0xf]  ;;  %v2558_v22 = vld [vmem:[%s4224_s2 + $0x98] sm:$0xf0]  ;;  %v3105_v24 = vor.u32 %v2757_v15, %v2556_v13  ;;  %v3107_v26 = vor.u32 %v2740_v18, %v2494_v19  ;;  %v2484_v27 = vld [vmem:[%s4224_s2] sm:$0xf] }
  0x14   :  { %609 = vmatpush.bf16.msra.mxu0 %v3029_v56  ;;  %v2739_v28 = vld [vmem:[%s4224_s2 + $0x4] sm:$0xf0]  ;;  %v2548_v30 = vld [vmem:[%s4224_s2 + $0x80] sm:$0xf]  ;;  %v2561_v31 = vor.u32 %v2756_v20, %v2558_v22  ;;  %v2738_v35 = vld [vmem:[%s4224_s2 + $0x4] sm:$0xf] }
  0x15   :  { %698 = vmatpush.bf16.msra.mxu1 %v3033_v57  ;;  %787 = vmatpush.bf16.msra.mxu2 %v3035_v58  ;;  %v2755_v32 = vld [vmem:[%s4224_s2 + $0x84] sm:$0xf0]  ;;  %v2486_v36 = vld [vmem:[%s4224_s2 + $0x8] sm:$0xf0]  ;;  %v2754_v37 = vld [vmem:[%s4224_s2 + $0x84] sm:$0xf]  ;;  %v3135_v40 = vor.u32 %v2739_v28, %v2484_v27 }
  0x16   :  { %876 = vmatpush.bf16.msra.mxu3 %v3047_v62  ;;  %v2550_v39 = vld [vmem:[%s4224_s2 + $0x88] sm:$0xf0]  ;;  %v2356_v41 = vld [vmem:[%s4225_s0] sm:$0xf]  ;;  %v2771_v42 = vld [vmem:[%s4225_s0 + $0x4] sm:$0xf0]  ;;  %v2549_v43 = vor.u32 %v2755_v32, %v2548_v30  ;;  %v2489_v47 = vor.u32 %v2738_v35, %v2486_v36 }
  0x17   :  { %v2770_v48 = vld [vmem:[%s4225_s0 + $0x4] sm:$0xf]  ;;  %v2358_v49 = vld [vmem:[%s4225_s0 + $0x8] sm:$0xf0]  ;;  %v2553_v51 = vor.u32 %v2754_v37, %v2550_v39  ;;  %v2357_v52 = vor.u32 %v2771_v42, %v2356_v41  ;;  %v2781_v63 = vld [vmem:[%s4225_s0 + $0x54] sm:$0xf0] }
  0x18   :  { %610 = vmatpush.bf16.msra.mxu0 %v3065_v5  ;;  %v2361_v53 = vor.u32 %v2770_v48, %v2358_v49  ;;  %v2390_v59 = vld [vmem:[%s4225_s0 + $0x48] sm:$0xf0]  ;;  %v2780_v0 = vld [vmem:[%s4225_s0 + $0x54] sm:$0xf]  ;;  %v2398_v1 = vld [vmem:[%s4225_s0 + $0x58] sm:$0xf0] }
  0x19   :  { %699 = vmatpush.bf16.msra.mxu1 %v3069_v6  ;;  %788 = vmatpush.bf16.msra.mxu2 %v3071_v9  ;;  %v2401_v4 = vor.u32 %v2780_v0, %v2398_v1  ;;  %v2406_v10 = vld [vmem:[%s4225_s0 + $0x68] sm:$0xf0]  ;;  %v2785_v15 = vld [vmem:[%s4225_s0 + $0x74] sm:$0xf0]  ;;  %v2784_v18 = vld [vmem:[%s4225_s0 + $0x74] sm:$0xf] }
  0x1a   :  { %877 = vmatpush.bf16.msra.mxu3 %v3083_v14  ;;  %v2414_v19 = vld [vmem:[%s4225_s0 + $0x78] sm:$0xf0]  ;;  %v2422_v27 = vld [vmem:[%s4225_s0 + $0x88] sm:$0xf0]  ;;  %v2788_v48 = vld [vmem:[%s4225_s0 + $0x94] sm:$0xf] }
  0x1b   :  { %v2417_v22 = vor.u32 %v2784_v18, %v2414_v19  ;;  %v2430_v49 = vld [vmem:[%s4225_s0 + $0x98] sm:$0xf0] }
  0x1c   :  { %611 = vmatpush.bf16.msra.mxu0 %v3101_v23 }
  0x1d   :  { %700 = vmatpush.bf16.msra.mxu1 %v3105_v24  ;;  %789 = vmatpush.bf16.msra.mxu2 %v3107_v26 }
  0x1e   :  { %878 = vmatpush.bf16.msra.mxu3 %v2561_v31 }
  0x20   :  { %612 = vmatpush.bf16.msra.mxu0 %v3135_v40 }
  0x21   :  { %701 = vmatpush.bf16.msra.mxu1 %v2549_v43  ;;  %790 = vmatpush.bf16.msra.mxu2 %v2489_v47 }
  0x22   :  { %879 = vmatpush.bf16.msra.mxu3 %v2553_v51 }
  0x23   :  { %613 = vmatmul.bf16.vlgmr.msra.gmra.mxu0 %v2357_v52 }
  0x24   :  { %702 = vmatmul.bf16.vlgmr.msra.gmra.mxu1 %v2361_v53  ;;  %791 = vmatmul.bf16.vlgmr.msra.gmra.mxu2 %v2357_v52 }
  0x25   :  { %1523 = vmatpush.bf16.msrb.mxu2 %v2886_v8  ;;  %880 = vmatmul.bf16.vlgmr.msra.gmra.mxu3 %v2361_v53  ;;  %v2364_v8 = vld [vmem:[%s4225_s0 + $0x10] sm:$0xf] }
  0x26   :  { %1612 = vmatpush.bf16.msrb.mxu3 %v2898_v12  ;;  %1345 = vmatpush.bf16.msrb.mxu0 %v2873_v3  ;;  %v2773_v3 = vld [vmem:[%s4225_s0 + $0x14] sm:$0xf0]  ;;  %v2366_v12 = vld [vmem:[%s4225_s0 + $0x18] sm:$0xf0] }
  0x27   :  { %1434 = vmatpush.bf16.msrb.mxu1 %v2884_v7  ;;  %v2772_v7 = vld [vmem:[%s4225_s0 + $0x14] sm:$0xf] }
  0x29   :  { %1524 = vmatpush.bf16.msrb.mxu2 %v2925_v21  ;;  %v2372_v21 = vld [vmem:[%s4225_s0 + $0x20] sm:$0xf] }
  0x2a   :  { %1613 = vmatpush.bf16.msrb.mxu3 %v2936_v25  ;;  %1346 = vmatpush.bf16.msrb.mxu0 %v2911_v16  ;;  %v2365_v16 = vor.u32 %v2773_v3, %v2364_v8  ;;  %v2775_v25 = vld [vmem:[%s4225_s0 + $0x24] sm:$0xf0]  ;;  %v2433_v3 = vor.u32 %v2788_v48, %v2430_v49 }
  0x2b   :  { %1435 = vmatpush.bf16.msrb.mxu1 %v2913_v17  ;;  %v2369_v17 = vor.u32 %v2772_v7, %v2366_v12 }
  0x2d   :  { %1525 = vmatpush.bf16.msrb.mxu2 %v2963_v34  ;;  %v2373_v34 = vor.u32 %v2775_v25, %v2372_v21 }
  0x2e   :  { %1614 = vmatpush.bf16.msrb.mxu3 %v2975_v38  ;;  %1347 = vmatpush.bf16.msrb.mxu0 %v2948_v29  ;;  %v2774_v29 = vld [vmem:[%s4225_s0 + $0x24] sm:$0xf] }
  0x2f   :  { %1436 = vmatpush.bf16.msrb.mxu1 %v2961_v33  ;;  %v2374_v33 = vld [vmem:[%s4225_s0 + $0x28] sm:$0xf0] }
  0x30   :  { %v2377_v38 = vor.u32 %v2774_v29, %v2374_v33 }
  0x31   :  { %1526 = vmatpush.bf16.msrb.mxu2 %v2999_v46  ;;  %v2776_v46 = vld [vmem:[%s4225_s0 + $0x34] sm:$0xf] }
  0x32   :  { %1615 = vmatpush.bf16.msrb.mxu3 %v3011_v50  ;;  %1348 = vmatpush.bf16.msrb.mxu0 %v2993_v44  ;;  %v2380_v44 = vld [vmem:[%s4225_s0 + $0x30] sm:$0xf]  ;;  %v2382_v50 = vld [vmem:[%s4225_s0 + $0x38] sm:$0xf0] }
  0x33   :  { %1437 = vmatpush.bf16.msrb.mxu1 %v2997_v45  ;;  %618 = vmatmul.bf16.gmra.mxu0 %v2365_v16  ;;  %v2777_v45 = vld [vmem:[%s4225_s0 + $0x34] sm:$0xf0]  ;;  %v2385_v55 = vor.u32 %v2776_v46, %v2382_v50  ;;  %v2438_v46 = vld [vmem:[%s4225_s0 + $0xa8] sm:$0xf0] }
  0x34   :  { %707 = vmatmul.bf16.gmra.mxu1 %v2369_v17  ;;  %796 = vmatmul.bf16.gmra.mxu2 %v2365_v16  ;;  %v2381_v54 = vor.u32 %v2777_v45, %v2380_v44  ;;  %v2791_v44 = vld [vmem:[%s4225_s0 + $0xa4] sm:$0xf0]  ;;  %v2790_v45 = vld [vmem:[%s4225_s0 + $0xa4] sm:$0xf] }
  0x35   :  { %1527 = vmatpush.bf16.msrb.mxu2 %v3035_v58  ;;  %885 = vmatmul.bf16.gmra.mxu3 %v2369_v17  ;;  %v2778_v58 = vld [vmem:[%s4225_s0 + $0x44] sm:$0xf] }
  0x36   :  { %1616 = vmatpush.bf16.msrb.mxu3 %v3047_v62  ;;  %1349 = vmatpush.bf16.msrb.mxu0 %v3029_v56  ;;  %v2388_v56 = vld [vmem:[%s4225_s0 + $0x40] sm:$0xf]  ;;  %v2393_v61 = vor.u32 %v2778_v58, %v2390_v59  ;;  %v2396_v62 = vld [vmem:[%s4225_s0 + $0x50] sm:$0xf] }
  0x37   :  { %1438 = vmatpush.bf16.msrb.mxu1 %v3033_v57  ;;  %v2779_v57 = vld [vmem:[%s4225_s0 + $0x44] sm:$0xf0]  ;;  %v2397_v2 = vor.u32 %v2781_v63, %v2396_v62 }
  0x38   :  { %v2389_v60 = vor.u32 %v2779_v57, %v2388_v56  ;;  %v2441_v57 = vor.u32 %v2790_v45, %v2438_v46 }
  0x39   :  { %1528 = vmatpush.bf16.msrb.mxu2 %v3071_v9  ;;  %v2782_v9 = vld [vmem:[%s4225_s0 + $0x64] sm:$0xf] }
  0x3a   :  { %1617 = vmatpush.bf16.msrb.mxu3 %v3083_v14  ;;  %1350 = vmatpush.bf16.msrb.mxu0 %v3065_v5  ;;  %v2404_v5 = vld [vmem:[%s4225_s0 + $0x60] sm:$0xf]  ;;  %v2409_v13 = vor.u32 %v2782_v9, %v2406_v10  ;;  %v2412_v14 = vld [vmem:[%s4225_s0 + $0x70] sm:$0xf]  ;;  %v2446_v9 = vld [vmem:[%s4225_s0 + $0xb8] sm:$0xf0] }
  0x3b   :  { %1439 = vmatpush.bf16.msrb.mxu1 %v3069_v6  ;;  %v2783_v6 = vld [vmem:[%s4225_s0 + $0x64] sm:$0xf0]  ;;  %v2413_v20 = vor.u32 %v2785_v15, %v2412_v14 }
  0x3c   :  { %v2405_v11 = vor.u32 %v2783_v6, %v2404_v5  ;;  %v2793_v5 = vld [vmem:[%s4225_s0 + $0xb4] sm:$0xf0]  ;;  %v2792_v6 = vld [vmem:[%s4225_s0 + $0xb4] sm:$0xf] }
  0x3d   :  { %1529 = vmatpush.bf16.msrb.mxu2 %v3107_v26  ;;  %v2786_v26 = vld [vmem:[%s4225_s0 + $0x84] sm:$0xf]  ;;  %v2449_v15 = vor.u32 %v2792_v6, %v2446_v9  ;;  %v2799_v6 = vld [vmem:[%s4225_s0 + $0xe4] sm:$0xf0] }
  0x3e   :  { %1618 = vmatpush.bf16.msrb.mxu3 %v2561_v31  ;;  %1351 = vmatpush.bf16.msrb.mxu0 %v3101_v23  ;;  %v2420_v23 = vld [vmem:[%s4225_s0 + $0x80] sm:$0xf]  ;;  %v2425_v31 = vor.u32 %v2786_v26, %v2422_v27  ;;  %v2798_v9 = vld [vmem:[%s4225_s0 + $0xe4] sm:$0xf] }
  0x3f   :  { %1440 = vmatpush.bf16.msrb.mxu1 %v3105_v24  ;;  %v2787_v24 = vld [vmem:[%s4225_s0 + $0x84] sm:$0xf0] }
  0x40   :  { %v2421_v28 = vor.u32 %v2787_v24, %v2420_v23 }
  0x41   :  { %1530 = vmatpush.bf16.msrb.mxu2 %v2489_v47  ;;  %v2789_v47 = vld [vmem:[%s4225_s0 + $0x94] sm:$0xf0] }
  0x42   :  { %1619 = vmatpush.bf16.msrb.mxu3 %v2553_v51  ;;  %1352 = vmatpush.bf16.msrb.mxu0 %v3135_v40 }
  0x43   :  { %1441 = vmatpush.bf16.msrb.mxu1 %v2549_v43  ;;  %623 = vmatmul.bf16.gmra.mxu0 %v2373_v34  ;;  %v2428_v43 = vld [vmem:[%s4225_s0 + $0x90] sm:$0xf] }
  0x44   :  { %712 = vmatmul.bf16.gmra.mxu1 %v2377_v38  ;;  %801 = vmatmul.bf16.gmra.mxu2 %v2373_v34  ;;  %v2429_v52 = vor.u32 %v2789_v47, %v2428_v43 }
  0x45   :  { %890 = vmatmul.bf16.gmra.mxu3 %v2377_v38  ;;  %v2436_v38 = vld [vmem:[%s4225_s0 + $0xa0] sm:$0xf] }
  0x53   :  { %628 = vmatmul.bf16.gmra.mxu0 %v2381_v54 }
  0x54   :  { %717 = vmatmul.bf16.gmra.mxu1 %v2385_v55  ;;  %806 = vmatmul.bf16.gmra.mxu2 %v2381_v54  ;;  %v2437_v54 = vor.u32 %v2791_v44, %v2436_v38  ;;  %v2462_v38 = vld [vmem:[%s4225_s0 + $0xd8] sm:$0xf0] }
  0x55   :  { %895 = vmatmul.bf16.gmra.mxu3 %v2385_v55 }
  0x63   :  { %633 = vmatmul.bf16.gmra.mxu0 %v2389_v60 }
  0x64   :  { %722 = vmatmul.bf16.gmra.mxu1 %v2393_v61  ;;  %811 = vmatmul.bf16.gmra.mxu2 %v2389_v60 }
  0x65   :  { %900 = vmatmul.bf16.gmra.mxu3 %v2393_v61 }
  0x73   :  { %638 = vmatmul.bf16.gmra.mxu0 %v2397_v2 }
  0x74   :  { %727 = vmatmul.bf16.gmra.mxu1 %v2401_v4  ;;  %816 = vmatmul.bf16.gmra.mxu2 %v2397_v2 }
  0x75   :  { %905 = vmatmul.bf16.gmra.mxu3 %v2401_v4  ;;  %v2444_v4 = vld [vmem:[%s4225_s0 + $0xb0] sm:$0xf] }
  0x83   :  { %643 = vmatmul.bf16.gmra.mxu0 %v2405_v11 }
  0x84   :  { %732 = vmatmul.bf16.gmra.mxu1 %v2409_v13  ;;  %821 = vmatmul.bf16.gmra.mxu2 %v2405_v11  ;;  %v2445_v11 = vor.u32 %v2793_v5, %v2444_v4  ;;  %v2468_v5 = vld [vmem:[%s4225_s0 + $0xe0] sm:$0xf] }
  0x85   :  { %910 = vmatmul.bf16.gmra.mxu3 %v2409_v13 }
  0x93   :  { %648 = vmatmul.bf16.gmra.mxu0 %v2413_v20 }
  0x94   :  { %737 = vmatmul.bf16.gmra.mxu1 %v2417_v22  ;;  %826 = vmatmul.bf16.gmra.mxu2 %v2413_v20 }
  0x95   :  { %915 = vmatmul.bf16.gmra.mxu3 %v2417_v22 }
  0xa0   :  { %v614_v30 = vpop.f32.mrf.mxu0 }
  0xa1   :  { %v703_v32 = vpop.f32.mrf.mxu1 }
  0xa2   :  { %v3276_v35 = vadd.f32 %v703_v32, %v614_v30  ;;  %v2452_v30 = vld [vmem:[%s4225_s0 + $0xc0] sm:$0xf]  ;;  %v2794_v32 = vld [vmem:[%s4225_s0 + $0xc4] sm:$0xf] }
  0xa3   :  { %653 = vmatmul.bf16.gmra.mxu0 %v2421_v28 }
  0xa4   :  { %742 = vmatmul.bf16.gmra.mxu1 %v2425_v31  ;;  %831 = vmatmul.bf16.gmra.mxu2 %v2421_v28 }
  0xa5   :  { %920 = vmatmul.bf16.gmra.mxu3 %v2425_v31  ;;  %v2795_v31 = vld [vmem:[%s4225_s0 + $0xc4] sm:$0xf0] }
  0xa7   :  { %v792_v36 = vpop.f32.mrf.mxu2 }
  0xa8   :  { %v881_v37 = vpop.f32.mrf.mxu3  ;;  %v616_v39 = vpop.f32.mrf.mxu0 }
  0xa9   :  { %v3278_v40 = vadd.f32 %v881_v37, %v792_v36  ;;  %v705_v41 = vpop.f32.mrf.mxu1  ;;  %v2454_v36 = vld [vmem:[%s4225_s0 + $0xc8] sm:$0xf0] }
  0xaa   :  { %v3280_v42 = vadd.f32 %v705_v41, %v616_v39  ;;  %v2453_v39 = vor.u32 %v2795_v31, %v2452_v30  ;;  %v2457_v47 = vor.u32 %v2794_v32, %v2454_v36 }
  0xaf   :  { %v794_v51 = vpop.f32.mrf.mxu2 }
  0xb0   :  { %v883_v53 = vpop.f32.mrf.mxu3  ;;  %v619_v8 = vpop.f32.mrf.mxu0 }
  0xb1   :  { %v3294_v7 = vadd.f32 %v883_v53, %v794_v51  ;;  %v708_v12 = vpop.f32.mrf.mxu1 }
  0xb2   :  { %v3296_v16 = vadd.f32 %v708_v12, %v619_v8 }
  0xb3   :  { %658 = vmatmul.bf16.gmra.mxu0 %v2429_v52 }
  0xb4   :  { %747 = vmatmul.bf16.gmra.mxu1 %v2433_v3  ;;  %836 = vmatmul.bf16.gmra.mxu2 %v2429_v52 }
  0xb5   :  { %925 = vmatmul.bf16.gmra.mxu3 %v2433_v3 }
  0xb7   :  { %v797_v17 = vpop.f32.mrf.mxu2 }
  0xb8   :  { %v886_v21 = vpop.f32.mrf.mxu3  ;;  %v621_v25 = vpop.f32.mrf.mxu0 }
  0xb9   :  { %v3298_v29 = vadd.f32 %v886_v21, %v797_v17  ;;  %v710_v33 = vpop.f32.mrf.mxu1  ;;  %v2460_v21 = vld [vmem:[%s4225_s0 + $0xd0] sm:$0xf] }
  0xba   :  { %v3300_v34 = vadd.f32 %v710_v33, %v621_v25  ;;  %v2797_v25 = vld [vmem:[%s4225_s0 + $0xd4] sm:$0xf0]  ;;  %v2796_v33 = vld [vmem:[%s4225_s0 + $0xd4] sm:$0xf] }
  0xbb   :  { %v2461_v45 = vor.u32 %v2797_v25, %v2460_v21 }
  0xbf   :  { %v799_v50 = vpop.f32.mrf.mxu2 }
  0xc0   :  { %v888_v55 = vpop.f32.mrf.mxu3  ;;  %v624_v56 = vpop.f32.mrf.mxu0 }
  0xc1   :  { %v3314_v58 = vadd.f32 %v888_v55, %v799_v50  ;;  %v713_v59 = vpop.f32.mrf.mxu1 }
  0xc2   :  { %v3316_v60 = vadd.f32 %v713_v59, %v624_v56 }
  0xc3   :  { %663 = vmatmul.bf16.gmra.mxu0 %v2437_v54 }
  0xc4   :  { %752 = vmatmul.bf16.gmra.mxu1 %v2441_v57  ;;  %841 = vmatmul.bf16.gmra.mxu2 %v2437_v54  ;;  %v2465_v54 = vor.u32 %v2796_v33, %v2462_v38 }
  0xc5   :  { %930 = vmatmul.bf16.gmra.mxu3 %v2441_v57 }
  0xc7   :  { %v802_v61 = vpop.f32.mrf.mxu2 }
  0xc8   :  { %v891_v62 = vpop.f32.mrf.mxu3  ;;  %v626_v63 = vpop.f32.mrf.mxu0 }
  0xc9   :  { %v3318_v0 = vadd.f32 %v891_v62, %v802_v61  ;;  %v715_v1 = vpop.f32.mrf.mxu1 }
  0xca   :  { %v3320_v2 = vadd.f32 %v715_v1, %v626_v63 }
  0xcf   :  { %v804_v10 = vpop.f32.mrf.mxu2 }
  0xd0   :  { %v893_v13 = vpop.f32.mrf.mxu3  ;;  %v629_v14 = vpop.f32.mrf.mxu0 }
  0xd1   :  { %v3334_v18 = vadd.f32 %v893_v13, %v804_v10  ;;  %v718_v19 = vpop.f32.mrf.mxu1  ;;  %v2470_v10 = vld [vmem:[%s4225_s0 + $0xe8] sm:$0xf0]  ;;  %v2469_v13 = vor.u32 %v2799_v6, %v2468_v5 }
  0xd2   :  { %v3336_v20 = vadd.f32 %v718_v19, %v629_v14  ;;  %v2473_v19 = vor.u32 %v2798_v9, %v2470_v10 }
  0xd3   :  { %668 = vmatmul.bf16.gmra.mxu0 %v2445_v11 }
  0xd4   :  { %757 = vmatmul.bf16.gmra.mxu1 %v2449_v15  ;;  %846 = vmatmul.bf16.gmra.mxu2 %v2445_v11 }
  0xd5   :  { %935 = vmatmul.bf16.gmra.mxu3 %v2449_v15 }
  0xd7   :  { %v807_v22 = vpop.f32.mrf.mxu2 }
  0xd8   :  { %v896_v23 = vpop.f32.mrf.mxu3  ;;  %v631_v24 = vpop.f32.mrf.mxu0 }
  0xd9   :  { %v3338_v26 = vadd.f32 %v896_v23, %v807_v22  ;;  %v720_v27 = vpop.f32.mrf.mxu1 }
  0xda   :  { %v3340_v28 = vadd.f32 %v720_v27, %v631_v24 }
  0xdf   :  { %v809_v37 = vpop.f32.mrf.mxu2 }
  0xe0   :  { %v898_v41 = vpop.f32.mrf.mxu3  ;;  %v634_v43 = vpop.f32.mrf.mxu0 }
  0xe1   :  { %v3354_v48 = vadd.f32 %v898_v41, %v809_v37  ;;  %v723_v49 = vpop.f32.mrf.mxu1  ;;  %v2801_v41 = vld [vmem:[%s4225_s0 + $0xf4] sm:$0xf0] }
  0xe2   :  { %v3356_v51 = vadd.f32 %v723_v49, %v634_v43  ;;  %v2800_v43 = vld [vmem:[%s4225_s0 + $0xf4] sm:$0xf] }
  0xe3   :  { %673 = vmatmul.bf16.gmra.mxu0 %v2453_v39 }
  0xe4   :  { %762 = vmatmul.bf16.gmra.mxu1 %v2457_v47  ;;  %851 = vmatmul.bf16.gmra.mxu2 %v2453_v39  ;;  %v2476_v39 = vld [vmem:[%s4225_s0 + $0xf0] sm:$0xf] }
  0xe5   :  { %940 = vmatmul.bf16.gmra.mxu3 %v2457_v47  ;;  %v2478_v47 = vld [vmem:[%s4225_s0 + $0xf8] sm:$0xf0] }
  0xe7   :  { %v812_v52 = vpop.f32.mrf.mxu2 }
  0xe8   :  { %v901_v53 = vpop.f32.mrf.mxu3  ;;  %v636_v8 = vpop.f32.mrf.mxu0 }
  0xe9   :  { %v3358_v3 = vadd.f32 %v901_v53, %v812_v52  ;;  %v725_v12 = vpop.f32.mrf.mxu1  ;;  %v2477_v52 = vor.u32 %v2801_v41, %v2476_v39  ;;  %v2805_v39 = vld [vmem:[%s4226_s1 + $0x14] sm:$0xf0]  ;;  %v2804_v41 = vld [vmem:[%s4226_s1 + $0x14] sm:$0xf] }
  0xea   :  { %v3360_v17 = vadd.f32 %v725_v12, %v636_v8  ;;  %v2481_v12 = vor.u32 %v2800_v43, %v2478_v47  ;;  %v2622_v43 = vld [vmem:[%s4226_s1 + $0x18] sm:$0xf0] }
  0xef   :  { %v814_v44 = vpop.f32.mrf.mxu2 }
  0xf0   :  { %v903_v46 = vpop.f32.mrf.mxu3  ;;  %v639_v50 = vpop.f32.mrf.mxu0 }
  0xf1   :  { %v3374_v55 = vadd.f32 %v903_v46, %v814_v44  ;;  %v728_v56 = vpop.f32.mrf.mxu1 }
  0xf2   :  { %v3376_v57 = vadd.f32 %v728_v56, %v639_v50  ;;  %v2612_v56 = vld [vmem:[%s4226_s1] sm:$0xf] }
  0xf3   :  { %678 = vmatmul.bf16.gmra.mxu0 %v2461_v45 }
  0xf4   :  { %767 = vmatmul.bf16.gmra.mxu1 %v2465_v54  ;;  %856 = vmatmul.bf16.gmra.mxu2 %v2461_v45 }
  0xf5   :  { %945 = vmatmul.bf16.gmra.mxu3 %v2465_v54 }
  0xf7   :  { %v817_v59 = vpop.f32.mrf.mxu2 }
  0xf8   :  { %v906_v61 = vpop.f32.mrf.mxu3  ;;  %v641_v62 = vpop.f32.mrf.mxu0 }
  0xf9   :  { %v3378_v63 = vadd.f32 %v906_v61, %v817_v59  ;;  %v730_v1 = vpop.f32.mrf.mxu1  ;;  %v2803_v59 = vld [vmem:[%s4226_s1 + $0x4] sm:$0xf0]  ;;  %v2802_v61 = vld [vmem:[%s4226_s1 + $0x4] sm:$0xf] }
  0xfa   :  { %v3380_v4 = vadd.f32 %v730_v1, %v641_v62  ;;  %v2614_v62 = vld [vmem:[%s4226_s1 + $0x8] sm:$0xf0]  ;;  %v2613_v5 = vor.u32 %v2803_v59, %v2612_v56 }
  0xfb   :  { %v2617_v10 = vor.u32 %v2802_v61, %v2614_v62  ;;  %v2628_v62 = vld [vmem:[%s4226_s1 + $0x20] sm:$0xf] }
  0xff   :  { %v819_v11 = vpop.f32.mrf.mxu2 }
 0x100   :  { %v908_v14 = vpop.f32.mrf.mxu3  ;;  %v644_v15 = vpop.f32.mrf.mxu0 }
 0x101   :  { %v3394_v22 = vadd.f32 %v908_v14, %v819_v11  ;;  %v733_v23 = vpop.f32.mrf.mxu1 }
 0x102   :  { %v3396_v24 = vadd.f32 %v733_v23, %v644_v15 }
 0x103   :  { %683 = vmatmul.bf16.gmra.mxu0 %v2469_v13 }
 0x104   :  { %772 = vmatmul.bf16.gmra.mxu1 %v2473_v19  ;;  %861 = vmatmul.bf16.gmra.mxu2 %v2469_v13 }
 0x105   :  { %950 = vmatmul.bf16.gmra.mxu3 %v2473_v19 }
 0x107   :  { %v822_v27 = vpop.f32.mrf.mxu2 }
 0x108   :  { %v911_v30 = vpop.f32.mrf.mxu3  ;;  %v646_v31 = vpop.f32.mrf.mxu0 }
 0x109   :  { %v3398_v32 = vadd.f32 %v911_v30, %v822_v27  ;;  %v735_v36 = vpop.f32.mrf.mxu1 }
 0x10a   :  { %v3400_v37 = vadd.f32 %v735_v36, %v646_v31  ;;  %v2620_v36 = vld [vmem:[%s4226_s1 + $0x10] sm:$0xf] }
 0x10f   :  { %v824_v49 = vpop.f32.mrf.mxu2 }
 0x110   :  { %v913_v53 = vpop.f32.mrf.mxu3  ;;  %v649_v8 = vpop.f32.mrf.mxu0 }
 0x111   :  { %v3414_v21 = vadd.f32 %v913_v53, %v824_v49  ;;  %v738_v25 = vpop.f32.mrf.mxu1  ;;  %v2621_v49 = vor.u32 %v2805_v39, %v2620_v36 }
 0x112   :  { %v3416_v33 = vadd.f32 %v738_v25, %v649_v8  ;;  %v2625_v8 = vor.u32 %v2804_v41, %v2622_v43 }
 0x113   :  { %688 = vmatmul.bf16.gmra.mxu0 %v2477_v52 }
 0x114   :  { %777 = vmatmul.bf16.gmra.mxu1 %v2481_v12  ;;  %866 = vmatmul.bf16.gmra.mxu2 %v2477_v52 }
 0x115   :  { %955 = vmatmul.bf16.gmra.mxu3 %v2481_v12 }
 0x117   :  { %v827_v38 = vpop.f32.mrf.mxu2 }
 0x118   :  { %v916_v44 = vpop.f32.mrf.mxu3  ;;  %v651_v45 = vpop.f32.mrf.mxu0 }
 0x119   :  { %v3418_v46 = vadd.f32 %v916_v44, %v827_v38  ;;  %v740_v50 = vpop.f32.mrf.mxu1 }
 0x11a   :  { %v3420_v54 = vadd.f32 %v740_v50, %v651_v45 }
 0x11f   :  { %v829_v1 = vpop.f32.mrf.mxu2 }
 0x120   :  { %v918_v6 = vpop.f32.mrf.mxu3  ;;  %v654_v9 = vpop.f32.mrf.mxu0 }
 0x121   :  { %v3434_v11 = vadd.f32 %v918_v6, %v829_v1  ;;  %v743_v13 = vpop.f32.mrf.mxu1  ;;  %v2807_v1 = vld [vmem:[%s4226_s1 + $0x24] sm:$0xf0]  ;;  %v2630_v6 = vld [vmem:[%s4226_s1 + $0x28] sm:$0xf0] }
 0x122   :  { %v3436_v14 = vadd.f32 %v743_v13, %v654_v9 }
 0x123   :  { %1353 = vmatmul.bf16.vlgmr.msrb.gmra.mxu0 %v2613_v5 }
 0x124   :  { %1442 = vmatmul.bf16.vlgmr.msrb.gmra.mxu1 %v2617_v10  ;;  %1531 = vmatmul.bf16.vlgmr.msrb.gmra.mxu2 %v2613_v5  ;;  %v2806_v5 = vld [vmem:[%s4226_s1 + $0x24] sm:$0xf] }
 0x125   :  { %1620 = vmatmul.bf16.vlgmr.msrb.gmra.mxu3 %v2617_v10  ;;  %v2629_v10 = vor.u32 %v2807_v1, %v2628_v62 }
 0x127   :  { %v832_v15 = vpop.f32.mrf.mxu2 }
 0x128   :  { %v921_v19 = vpop.f32.mrf.mxu3  ;;  %v656_v23 = vpop.f32.mrf.mxu0 }
 0x129   :  { %v3438_v27 = vadd.f32 %v921_v19, %v832_v15  ;;  %v745_v30 = vpop.f32.mrf.mxu1  ;;  %v2633_v19 = vor.u32 %v2806_v5, %v2630_v6 }
 0x12a   :  { %v3440_v31 = vadd.f32 %v745_v30, %v656_v23 }
 0x12f   :  { %v834_v47 = vpop.f32.mrf.mxu2 }
 0x130   :  { %v923_v52 = vpop.f32.mrf.mxu3  ;;  %v659_v53 = vpop.f32.mrf.mxu0 }
 0x131   :  { %v3454_v12 = vadd.f32 %v923_v52, %v834_v47  ;;  %v748_v25 = vpop.f32.mrf.mxu1 }
 0x132   :  { %v3456_v38 = vadd.f32 %v748_v25, %v659_v53  ;;  %v2636_v53 = vld [vmem:[%s4226_s1 + $0x30] sm:$0xf]  ;;  %v2808_v25 = vld [vmem:[%s4226_s1 + $0x34] sm:$0xf] }
 0x133   :  { %1358 = vmatmul.bf16.gmra.mxu0 %v2621_v49 }
 0x134   :  { %1447 = vmatmul.bf16.gmra.mxu1 %v2625_v8  ;;  %1536 = vmatmul.bf16.gmra.mxu2 %v2621_v49 }
 0x135   :  { %1625 = vmatmul.bf16.gmra.mxu3 %v2625_v8  ;;  %v2809_v8 = vld [vmem:[%s4226_s1 + $0x34] sm:$0xf0] }
 0x137   :  { %v837_v44 = vpop.f32.mrf.mxu2 }
 0x138   :  { %v926_v45 = vpop.f32.mrf.mxu3  ;;  %v661_v50 = vpop.f32.mrf.mxu0 }
 0x139   :  { %v3458_v56 = vadd.f32 %v926_v45, %v837_v44  ;;  %v750_v59 = vpop.f32.mrf.mxu1  ;;  %v2638_v44 = vld [vmem:[%s4226_s1 + $0x38] sm:$0xf0] }
 0x13a   :  { %v3460_v61 = vadd.f32 %v750_v59, %v661_v50  ;;  %v2637_v50 = vor.u32 %v2809_v8, %v2636_v53  ;;  %v2641_v1 = vor.u32 %v2808_v25, %v2638_v44  ;;  %v2646_v53 = vld [vmem:[%s4226_s1 + $0x48] sm:$0xf0] }
 0x13f   :  { %v839_v9 = vpop.f32.mrf.mxu2 }
 0x140   :  { %v928_v13 = vpop.f32.mrf.mxu3  ;;  %v664_v15 = vpop.f32.mrf.mxu0 }
 0x141   :  { %v3474_v23 = vadd.f32 %v928_v13, %v839_v9  ;;  %v753_v30 = vpop.f32.mrf.mxu1 }
 0x142   :  { %v3476_v36 = vadd.f32 %v753_v30, %v664_v15 }
 0x143   :  { %1363 = vmatmul.bf16.gmra.mxu0 %v2629_v10 }
 0x144   :  { %1452 = vmatmul.bf16.gmra.mxu1 %v2633_v19  ;;  %1541 = vmatmul.bf16.gmra.mxu2 %v2629_v10 }
 0x145   :  { %1630 = vmatmul.bf16.gmra.mxu3 %v2633_v19 }
 0x147   :  { %v842_v39 = vpop.f32.mrf.mxu2 }
 0x148   :  { %v931_v41 = vpop.f32.mrf.mxu3  ;;  %v666_v43 = vpop.f32.mrf.mxu0 }
 0x149   :  { %v3478_v47 = vadd.f32 %v931_v41, %v842_v39  ;;  %v755_v49 = vpop.f32.mrf.mxu1  ;;  %v2644_v41 = vld [vmem:[%s4226_s1 + $0x40] sm:$0xf] }
 0x14a   :  { %v3480_v52 = vadd.f32 %v755_v49, %v666_v43  ;;  %v2811_v43 = vld [vmem:[%s4226_s1 + $0x44] sm:$0xf0]  ;;  %v2810_v49 = vld [vmem:[%s4226_s1 + $0x44] sm:$0xf] }
 0x14b   :  { %v2645_v25 = vor.u32 %v2811_v43, %v2644_v41  ;;  %v2652_v41 = vld [vmem:[%s4226_s1 + $0x50] sm:$0xf]  ;;  %v2813_v43 = vld [vmem:[%s4226_s1 + $0x54] sm:$0xf0] }
 0x14f   :  { %v844_v45 = vpop.f32.mrf.mxu2 }
 0x150   :  { %v933_v59 = vpop.f32.mrf.mxu3  ;;  %v669_v62 = vpop.f32.mrf.mxu0 }
 0x151   :  { %v3494_v5 = vadd.f32 %v933_v59, %v844_v45  ;;  %v758_v6 = vpop.f32.mrf.mxu1 }
 0x152   :  { %v3496_v9 = vadd.f32 %v758_v6, %v669_v62 }
 0x153   :  { %1368 = vmatmul.bf16.gmra.mxu0 %v2637_v50 }
 0x154   :  { %1457 = vmatmul.bf16.gmra.mxu1 %v2641_v1  ;;  %1546 = vmatmul.bf16.gmra.mxu2 %v2637_v50  ;;  %v2649_v50 = vor.u32 %v2810_v49, %v2646_v53  ;;  %v2812_v49 = vld [vmem:[%s4226_s1 + $0x54] sm:$0xf]  ;;  %v2654_v53 = vld [vmem:[%s4226_s1 + $0x58] sm:$0xf0] }
 0x155   :  { %1635 = vmatmul.bf16.gmra.mxu3 %v2641_v1 }
 0x157   :  { %v847_v10 = vpop.f32.mrf.mxu2 }
 0x158   :  { %v936_v13 = vpop.f32.mrf.mxu3  ;;  %v671_v15 = vpop.f32.mrf.mxu0 }
 0x159   :  { %v3498_v19 = vadd.f32 %v936_v13, %v847_v10  ;;  %v760_v30 = vpop.f32.mrf.mxu1 }
 0x15a   :  { %v3500_v39 = vadd.f32 %v760_v30, %v671_v15 }
 0x15c   :  { %4230 = vst [vmem:[#allocation4_spill] sm:$0xff] %v3500_v39 }
 0x15f   :  { %v849_v8 = vpop.f32.mrf.mxu2 }
 0x160   :  { %v938_v44 = vpop.f32.mrf.mxu3  ;;  %v674_v45 = vpop.f32.mrf.mxu0 }
 0x161   :  { %v3514_v59 = vadd.f32 %v938_v44, %v849_v8  ;;  %v763_v62 = vpop.f32.mrf.mxu1 }
 0x162   :  { %v3516_v1 = vadd.f32 %v763_v62, %v674_v45 }
 0x163   :  { %4231 = vst [vmem:[#allocation5_spill] sm:$0xff] %v3514_v59  ;;  %1373 = vmatmul.bf16.gmra.mxu0 %v2645_v25 }
 0x164   :  { %4232 = vst [vmem:[#allocation6_spill] sm:$0xff] %v3516_v1  ;;  %1462 = vmatmul.bf16.gmra.mxu1 %v2649_v50  ;;  %1551 = vmatmul.bf16.gmra.mxu2 %v2645_v25  ;;  %v2653_v25 = vor.u32 %v2813_v43, %v2652_v41  ;;  %v2660_v41 = vld [vmem:[%s4226_s1 + $0x60] sm:$0xf]  ;;  %v2815_v43 = vld [vmem:[%s4226_s1 + $0x64] sm:$0xf0] }
 0x165   :  { %1640 = vmatmul.bf16.gmra.mxu3 %v2649_v50  ;;  %v2657_v50 = vor.u32 %v2812_v49, %v2654_v53  ;;  %v2814_v49 = vld [vmem:[%s4226_s1 + $0x64] sm:$0xf]  ;;  %v2662_v53 = vld [vmem:[%s4226_s1 + $0x68] sm:$0xf0] }
 0x167   :  { %v852_v6 = vpop.f32.mrf.mxu2 }
 0x168   :  { %v941_v10 = vpop.f32.mrf.mxu3  ;;  %v676_v13 = vpop.f32.mrf.mxu0 }
 0x169   :  { %v3518_v15 = vadd.f32 %v941_v10, %v852_v6  ;;  %v765_v30 = vpop.f32.mrf.mxu1 }
 0x16a   :  { %v3520_v39 = vadd.f32 %v765_v30, %v676_v13 }
 0x16b   :  { %4233 = vst [vmem:[#allocation7_spill] sm:$0xff] %v3518_v15 }
 0x16c   :  { %4234 = vst [vmem:[#allocation8_spill] sm:$0xff] %v3520_v39 }
 0x16f   :  { %v854_v8 = vpop.f32.mrf.mxu2 }
 0x170   :  { %v943_v44 = vpop.f32.mrf.mxu3  ;;  %v679_v45 = vpop.f32.mrf.mxu0 }
 0x171   :  { %v3534_v62 = vadd.f32 %v943_v44, %v854_v8  ;;  %v768_v6 = vpop.f32.mrf.mxu1  ;;  %v2665_v44 = vor.u32 %v2814_v49, %v2662_v53  ;;  %v2816_v49 = vld [vmem:[%s4226_s1 + $0x74] sm:$0xf]  ;;  %v2670_v53 = vld [vmem:[%s4226_s1 + $0x78] sm:$0xf0] }
 0x172   :  { %v3536_v10 = vadd.f32 %v768_v6, %v679_v45 }
 0x173   :  { %4235 = vst [vmem:[#allocation9_spill] sm:$0xff] %v3534_v62  ;;  %1378 = vmatmul.bf16.gmra.mxu0 %v2653_v25 }
 0x174   :  { %4236 = vst [vmem:[#allocation10_spill] sm:$0xff] %v3536_v10  ;;  %1467 = vmatmul.bf16.gmra.mxu1 %v2657_v50  ;;  %1556 = vmatmul.bf16.gmra.mxu2 %v2653_v25  ;;  %v2661_v25 = vor.u32 %v2815_v43, %v2660_v41  ;;  %v2668_v41 = vld [vmem:[%s4226_s1 + $0x70] sm:$0xf]  ;;  %v2817_v43 = vld [vmem:[%s4226_s1 + $0x74] sm:$0xf0] }
 0x175   :  { %1645 = vmatmul.bf16.gmra.mxu3 %v2657_v50 }
 0x177   :  { %v857_v13 = vpop.f32.mrf.mxu2 }
 0x178   :  { %v946_v30 = vpop.f32.mrf.mxu3  ;;  %v681_v39 = vpop.f32.mrf.mxu0 }
 0x179   :  { %v3538_v1 = vadd.f32 %v946_v30, %v857_v13  ;;  %v770_v15 = vpop.f32.mrf.mxu1 }
 0x17a   :  { %v3540_v59 = vadd.f32 %v770_v15, %v681_v39 }
 0x17b   :  { %4237 = vst [vmem:[#allocation11_spill] sm:$0xff] %v3538_v1 }
 0x17c   :  { %4238 = vst [vmem:[#allocation12_spill] sm:$0xff] %v3540_v59 }
 0x17f   :  { %v859_v8 = vpop.f32.mrf.mxu2 }
 0x180   :  { %v948_v39 = vpop.f32.mrf.mxu3  ;;  %v684_v15 = vpop.f32.mrf.mxu0 }
 0x181   :  { %v3554_v45 = vadd.f32 %v948_v39, %v859_v8  ;;  %v773_v50 = vpop.f32.mrf.mxu1  ;;  %v2673_v39 = vor.u32 %v2816_v49, %v2670_v53  ;;  %v2818_v49 = vld [vmem:[%s4226_s1 + $0x84] sm:$0xf]  ;;  %v2678_v53 = vld [vmem:[%s4226_s1 + $0x88] sm:$0xf0] }
 0x182   :  { %v3556_v6 = vadd.f32 %v773_v50, %v684_v15 }
 0x183   :  { %4239 = vst [vmem:[#allocation13_spill] sm:$0xff] %v3554_v45  ;;  %1383 = vmatmul.bf16.gmra.mxu0 %v2661_v25 }
 0x184   :  { %4240 = vst [vmem:[#allocation14_spill] sm:$0xff] %v3556_v6  ;;  %1472 = vmatmul.bf16.gmra.mxu1 %v2665_v44  ;;  %1561 = vmatmul.bf16.gmra.mxu2 %v2661_v25  ;;  %v2669_v25 = vor.u32 %v2817_v43, %v2668_v41  ;;  %v2676_v41 = vld [vmem:[%s4226_s1 + $0x80] sm:$0xf]  ;;  %v2819_v43 = vld [vmem:[%s4226_s1 + $0x84] sm:$0xf0] }
 0x185   :  { %1650 = vmatmul.bf16.gmra.mxu3 %v2665_v44 }
 0x187   :  { %v862_v13 = vpop.f32.mrf.mxu2 }
 0x188   :  { %v951_v30 = vpop.f32.mrf.mxu3  ;;  %v686_v59 = vpop.f32.mrf.mxu0 }
 0x189   :  { %v3558_v10 = vadd.f32 %v951_v30, %v862_v13  ;;  %v775_v1 = vpop.f32.mrf.mxu1 }
 0x18a   :  { %v3560_v62 = vadd.f32 %v775_v1, %v686_v59 }
 0x18b   :  { %4241 = vst [vmem:[#allocation15_spill] sm:$0xff] %v3558_v10 }
 0x18c   :  { %4242 = vst [vmem:[#allocation16_spill] sm:$0xff] %v3560_v62 }
 0x18f   :  { %v864_v8 = vpop.f32.mrf.mxu2 }
 0x190   :  { %v953_v59 = vpop.f32.mrf.mxu3  ;;  %v689_v1 = vpop.f32.mrf.mxu0 }
 0x191   :  { %v3574_v15 = vadd.f32 %v953_v59, %v864_v8  ;;  %v778_v44 = vpop.f32.mrf.mxu1  ;;  %v2681_v59 = vor.u32 %v2818_v49, %v2678_v53 }
 0x192   :  { %v3576_v50 = vadd.f32 %v778_v44, %v689_v1 }
 0x193   :  { %1388 = vmatmul.bf16.gmra.mxu0 %v2669_v25 }
 0x194   :  { %4243 = vst [vmem:[#allocation17_spill] sm:$0xff] %v3576_v50  ;;  %1477 = vmatmul.bf16.gmra.mxu1 %v2673_v39  ;;  %1566 = vmatmul.bf16.gmra.mxu2 %v2669_v25  ;;  %v2677_v25 = vor.u32 %v2819_v43, %v2676_v41 }
 0x195   :  { %1655 = vmatmul.bf16.gmra.mxu3 %v2673_v39 }
 0x197   :  { %v867_v13 = vpop.f32.mrf.mxu2 }
 0x198   :  { %v956_v30 = vpop.f32.mrf.mxu3  ;;  %v691_v62 = vpop.f32.mrf.mxu0 }
 0x199   :  { %v3578_v6 = vadd.f32 %v956_v30, %v867_v13  ;;  %v780_v10 = vpop.f32.mrf.mxu1  ;;  %v2089_v30 = vld [vmem:[%s4227_s3 + $0x8] sm:$0xff] }
 0x19a   :  { %v3580_v45 = vadd.f32 %v780_v10, %v691_v62 }
 0x19b   :  { %4244 = vst [vmem:[#allocation18_spill] sm:$0xff] %v3578_v6 }
 0x19c   :  { %4245 = vst [vmem:[#allocation19_spill] sm:$0xff] %v3580_v45 }
 0x19f   :  { %v869_v8 = vpop.f32.mrf.mxu2 }
 0x1a0   :  { %v958_v62 = vpop.f32.mrf.mxu3  ;;  %v1354_v10 = vpop.f32.mrf.mxu0 }
 0x1a1   :  { %v3594_v1 = vadd.f32 %v958_v62, %v869_v8  ;;  %v1443_v39 = vpop.f32.mrf.mxu1 }
 0x1a2   :  { %v1444_v44 = vadd.f32 %v1443_v39, %v1354_v10 }
 0x1a3   :  { %4246 = vst [vmem:[#allocation20_spill] sm:$0xff] %v3594_v1  ;;  %1393 = vmatmul.bf16.gmra.mxu0 %v2677_v25 }
 0x1a4   :  { %v1992_v13 = vadd.f32 %v1444_v44, %v3278_v40  ;;  %1482 = vmatmul.bf16.gmra.mxu1 %v2681_v59  ;;  %1571 = vmatmul.bf16.gmra.mxu2 %v2677_v25 }
 0x1a5   :  { %1660 = vmatmul.bf16.gmra.mxu3 %v2681_v59  ;;  %v2820_v59 = vld [vmem:[%s4226_s1 + $0x94] sm:$0xf] }
 0x1a6   :  { %v2153_v45 = vmul.f32 0.33333334, %v1992_v13 }
 0x1a7   :  { %v1532_v50 = vpop.f32.mrf.mxu2 }
 0x1a8   :  { %v2217_v41 = vadd.f32 %v2153_v45, %v2089_v30  ;;  %v1621_v43 = vpop.f32.mrf.mxu3  ;;  %v1356_v6 = vpop.f32.mrf.mxu0 }
 0x1a9   :  { %v1622_v49 = vadd.f32 %v1621_v43, %v1532_v50  ;;  %v1445_v53 = vpop.f32.mrf.mxu1  ;;  %v2684_v50 = vld [vmem:[%s4226_s1 + $0x90] sm:$0xf] }
 0x1aa   :  { %2281 = vst [vmem:[%s4228_s5 + $0x8] sm:$0xff] %v2217_v41  ;;  %v1446_v8 = vadd.f32 %v1445_v53, %v1356_v6  ;;  %v2821_v6 = vld [vmem:[%s4226_s1 + $0x94] sm:$0xf0] }
 0x1ab   :  { %v1960_v40 = vadd.f32 %v1622_v49, %v3276_v35  ;;  %v2685_v41 = vor.u32 %v2821_v6, %v2684_v50 }
 0x1ac   :  { %v1993_v62 = vadd.f32 %v1446_v8, %v3294_v7  ;;  %v2686_v7 = vld [vmem:[%s4226_s1 + $0x98] sm:$0xf0] }
 0x1ad   :  { %v2024_v10 = vpack.c.bf16 %v1992_v13, %v1960_v40  ;;  %v2152_v35 = vmul.f32 0.33333334, %v1960_v40  ;;  %v2689_v53 = vor.u32 %v2820_v59, %v2686_v7 }
 0x1ae   :  { %v2155_v39 = vmul.f32 0.33333334, %v1993_v62 }
 0x1af   :  { %2056 = vst [vmem:[%s4229_s4] sm:$0xff] %v2024_v10  ;;  %v1534_v30 = vpop.f32.mrf.mxu2 }
 0x1b0   :  { %v1623_v49 = vpop.f32.mrf.mxu3  ;;  %v1359_v13 = vpop.f32.mrf.mxu0 }
 0x1b1   :  { %v2088_v25 = vld [vmem:[%s4227_s3] sm:$0xff]  ;;  %v2091_v45 = vld [vmem:[%s4227_s3 + $0x18] sm:$0xff]  ;;  %v1624_v8 = vadd.f32 %v1623_v49, %v1534_v30  ;;  %v1448_v40 = vpop.f32.mrf.mxu1 }
 0x1b2   :  { %v2216_v44 = vadd.f32 %v2152_v35, %v2088_v25  ;;  %v2219_v43 = vadd.f32 %v2155_v39, %v2091_v45  ;;  %v1449_v1 = vadd.f32 %v1448_v40, %v1359_v13 }
 0x1b3   :  { %v1961_v10 = vadd.f32 %v1624_v8, %v3280_v42  ;;  %1398 = vmatmul.bf16.gmra.mxu0 %v2685_v41  ;;  %v2823_v8 = vld [vmem:[%s4226_s1 + $0xa4] sm:$0xf0] }
 0x1b4   :  { %2280 = vst [vmem:[%s4228_s5] sm:$0xff] %v2216_v44  ;;  %v1994_v45 = vadd.f32 %v1449_v1, %v3298_v29  ;;  %1487 = vmatmul.bf16.gmra.mxu1 %v2689_v53  ;;  %1576 = vmatmul.bf16.gmra.mxu2 %v2685_v41 }
 0x1b5   :  { %2283 = vst [vmem:[%s4228_s5 + $0x18] sm:$0xff] %v2219_v43  ;;  %v2025_v50 = vpack.c.bf16 %v1993_v62, %v1961_v10  ;;  %v2154_v6 = vmul.f32 0.33333334, %v1961_v10  ;;  %1665 = vmatmul.bf16.gmra.mxu3 %v2689_v53  ;;  %v2692_v53 = vld [vmem:[%s4226_s1 + $0xa0] sm:$0xf] }
 0x1b6   :  { %v2157_v59 = vmul.f32 0.33333334, %v1994_v45  ;;  %v2822_v10 = vld [vmem:[%s4226_s1 + $0xa4] sm:$0xf] }
 0x1b7   :  { %2057 = vst [vmem:[%s4229_s4 + $0x8] sm:$0xff] %v2025_v50  ;;  %v1537_v7 = vpop.f32.mrf.mxu2 }
 0x1b8   :  { %v1626_v44 = vpop.f32.mrf.mxu3  ;;  %v1361_v30 = vpop.f32.mrf.mxu0 }
 0x1b9   :  { %v1627_v29 = vadd.f32 %v1626_v44, %v1537_v7  ;;  %v1450_v1 = vpop.f32.mrf.mxu1 }
 0x1ba   :  { %v1451_v62 = vadd.f32 %v1450_v1, %v1361_v30 }
 0x1bb   :  { %v1962_v41 = vadd.f32 %v1627_v29, %v3296_v16 }
 0x1bc   :  { %v2090_v25 = vld [vmem:[%s4227_s3 + $0x10] sm:$0xff]  ;;  %v2093_v35 = vld [vmem:[%s4227_s3 + $0x28] sm:$0xff]  ;;  %v1995_v49 = vadd.f32 %v1451_v62, %v3314_v58 }
 0x1bd   :  { %v2218_v42 = vadd.f32 %v2154_v6, %v2090_v25  ;;  %v2221_v39 = vadd.f32 %v2157_v59, %v2093_v35  ;;  %v2026_v40 = vpack.c.bf16 %v1994_v45, %v1962_v41  ;;  %v2156_v16 = vmul.f32 0.33333334, %v1962_v41  ;;  %v2694_v58 = vld [vmem:[%s4226_s1 + $0xa8] sm:$0xf0] }
 0x1be   :  { %v2159_v25 = vmul.f32 0.33333334, %v1995_v49  ;;  %v2693_v35 = vor.u32 %v2823_v8, %v2692_v53  ;;  %v2697_v7 = vor.u32 %v2822_v10, %v2694_v58 }
 0x1bf   :  { %2282 = vst [vmem:[%s4228_s5 + $0x10] sm:$0xff] %v2218_v42  ;;  %v1539_v6 = vpop.f32.mrf.mxu2 }
 0x1c0   :  { %2285 = vst [vmem:[%s4228_s5 + $0x28] sm:$0xff] %v2221_v39  ;;  %v1628_v42 = vpop.f32.mrf.mxu3  ;;  %v1364_v45 = vpop.f32.mrf.mxu0 }
 0x1c1   :  { %2058 = vst [vmem:[%s4229_s4 + $0x10] sm:$0xff] %v2026_v40  ;;  %v1629_v39 = vadd.f32 %v1628_v42, %v1539_v6  ;;  %v1453_v44 = vpop.f32.mrf.mxu1  ;;  %v2825_v42 = vld [vmem:[%s4226_s1 + $0xb4] sm:$0xf0] }
 0x1c2   :  { %v1454_v30 = vadd.f32 %v1453_v44, %v1364_v45 }
 0x1c3   :  { %v1963_v29 = vadd.f32 %v1629_v39, %v3300_v34  ;;  %1403 = vmatmul.bf16.gmra.mxu0 %v2693_v35 }
 0x1c4   :  { %v1996_v62 = vadd.f32 %v1454_v30, %v3318_v0  ;;  %1492 = vmatmul.bf16.gmra.mxu1 %v2697_v7  ;;  %1581 = vmatmul.bf16.gmra.mxu2 %v2693_v35 }
 0x1c5   :  { %v2027_v41 = vpack.c.bf16 %v1995_v49, %v1963_v29  ;;  %1670 = vmatmul.bf16.gmra.mxu3 %v2697_v7  ;;  %v2824_v7 = vld [vmem:[%s4226_s1 + $0xb4] sm:$0xf] }
 0x1c6   :  { %v2161_v53 = vmul.f32 0.33333334, %v1996_v62 }
 0x1c7   :  { %v2092_v43 = vld [vmem:[%s4227_s3 + $0x20] sm:$0xff]  ;;  %v2095_v13 = vld [vmem:[%s4227_s3 + $0x38] sm:$0xff]  ;;  %2059 = vst [vmem:[%s4229_s4 + $0x18] sm:$0xff] %v2027_v41  ;;  %v1542_v8 = vpop.f32.mrf.mxu2 }
 0x1c8   :  { %v2220_v50 = vadd.f32 %v2156_v16, %v2092_v43  ;;  %v2223_v59 = vadd.f32 %v2159_v25, %v2095_v13  ;;  %v2158_v43 = vmul.f32 0.33333334, %v1963_v29  ;;  %v1631_v16 = vpop.f32.mrf.mxu3  ;;  %v1366_v10 = vpop.f32.mrf.mxu0 }
 0x1c9   :  { %v1632_v0 = vadd.f32 %v1631_v16, %v1542_v8  ;;  %v1455_v49 = vpop.f32.mrf.mxu1 }
 0x1ca   :  { %2284 = vst [vmem:[%s4228_s5 + $0x20] sm:$0xff] %v2220_v50  ;;  %v1456_v58 = vadd.f32 %v1455_v49, %v1366_v10 }
 0x1cb   :  { %2287 = vst [vmem:[%s4228_s5 + $0x38] sm:$0xff] %v2223_v59  ;;  %v1964_v25 = vadd.f32 %v1632_v0, %v3316_v60  ;;  %v2700_v59 = vld [vmem:[%s4226_s1 + $0xb0] sm:$0xf] }
 0x1cc   :  { %v1997_v6 = vadd.f32 %v1456_v58, %v3334_v18  ;;  %v2702_v18 = vld [vmem:[%s4226_s1 + $0xb8] sm:$0xf0]  ;;  %v2701_v29 = vor.u32 %v2825_v42, %v2700_v59 }
 0x1cd   :  { %v2028_v45 = vpack.c.bf16 %v1996_v62, %v1964_v25  ;;  %v2160_v60 = vmul.f32 0.33333334, %v1964_v25 }
 0x1ce   :  { %v2163_v39 = vmul.f32 0.33333334, %v1997_v6 }
 0x1cf   :  { %2060 = vst [vmem:[%s4229_s4 + $0x20] sm:$0xff] %v2028_v45  ;;  %v1544_v30 = vpop.f32.mrf.mxu2 }
 0x1d0   :  { %v1633_v41 = vpop.f32.mrf.mxu3  ;;  %v1369_v62 = vpop.f32.mrf.mxu0 }
 0x1d2   :  { %v2094_v1 = vld [vmem:[%s4227_s3 + $0x30] sm:$0xff]  ;;  %v2097_v13 = vld [vmem:[%s4227_s3 + $0x48] sm:$0xff] }
 0x1d3   :  { %v2222_v34 = vadd.f32 %v2158_v43, %v2094_v1  ;;  %v2225_v40 = vadd.f32 %v2161_v53, %v2097_v13  ;;  %v2705_v43 = vor.u32 %v2824_v7, %v2702_v18  ;;  %v1634_v13 = vadd.f32 %v1633_v41, %v1544_v30  ;;  %v1458_v53 = vpop.f32.mrf.mxu1  ;;  %1408 = vmatmul.bf16.gmra.mxu0 %v2701_v29 }
 0x1d4   :  { %1586 = vmatmul.bf16.gmra.mxu2 %v2701_v29  ;;  %v2826_v29 = vld [vmem:[%s4226_s1 + $0xc4] sm:$0xf] }
 0x1d5   :  { %2286 = vst [vmem:[%s4228_s5 + $0x30] sm:$0xff] %v2222_v34  ;;  %v1459_v34 = vadd.f32 %v1458_v53, %v1369_v62  ;;  %v1965_v8 = vadd.f32 %v1634_v13, %v3320_v2  ;;  %1497 = vmatmul.bf16.gmra.mxu1 %v2705_v43  ;;  %1675 = vmatmul.bf16.gmra.mxu3 %v2705_v43 }
 0x1d6   :  { %2289 = vst [vmem:[%s4228_s5 + $0x48] sm:$0xff] %v2225_v40 }
 0x1d7   :  { %v1998_v16 = vadd.f32 %v1459_v34, %v3338_v26  ;;  %v2029_v10 = vpack.c.bf16 %v1997_v6, %v1965_v8  ;;  %v2162_v0 = vmul.f32 0.33333334, %v1965_v8  ;;  %v1547_v25 = vpop.f32.mrf.mxu2 }
 0x1d8   :  { %v1371_v59 = vpop.f32.mrf.mxu0 }
 0x1d9   :  { %v2165_v58 = vmul.f32 0.33333334, %v1998_v16  ;;  %2061 = vst [vmem:[%s4229_s4 + $0x28] sm:$0xff] %v2029_v10 }
 0x1db   :  { %v1460_v6 = vpop.f32.mrf.mxu1 }
 0x1dc   :  { %v1461_v42 = vadd.f32 %v1460_v6, %v1371_v59 }
 0x1dd   :  { %v2096_v50 = vld [vmem:[%s4227_s3 + $0x40] sm:$0xff]  ;;  %v2099_v35 = vld [vmem:[%s4227_s3 + $0x58] sm:$0xff] }
 0x1de   :  { %v2224_v44 = vadd.f32 %v2160_v60, %v2096_v50  ;;  %v2227_v1 = vadd.f32 %v2163_v39, %v2099_v35  ;;  %v1636_v35 = vpop.f32.mrf.mxu3  ;;  %v1999_v7 = vadd.f32 %v1461_v42, %v3354_v48  ;;  %v2708_v39 = vld [vmem:[%s4226_s1 + $0xc0] sm:$0xf]  ;;  %v2710_v48 = vld [vmem:[%s4226_s1 + $0xc8] sm:$0xf0] }
 0x1df   :  { %v1637_v26 = vadd.f32 %v1636_v35, %v1547_v25  ;;  %v1549_v62 = vpop.f32.mrf.mxu2  ;;  %v2713_v8 = vor.u32 %v2826_v29, %v2710_v48  ;;  %v2828_v48 = vld [vmem:[%s4226_s1 + $0xd4] sm:$0xf] }
 0x1e0   :  { %2288 = vst [vmem:[%s4228_s5 + $0x40] sm:$0xff] %v2224_v44  ;;  %v2827_v44 = vld [vmem:[%s4226_s1 + $0xc4] sm:$0xf0]  ;;  %v1374_v34 = vpop.f32.mrf.mxu0 }
 0x1e1   :  { %2291 = vst [vmem:[%s4228_s5 + $0x58] sm:$0xff] %v2227_v1  ;;  %v1966_v45 = vadd.f32 %v1637_v26, %v3336_v20  ;;  %v2167_v1 = vmul.f32 0.33333334, %v1999_v7  ;;  %v2709_v43 = vor.u32 %v2827_v44, %v2708_v39 }
 0x1e3   :  { %v2030_v30 = vpack.c.bf16 %v1998_v16, %v1966_v45  ;;  %v2164_v20 = vmul.f32 0.33333334, %v1966_v45  ;;  %v1463_v16 = vpop.f32.mrf.mxu1  ;;  %1413 = vmatmul.bf16.gmra.mxu0 %v2709_v43 }
 0x1e4   :  { %v1464_v10 = vadd.f32 %v1463_v16, %v1374_v34  ;;  %1591 = vmatmul.bf16.gmra.mxu2 %v2709_v43 }
 0x1e5   :  { %2062 = vst [vmem:[%s4229_s4 + $0x30] sm:$0xff] %v2030_v30  ;;  %1502 = vmatmul.bf16.gmra.mxu1 %v2713_v8  ;;  %1680 = vmatmul.bf16.gmra.mxu3 %v2713_v8  ;;  %v2716_v30 = vld [vmem:[%s4226_s1 + $0xd0] sm:$0xf] }
 0x1e6   :  { %v1638_v53 = vpop.f32.mrf.mxu3 }
 0x1e7   :  { %v1552_v59 = vpop.f32.mrf.mxu2 }
 0x1e8   :  { %v2098_v40 = vld [vmem:[%s4227_s3 + $0x50] sm:$0xff]  ;;  %v2101_v49 = vld [vmem:[%s4227_s3 + $0x68] sm:$0xff]  ;;  %v1376_v42 = vpop.f32.mrf.mxu0 }
 0x1e9   :  { %v2226_v2 = vadd.f32 %v2162_v0, %v2098_v40  ;;  %v2229_v50 = vadd.f32 %v2165_v58, %v2101_v49  ;;  %v1639_v40 = vadd.f32 %v1638_v53, %v1549_v62  ;;  %v2000_v58 = vadd.f32 %v1464_v10, %v3358_v3 }
 0x1eb   :  { %2290 = vst [vmem:[%s4228_s5 + $0x50] sm:$0xff] %v2226_v2  ;;  %v1967_v0 = vadd.f32 %v1639_v40, %v3340_v28  ;;  %v2169_v35 = vmul.f32 0.33333334, %v2000_v58  ;;  %v1465_v45 = vpop.f32.mrf.mxu1 }
 0x1ec   :  { %2293 = vst [vmem:[%s4228_s5 + $0x68] sm:$0xff] %v2229_v50 }
 0x1ed   :  { %v2031_v2 = vpack.c.bf16 %v1999_v7, %v1967_v0  ;;  %v2166_v25 = vmul.f32 0.33333334, %v1967_v0 }
 0x1ee   :  { %v1641_v6 = vpop.f32.mrf.mxu3 }
 0x1ef   :  { %2063 = vst [vmem:[%s4229_s4 + $0x38] sm:$0xff] %v2031_v2  ;;  %v1642_v3 = vadd.f32 %v1641_v6, %v1552_v59  ;;  %v1554_v62 = vpop.f32.mrf.mxu2 }
 0x1f0   :  { %v1379_v34 = vpop.f32.mrf.mxu0 }
 0x1f1   :  { %v1968_v7 = vadd.f32 %v1642_v3, %v3356_v51 }
 0x1f3   :  { %v2100_v60 = vld [vmem:[%s4227_s3 + $0x60] sm:$0xff]  ;;  %v2103_v18 = vld [vmem:[%s4227_s3 + $0x78] sm:$0xff]  ;;  %v2032_v29 = vpack.c.bf16 %v2000_v58, %v1968_v7  ;;  %v2168_v51 = vmul.f32 0.33333334, %v1968_v7  ;;  %v1468_v16 = vpop.f32.mrf.mxu1 }
 0x1f4   :  { %v2228_v41 = vadd.f32 %v2164_v20, %v2100_v60  ;;  %v2231_v13 = vadd.f32 %v2167_v1, %v2103_v18  ;;  %v1466_v60 = vadd.f32 %v1465_v45, %v1376_v42  ;;  %v2829_v20 = vld [vmem:[%s4226_s1 + $0xd4] sm:$0xf0]  ;;  %v1469_v10 = vadd.f32 %v1468_v16, %v1379_v34 }
 0x1f5   :  { %2064 = vst [vmem:[%s4229_s4 + $0x40] sm:$0xff] %v2032_v29  ;;  %v2717_v43 = vor.u32 %v2829_v20, %v2716_v30  ;;  %v2830_v20 = vld [vmem:[%s4226_s1 + $0xe4] sm:$0xf] }
 0x1f6   :  { %2292 = vst [vmem:[%s4228_s5 + $0x60] sm:$0xff] %v2228_v41  ;;  %v2001_v39 = vadd.f32 %v1466_v60, %v3374_v55  ;;  %v2718_v55 = vld [vmem:[%s4226_s1 + $0xd8] sm:$0xf0]  ;;  %v1643_v53 = vpop.f32.mrf.mxu3  ;;  %v2002_v58 = vadd.f32 %v1469_v10, %v3378_v63 }
 0x1f7   :  { %2295 = vst [vmem:[%s4228_s5 + $0x78] sm:$0xff] %v2231_v13  ;;  %v2721_v8 = vor.u32 %v2828_v48, %v2718_v55  ;;  %v1644_v40 = vadd.f32 %v1643_v53, %v1554_v62  ;;  %1418 = vmatmul.bf16.gmra.mxu0 %v2717_v43  ;;  %1596 = vmatmul.bf16.gmra.mxu2 %v2717_v43 }
 0x1f8   :  { %v2171_v1 = vmul.f32 0.33333334, %v2001_v39  ;;  %v1381_v6 = vpop.f32.mrf.mxu0 }
 0x1f9   :  { %v1969_v0 = vadd.f32 %v1644_v40, %v3360_v17  ;;  %1507 = vmatmul.bf16.gmra.mxu1 %v2721_v8  ;;  %1685 = vmatmul.bf16.gmra.mxu3 %v2721_v8 }
 0x1fb   :  { %v2033_v2 = vpack.c.bf16 %v2001_v39, %v1969_v0  ;;  %v1470_v42 = vpop.f32.mrf.mxu1  ;;  %v2724_v39 = vld [vmem:[%s4226_s1 + $0xe0] sm:$0xf] }
 0x1fc   :  { %v1471_v3 = vadd.f32 %v1470_v42, %v1381_v6  ;;  %v2732_v42 = vld [vmem:[%s4226_s1 + $0xf0] sm:$0xf] }
 0x1fd   :  { %2065 = vst [vmem:[%s4229_s4 + $0x48] sm:$0xff] %v2033_v2 }
 0x1fe   :  { %v2102_v49 = vld [vmem:[%s4227_s3 + $0x70] sm:$0xff]  ;;  %v2105_v50 = vld [vmem:[%s4227_s3 + $0x88] sm:$0xff]  ;;  %v2003_v7 = vadd.f32 %v1471_v3, %v3394_v22  ;;  %v2833_v3 = vld [vmem:[%s4226_s1 + $0xf4] sm:$0xf0] }
 0x1ff   :  { %v2230_v28 = vadd.f32 %v2166_v25, %v2102_v49  ;;  %v2233_v26 = vadd.f32 %v2169_v35, %v2105_v50  ;;  %v2170_v25 = vmul.f32 0.33333334, %v1969_v0  ;;  %v2173_v35 = vmul.f32 0.33333334, %v2002_v58  ;;  %v2726_v22 = vld [vmem:[%s4226_s1 + $0xe8] sm:$0xf0] }
 0x200   :  { %v2175_v29 = vmul.f32 0.33333334, %v2003_v7  ;;  %v1384_v62 = vpop.f32.mrf.mxu0  ;;  %v2729_v43 = vor.u32 %v2830_v20, %v2726_v22 }
 0x201   :  { %2294 = vst [vmem:[%s4228_s5 + $0x70] sm:$0xff] %v2230_v28  ;;  %v1557_v28 = vpop.f32.mrf.mxu2 }
 0x202   :  { %2297 = vst [vmem:[%s4228_s5 + $0x88] sm:$0xff] %v2233_v26  ;;  %v1646_v26 = vpop.f32.mrf.mxu3 }
 0x203   :  { %v1647_v63 = vadd.f32 %v1646_v26, %v1557_v28  ;;  %v1473_v53 = vpop.f32.mrf.mxu1 }
 0x204   :  { %v1474_v34 = vadd.f32 %v1473_v53, %v1384_v62 }
 0x205   :  { %v1970_v45 = vadd.f32 %v1647_v63, %v3376_v57 }
 0x206   :  { %v2004_v16 = vadd.f32 %v1474_v34, %v3398_v32 }
 0x207   :  { %v2034_v30 = vpack.c.bf16 %v2002_v58, %v1970_v45  ;;  %v2172_v57 = vmul.f32 0.33333334, %v1970_v45 }
 0x208   :  { %v2177_v58 = vmul.f32 0.33333334, %v2004_v16 }
 0x209   :  { %v2104_v18 = vld [vmem:[%s4227_s3 + $0x80] sm:$0xff]  ;;  %v2107_v44 = vld [vmem:[%s4227_s3 + $0x98] sm:$0xff]  ;;  %2066 = vst [vmem:[%s4229_s4 + $0x50] sm:$0xff] %v2034_v30  ;;  %v1559_v48 = vpop.f32.mrf.mxu2  ;;  %1512 = vmatmul.bf16.gmra.mxu1 %v2729_v43  ;;  %1690 = vmatmul.bf16.gmra.mxu3 %v2729_v43 }
 0x20a   :  { %v2232_v41 = vadd.f32 %v2168_v51, %v2104_v18  ;;  %v2235_v13 = vadd.f32 %v2171_v1, %v2107_v44  ;;  %v2831_v44 = vld [vmem:[%s4226_s1 + $0xe4] sm:$0xf0] }
 0x20b   :  { %v2725_v55 = vor.u32 %v2831_v44, %v2724_v39  ;;  %v2733_v44 = vor.u32 %v2833_v3, %v2732_v42 }
 0x20c   :  { %2296 = vst [vmem:[%s4228_s5 + $0x80] sm:$0xff] %v2232_v41  ;;  %v1648_v41 = vpop.f32.mrf.mxu3 }
 0x20d   :  { %2299 = vst [vmem:[%s4228_s5 + $0x98] sm:$0xff] %v2235_v13  ;;  %v1649_v13 = vadd.f32 %v1648_v41, %v1559_v48  ;;  %1423 = vmatmul.bf16.gmra.mxu0 %v2725_v55  ;;  %1601 = vmatmul.bf16.gmra.mxu2 %v2725_v55 }
 0x20f   :  { %v1971_v8 = vadd.f32 %v1649_v13, %v3380_v4 }
 0x211   :  { %v2035_v10 = vpack.c.bf16 %v2003_v7, %v1971_v8  ;;  %v2174_v0 = vmul.f32 0.33333334, %v1971_v8  ;;  %v1562_v2 = vpop.f32.mrf.mxu2 }
 0x213   :  { %2067 = vst [vmem:[%s4229_s4 + $0x58] sm:$0xff] %v2035_v10 }
 0x214   :  { %v2106_v49 = vld [vmem:[%s4227_s3 + $0x90] sm:$0xff]  ;;  %v2109_v50 = vld [vmem:[%s4227_s3 + $0xa8] sm:$0xff] }
 0x215   :  { %v2234_v17 = vadd.f32 %v2170_v25, %v2106_v49  ;;  %v2237_v59 = vadd.f32 %v2173_v35, %v2109_v50  ;;  %v1651_v50 = vpop.f32.mrf.mxu3  ;;  %v1386_v35 = vpop.f32.mrf.mxu0 }
 0x216   :  { %v1652_v32 = vadd.f32 %v1651_v50, %v1562_v2 }
 0x217   :  { %2298 = vst [vmem:[%s4228_s5 + $0x90] sm:$0xff] %v2234_v17  ;;  %v1475_v17 = vpop.f32.mrf.mxu1 }
 0x218   :  { %2301 = vst [vmem:[%s4228_s5 + $0xa8] sm:$0xff] %v2237_v59  ;;  %v1476_v28 = vadd.f32 %v1475_v17, %v1386_v35  ;;  %v1972_v59 = vadd.f32 %v1652_v32, %v3396_v24 }
 0x219   :  { %v1564_v39 = vpop.f32.mrf.mxu2 }
 0x21a   :  { %v2005_v6 = vadd.f32 %v1476_v28, %v3414_v21  ;;  %v2036_v45 = vpack.c.bf16 %v2004_v16, %v1972_v59  ;;  %v2176_v24 = vmul.f32 0.33333334, %v1972_v59  ;;  %v2734_v21 = vld [vmem:[%s4226_s1 + $0xf8] sm:$0xf0] }
 0x21c   :  { %v2179_v7 = vmul.f32 0.33333334, %v2005_v6  ;;  %2068 = vst [vmem:[%s4229_s4 + $0x60] sm:$0xff] %v2036_v45 }
 0x21d   :  { %v1389_v20 = vpop.f32.mrf.mxu0  ;;  %1428 = vmatmul.bf16.gmra.mxu0 %v2733_v44  ;;  %1606 = vmatmul.bf16.gmra.mxu2 %v2733_v44 }
 0x21f   :  { %v2108_v60 = vld [vmem:[%s4227_s3 + $0xa0] sm:$0xff]  ;;  %v2111_v18 = vld [vmem:[%s4227_s3 + $0xb8] sm:$0xff] }
 0x220   :  { %v2236_v51 = vadd.f32 %v2172_v57, %v2108_v60  ;;  %v2239_v1 = vadd.f32 %v2175_v29, %v2111_v18  ;;  %v2832_v60 = vld [vmem:[%s4226_s1 + $0xf4] sm:$0xf]  ;;  %v1653_v57 = vpop.f32.mrf.mxu3 }
 0x221   :  { %v2737_v22 = vor.u32 %v2832_v60, %v2734_v21  ;;  %v1654_v29 = vadd.f32 %v1653_v57, %v1564_v39  ;;  %v1567_v34 = vpop.f32.mrf.mxu2 }
 0x222   :  { %2300 = vst [vmem:[%s4228_s5 + $0xa0] sm:$0xff] %v2236_v51  ;;  %v1478_v51 = vpop.f32.mrf.mxu1 }
 0x223   :  { %2303 = vst [vmem:[%s4228_s5 + $0xb8] sm:$0xff] %v2239_v1  ;;  %v1479_v48 = vadd.f32 %v1478_v51, %v1389_v20  ;;  %v1973_v55 = vadd.f32 %v1654_v29, %v3400_v37  ;;  %1517 = vmatmul.bf16.gmra.mxu1 %v2737_v22  ;;  %1695 = vmatmul.bf16.gmra.mxu3 %v2737_v22 }
 0x225   :  { %v2006_v41 = vadd.f32 %v1479_v48, %v3418_v46  ;;  %v2037_v62 = vpack.c.bf16 %v2005_v6, %v1973_v55  ;;  %v2178_v43 = vmul.f32 0.33333334, %v1973_v55  ;;  %v1391_v16 = vpop.f32.mrf.mxu0 }
 0x227   :  { %v2181_v53 = vmul.f32 0.33333334, %v2006_v41  ;;  %2069 = vst [vmem:[%s4229_s4 + $0x68] sm:$0xff] %v2037_v62 }
 0x229   :  { %v1569_v17 = vpop.f32.mrf.mxu2 }
 0x22a   :  { %v2110_v40 = vld [vmem:[%s4227_s3 + $0xb0] sm:$0xff]  ;;  %v2113_v49 = vld [vmem:[%s4227_s3 + $0xc8] sm:$0xff]  ;;  %v1480_v10 = vpop.f32.mrf.mxu1 }
 0x22b   :  { %v2238_v4 = vadd.f32 %v2174_v0, %v2110_v40  ;;  %v2241_v25 = vadd.f32 %v2177_v58, %v2113_v49  ;;  %v1656_v40 = vpop.f32.mrf.mxu3  ;;  %v1481_v0 = vadd.f32 %v1480_v10, %v1391_v16 }
 0x22c   :  { %v1657_v46 = vadd.f32 %v1656_v40, %v1567_v34 }
 0x22d   :  { %2302 = vst [vmem:[%s4228_s5 + $0xb0] sm:$0xff] %v2238_v4  ;;  %v2007_v4 = vadd.f32 %v1481_v0, %v3434_v11  ;;  %v1394_v59 = vpop.f32.mrf.mxu0 }
 0x22e   :  { %2305 = vst [vmem:[%s4228_s5 + $0xc8] sm:$0xff] %v2241_v25  ;;  %v1974_v49 = vadd.f32 %v1657_v46, %v3416_v33 }
 0x22f   :  { %v2183_v35 = vmul.f32 0.33333334, %v2007_v4 }
 0x230   :  { %v2038_v2 = vpack.c.bf16 %v2006_v41, %v1974_v49  ;;  %v2180_v25 = vmul.f32 0.33333334, %v1974_v49 }
 0x232   :  { %2070 = vst [vmem:[%s4229_s4 + $0x70] sm:$0xff] %v2038_v2 }
 0x233   :  { %v1658_v28 = vpop.f32.mrf.mxu3 }
 0x234   :  { %v1659_v11 = vadd.f32 %v1658_v28, %v1569_v17 }
 0x235   :  { %v2112_v26 = vld [vmem:[%s4227_s3 + $0xc0] sm:$0xff]  ;;  %v2115_v63 = vld [vmem:[%s4227_s3 + $0xd8] sm:$0xff]  ;;  %v1396_v44 = vpop.f32.mrf.mxu0 }
 0x236   :  { %v2240_v18 = vadd.f32 %v2176_v24, %v2112_v26  ;;  %v2243_v30 = vadd.f32 %v2179_v7, %v2115_v63  ;;  %v1483_v26 = vpop.f32.mrf.mxu1  ;;  %v1975_v63 = vadd.f32 %v1659_v11, %v3420_v54 }
 0x237   :  { %v1484_v6 = vadd.f32 %v1483_v26, %v1394_v59 }
 0x238   :  { %2304 = vst [vmem:[%s4228_s5 + $0xc0] sm:$0xff] %v2240_v18  ;;  %v2039_v45 = vpack.c.bf16 %v2007_v4, %v1975_v63  ;;  %v2182_v24 = vmul.f32 0.33333334, %v1975_v63  ;;  %v1572_v18 = vpop.f32.mrf.mxu2 }
 0x239   :  { %2307 = vst [vmem:[%s4228_s5 + $0xd8] sm:$0xff] %v2243_v30  ;;  %v2008_v3 = vadd.f32 %v1484_v6, %v3438_v27 }
 0x23a   :  { %2071 = vst [vmem:[%s4229_s4 + $0x78] sm:$0xff] %v2039_v45 }
 0x23b   :  { %v2185_v21 = vmul.f32 0.33333334, %v2008_v3  ;;  %v1661_v39 = vpop.f32.mrf.mxu3 }
 0x23c   :  { %v1662_v27 = vadd.f32 %v1661_v39, %v1572_v18 }
 0x23e   :  { %v1485_v30 = vpop.f32.mrf.mxu1  ;;  %v1976_v20 = vadd.f32 %v1662_v27, %v3436_v14 }
 0x23f   :  { %v1486_v57 = vadd.f32 %v1485_v30, %v1396_v44 }
 0x240   :  { %v2114_v1 = vld [vmem:[%s4227_s3 + $0xd0] sm:$0xff]  ;;  %v2117_v13 = vld [vmem:[%s4227_s3 + $0xe8] sm:$0xff]  ;;  %v2040_v51 = vpack.c.bf16 %v2008_v3, %v1976_v20  ;;  %v2184_v48 = vmul.f32 0.33333334, %v1976_v20  ;;  %v1574_v62 = vpop.f32.mrf.mxu2 }
 0x241   :  { %v2242_v37 = vadd.f32 %v2178_v43, %v2114_v1  ;;  %v2245_v8 = vadd.f32 %v2181_v53, %v2117_v13  ;;  %v2009_v29 = vadd.f32 %v1486_v57, %v3454_v12  ;;  %v1399_v13 = vpop.f32.mrf.mxu0 }
 0x242   :  { %2072 = vst [vmem:[%s4229_s4 + $0x80] sm:$0xff] %v2040_v51 }
 0x243   :  { %2306 = vst [vmem:[%s4228_s5 + $0xd0] sm:$0xff] %v2242_v37  ;;  %v2187_v1 = vmul.f32 0.33333334, %v2009_v29  ;;  %v1663_v43 = vpop.f32.mrf.mxu3 }
 0x244   :  { %2309 = vst [vmem:[%s4228_s5 + $0xe8] sm:$0xff] %v2245_v8  ;;  %v1664_v12 = vadd.f32 %v1663_v43, %v1574_v62 }
 0x246   :  { %v1488_v53 = vpop.f32.mrf.mxu1  ;;  %v1977_v34 = vadd.f32 %v1664_v12, %v3440_v31 }
 0x247   :  { %v1489_v37 = vadd.f32 %v1488_v53, %v1399_v13 }
 0x248   :  { %v2041_v16 = vpack.c.bf16 %v2009_v29, %v1977_v34  ;;  %v2186_v46 = vmul.f32 0.33333334, %v1977_v34 }
 0x249   :  { %v2010_v40 = vadd.f32 %v1489_v37, %v3458_v56  ;;  %v1401_v2 = vpop.f32.mrf.mxu0 }
 0x24a   :  { %2073 = vst [vmem:[%s4229_s4 + $0x88] sm:$0xff] %v2041_v16 }
 0x24b   :  { %v2116_v58 = vld [vmem:[%s4227_s3 + $0xe0] sm:$0xff]  ;;  %v2119_v50 = vld [vmem:[%s4227_s3 + $0xf8] sm:$0xff]  ;;  %v2189_v0 = vmul.f32 0.33333334, %v2010_v40  ;;  %v1666_v4 = vpop.f32.mrf.mxu3 }
 0x24c   :  { %v2244_v32 = vadd.f32 %v2180_v25, %v2116_v58  ;;  %v2247_v33 = vadd.f32 %v2183_v35, %v2119_v50  ;;  %v1577_v58 = vpop.f32.mrf.mxu2 }
 0x24d   :  { %v1667_v56 = vadd.f32 %v1666_v4, %v1577_v58 }
 0x24e   :  { %2308 = vst [vmem:[%s4228_s5 + $0xe0] sm:$0xff] %v2244_v32  ;;  %v1490_v25 = vpop.f32.mrf.mxu1 }
 0x24f   :  { %2311 = vst [vmem:[%s4228_s5 + $0xf8] sm:$0xff] %v2247_v33  ;;  %v1491_v50 = vadd.f32 %v1490_v25, %v1401_v2  ;;  %v1978_v35 = vadd.f32 %v1667_v56, %v3456_v38 }
 0x251   :  { %v2011_v17 = vadd.f32 %v1491_v50, %v3474_v23  ;;  %v2042_v33 = vpack.c.bf16 %v2010_v40, %v1978_v35  ;;  %v2188_v28 = vmul.f32 0.33333334, %v1978_v35  ;;  %v4247_v35 = vld [vmem:[#allocation5_spill] sm:$0xff] }
 0x253   :  { %v2191_v11 = vmul.f32 0.33333334, %v2011_v17  ;;  %2074 = vst [vmem:[%s4229_s4 + $0x90] sm:$0xff] %v2042_v33  ;;  %v1668_v63 = vpop.f32.mrf.mxu3 }
 0x254   :  { %v1579_v6 = vpop.f32.mrf.mxu2 }
 0x255   :  { %v1669_v23 = vadd.f32 %v1668_v63, %v1579_v6 }
 0x256   :  { %v2118_v42 = vld [vmem:[%s4227_s3 + $0xf0] sm:$0xff]  ;;  %v2121_v60 = vld [vmem:[%s4227_s3 + $0x108] sm:$0xff]  ;;  %v1493_v3 = vpop.f32.mrf.mxu1 }
 0x257   :  { %v2246_v7 = vadd.f32 %v2182_v24, %v2118_v42  ;;  %v2249_v54 = vadd.f32 %v2185_v21, %v2121_v60  ;;  %v1404_v42 = vpop.f32.mrf.mxu0  ;;  %v1979_v24 = vadd.f32 %v1669_v23, %v3460_v61 }
 0x258   :  { %v1494_v45 = vadd.f32 %v1493_v3, %v1404_v42  ;;  %v4248_v3 = vld [vmem:[#allocation4_spill] sm:$0xff] }
 0x259   :  { %2310 = vst [vmem:[%s4228_s5 + $0xf0] sm:$0xff] %v2246_v7  ;;  %v2043_v7 = vpack.c.bf16 %v2011_v17, %v1979_v24  ;;  %v2190_v18 = vmul.f32 0.33333334, %v1979_v24 }
 0x25a   :  { %2313 = vst [vmem:[%s4228_s5 + $0x108] sm:$0xff] %v2249_v54  ;;  %v2012_v21 = vadd.f32 %v1494_v45, %v3478_v47 }
 0x25b   :  { %2075 = vst [vmem:[%s4229_s4 + $0x98] sm:$0xff] %v2043_v7  ;;  %v1671_v30 = vpop.f32.mrf.mxu3 }
 0x25c   :  { %v2193_v39 = vmul.f32 0.33333334, %v2012_v21  ;;  %v1582_v27 = vpop.f32.mrf.mxu2 }
 0x25d   :  { %v1672_v47 = vadd.f32 %v1671_v30, %v1582_v27 }
 0x25e   :  { %v1495_v20 = vpop.f32.mrf.mxu1 }
 0x25f   :  { %v1406_v57 = vpop.f32.mrf.mxu0  ;;  %v1980_v29 = vadd.f32 %v1672_v47, %v3476_v36 }
 0x261   :  { %v2120_v22 = vld [vmem:[%s4227_s3 + $0x100] sm:$0xff]  ;;  %v2123_v55 = vld [vmem:[%s4227_s3 + $0x118] sm:$0xff] }
 0x262   :  { %v2248_v41 = vadd.f32 %v2184_v48, %v2120_v22  ;;  %v2251_v14 = vadd.f32 %v2187_v1, %v2123_v55  ;;  %v1496_v22 = vadd.f32 %v1495_v20, %v1406_v57  ;;  %v2044_v55 = vpack.c.bf16 %v2012_v21, %v1980_v29 }
 0x263   :  { %v2192_v1 = vmul.f32 0.33333334, %v1980_v29  ;;  %v1673_v13 = vpop.f32.mrf.mxu3  ;;  %v4250_v29 = vld [vmem:[#allocation6_spill] sm:$0xff] }
 0x264   :  { %2312 = vst [vmem:[%s4228_s5 + $0x100] sm:$0xff] %v2248_v41  ;;  %v2013_v48 = vadd.f32 %v1496_v22, %v3494_v5  ;;  %v1584_v43 = vpop.f32.mrf.mxu2 }
 0x265   :  { %2315 = vst [vmem:[%s4228_s5 + $0x118] sm:$0xff] %v2251_v14  ;;  %v1674_v5 = vadd.f32 %v1673_v13, %v1584_v43 }
 0x266   :  { %v2195_v62 = vmul.f32 0.33333334, %v2013_v48  ;;  %2076 = vst [vmem:[%s4229_s4 + $0xa0] sm:$0xff] %v2044_v55  ;;  %v1498_v53 = vpop.f32.mrf.mxu1  ;;  %v4251_v55 = vld [vmem:[#allocation9_spill] sm:$0xff] }
 0x267   :  { %v1409_v12 = vpop.f32.mrf.mxu0  ;;  %v1981_v34 = vadd.f32 %v1674_v5, %v3480_v52 }
 0x268   :  { %v1499_v37 = vadd.f32 %v1498_v53, %v1409_v12 }
 0x269   :  { %v2045_v16 = vpack.c.bf16 %v2013_v48, %v1981_v34 }
 0x26a   :  { %v2014_v40 = vadd.f32 %v1499_v37, %v3498_v19 }
 0x26b   :  { %2077 = vst [vmem:[%s4229_s4 + $0xa8] sm:$0xff] %v2045_v16 }
 0x26c   :  { %v2122_v8 = vld [vmem:[%s4227_s3 + $0x110] sm:$0xff]  ;;  %v2125_v10 = vld [vmem:[%s4227_s3 + $0x128] sm:$0xff]  ;;  %v1587_v58 = vpop.f32.mrf.mxu2 }
 0x26d   :  { %v2250_v49 = vadd.f32 %v2186_v46, %v2122_v8  ;;  %v2253_v31 = vadd.f32 %v2189_v0, %v2125_v10  ;;  %v2194_v46 = vmul.f32 0.33333334, %v1981_v34  ;;  %v2197_v0 = vmul.f32 0.33333334, %v2014_v40 }
 0x26e   :  { %v1500_v2 = vpop.f32.mrf.mxu1 }
 0x26f   :  { %2314 = vst [vmem:[%s4228_s5 + $0x110] sm:$0xff] %v2250_v49  ;;  %v1411_v4 = vpop.f32.mrf.mxu0 }
 0x270   :  { %2317 = vst [vmem:[%s4228_s5 + $0x128] sm:$0xff] %v2253_v31  ;;  %v1676_v31 = vpop.f32.mrf.mxu3  ;;  %v1501_v56 = vadd.f32 %v1500_v2, %v1411_v4 }
 0x271   :  { %v1677_v19 = vadd.f32 %v1676_v31, %v1587_v58 }
 0x273   :  { %v1982_v25 = vadd.f32 %v1677_v19, %v3496_v9 }
 0x275   :  { %v2046_v17 = vpack.c.bf16 %v2014_v40, %v1982_v25  ;;  %v2196_v33 = vmul.f32 0.33333334, %v1982_v25  ;;  %v4252_v40 = vld [vmem:[#allocation8_spill] sm:$0xff] }
 0x276   :  { %v1503_v42 = vpop.f32.mrf.mxu1 }
 0x277   :  { %v2124_v32 = vld [vmem:[%s4227_s3 + $0x120] sm:$0xff]  ;;  %v2127_v59 = vld [vmem:[%s4227_s3 + $0x138] sm:$0xff]  ;;  %2078 = vst [vmem:[%s4229_s4 + $0xb0] sm:$0xff] %v2046_v17  ;;  %v4254_v17 = vld [vmem:[#allocation10_spill] sm:$0xff] }
 0x278   :  { %v2252_v26 = vadd.f32 %v2188_v28, %v2124_v32  ;;  %v2255_v38 = vadd.f32 %v2191_v11, %v2127_v59  ;;  %v2015_v32 = vadd.f32 %v1501_v56, %v4247_v35  ;;  %v1678_v6 = vpop.f32.mrf.mxu3 }
 0x27a   :  { %2316 = vst [vmem:[%s4228_s5 + $0x120] sm:$0xff] %v2252_v26  ;;  %v2199_v59 = vmul.f32 0.33333334, %v2015_v32  ;;  %v1589_v26 = vpop.f32.mrf.mxu2 }
 0x27b   :  { %2319 = vst [vmem:[%s4228_s5 + $0x138] sm:$0xff] %v2255_v38  ;;  %v1414_v38 = vpop.f32.mrf.mxu0  ;;  %v1679_v63 = vadd.f32 %v1678_v6, %v1589_v26 }
 0x27c   :  { %v1504_v23 = vadd.f32 %v1503_v42, %v1414_v38 }
 0x27d   :  { %v1983_v45 = vadd.f32 %v1679_v63, %v4248_v3 }
 0x27e   :  { %v1505_v20 = vpop.f32.mrf.mxu1 }
 0x27f   :  { %v2047_v7 = vpack.c.bf16 %v2015_v32, %v1983_v45 }
 0x280   :  { %v1681_v30 = vpop.f32.mrf.mxu3 }
 0x281   :  { %2079 = vst [vmem:[%s4229_s4 + $0xb8] sm:$0xff] %v2047_v7  ;;  %v4256_v7 = vld [vmem:[#allocation12_spill] sm:$0xff] }
 0x282   :  { %v2126_v60 = vld [vmem:[%s4227_s3 + $0x130] sm:$0xff]  ;;  %v2129_v54 = vld [vmem:[%s4227_s3 + $0x148] sm:$0xff]  ;;  %v1592_v27 = vpop.f32.mrf.mxu2 }
 0x283   :  { %v2254_v44 = vadd.f32 %v2190_v18, %v2126_v60  ;;  %v2257_v61 = vadd.f32 %v2193_v39, %v2129_v54  ;;  %v4249_v60 = vld [vmem:[#allocation7_spill] sm:$0xff]  ;;  %v2198_v18 = vmul.f32 0.33333334, %v1983_v45  ;;  %v1416_v57 = vpop.f32.mrf.mxu0  ;;  %v1682_v47 = vadd.f32 %v1681_v30, %v1592_v27 }
 0x284   :  { %v2016_v21 = vadd.f32 %v1504_v23, %v4249_v60  ;;  %v1506_v22 = vadd.f32 %v1505_v20, %v1416_v57 }
 0x285   :  { %2318 = vst [vmem:[%s4228_s5 + $0x130] sm:$0xff] %v2254_v44 }
 0x286   :  { %2321 = vst [vmem:[%s4228_s5 + $0x148] sm:$0xff] %v2257_v61  ;;  %v2201_v39 = vmul.f32 0.33333334, %v2016_v21  ;;  %v1508_v34 = vpop.f32.mrf.mxu1 }
 0x288   :  { %v1683_v5 = vpop.f32.mrf.mxu3 }
 0x28a   :  { %v1594_v13 = vpop.f32.mrf.mxu2 }
 0x28b   :  { %v1419_v53 = vpop.f32.mrf.mxu0  ;;  %v1684_v37 = vadd.f32 %v1683_v5, %v1594_v13 }
 0x28d   :  { %v2128_v51 = vld [vmem:[%s4227_s3 + $0x140] sm:$0xff]  ;;  %v2131_v41 = vld [vmem:[%s4227_s3 + $0x158] sm:$0xff]  ;;  %v1985_v16 = vadd.f32 %v1684_v37, %v4252_v40 }
 0x28e   :  { %v2256_v14 = vadd.f32 %v2192_v1, %v2128_v51  ;;  %v2259_v36 = vadd.f32 %v2195_v62, %v2131_v41  ;;  %v1984_v51 = vadd.f32 %v1682_v47, %v4250_v29  ;;  %v2017_v1 = vadd.f32 %v1506_v22, %v4251_v55  ;;  %v1510_v35 = vpop.f32.mrf.mxu1 }
 0x28f   :  { %v2202_v58 = vmul.f32 0.33333334, %v1985_v16 }
 0x290   :  { %2320 = vst [vmem:[%s4228_s5 + $0x140] sm:$0xff] %v2256_v14  ;;  %v2048_v41 = vpack.c.bf16 %v2016_v21, %v1984_v51  ;;  %v2200_v62 = vmul.f32 0.33333334, %v1984_v51  ;;  %v2203_v43 = vmul.f32 0.33333334, %v2017_v1  ;;  %v1686_v56 = vpop.f32.mrf.mxu3 }
 0x291   :  { %2323 = vst [vmem:[%s4228_s5 + $0x158] sm:$0xff] %v2259_v36 }
 0x292   :  { %2080 = vst [vmem:[%s4229_s4 + $0xc0] sm:$0xff] %v2048_v41  ;;  %v1597_v19 = vpop.f32.mrf.mxu2  ;;  %v4258_v41 = vld [vmem:[#allocation14_spill] sm:$0xff] }
 0x293   :  { %v1421_v25 = vpop.f32.mrf.mxu0 }
 0x294   :  { %v1511_v32 = vadd.f32 %v1510_v35, %v1421_v25 }
 0x296   :  { %v1513_v60 = vpop.f32.mrf.mxu1 }
 0x298   :  { %v2130_v8 = vld [vmem:[%s4227_s3 + $0x150] sm:$0xff]  ;;  %v2133_v10 = vld [vmem:[%s4227_s3 + $0x168] sm:$0xff]  ;;  %v1688_v3 = vpop.f32.mrf.mxu3 }
 0x299   :  { %v2258_v49 = vadd.f32 %v2194_v46, %v2130_v8  ;;  %v2261_v52 = vadd.f32 %v2197_v0, %v2133_v10  ;;  %v1509_v8 = vadd.f32 %v1508_v34, %v1419_v53  ;;  %v4253_v10 = vld [vmem:[#allocation11_spill] sm:$0xff] }
 0x29a   :  { %v1599_v42 = vpop.f32.mrf.mxu2 }
 0x29b   :  { %2322 = vst [vmem:[%s4228_s5 + $0x150] sm:$0xff] %v2258_v49  ;;  %v2018_v0 = vadd.f32 %v1509_v8, %v4253_v10  ;;  %v2049_v49 = vpack.c.bf16 %v2017_v1, %v1985_v16  ;;  %v1424_v45 = vpop.f32.mrf.mxu0  ;;  %v4259_v10 = vld [vmem:[#allocation16_spill] sm:$0xff] }
 0x29c   :  { %2325 = vst [vmem:[%s4228_s5 + $0x168] sm:$0xff] %v2261_v52  ;;  %v1514_v21 = vadd.f32 %v1513_v60, %v1424_v45 }
 0x29d   :  { %v2205_v31 = vmul.f32 0.33333334, %v2018_v0  ;;  %2081 = vst [vmem:[%s4229_s4 + $0xc8] sm:$0xff] %v2049_v49 }
 0x29e   :  { %v1515_v55 = vpop.f32.mrf.mxu1 }
 0x2a0   :  { %v1691_v29 = vpop.f32.mrf.mxu3 }
 0x2a2   :  { %v1602_v20 = vpop.f32.mrf.mxu2 }
 0x2a3   :  { %v2132_v50 = vld [vmem:[%s4227_s3 + $0x160] sm:$0xff]  ;;  %v2135_v28 = vld [vmem:[%s4227_s3 + $0x178] sm:$0xff]  ;;  %v1426_v51 = vpop.f32.mrf.mxu0 }
 0x2a4   :  { %v2260_v11 = vadd.f32 %v2196_v33, %v2132_v50  ;;  %v2263_v9 = vadd.f32 %v2199_v59, %v2135_v28  ;;  %v1687_v50 = vadd.f32 %v1686_v56, %v1597_v19  ;;  %v4255_v59 = vld [vmem:[#allocation13_spill] sm:$0xff]  ;;  %v1516_v1 = vadd.f32 %v1515_v55, %v1426_v51 }
 0x2a6   :  { %2324 = vst [vmem:[%s4228_s5 + $0x160] sm:$0xff] %v2260_v11  ;;  %v1986_v33 = vadd.f32 %v1687_v50, %v4254_v17  ;;  %v2019_v11 = vadd.f32 %v1511_v32, %v4255_v59  ;;  %v1518_v16 = vpop.f32.mrf.mxu1  ;;  %v4261_v59 = vld [vmem:[#allocation17_spill] sm:$0xff] }
 0x2a7   :  { %2327 = vst [vmem:[%s4228_s5 + $0x178] sm:$0xff] %v2263_v9 }
 0x2a8   :  { %v2050_v26 = vpack.c.bf16 %v2018_v0, %v1986_v33  ;;  %v2204_v9 = vmul.f32 0.33333334, %v1986_v33  ;;  %v2207_v38 = vmul.f32 0.33333334, %v2019_v11  ;;  %v1693_v8 = vpop.f32.mrf.mxu3 }
 0x2aa   :  { %2082 = vst [vmem:[%s4229_s4 + $0xd0] sm:$0xff] %v2050_v26  ;;  %v1604_v37 = vpop.f32.mrf.mxu2 }
 0x2ab   :  { %v1429_v40 = vpop.f32.mrf.mxu0 }
 0x2ae   :  { %v2134_v24 = vld [vmem:[%s4227_s3 + $0x170] sm:$0xff]  ;;  %v2137_v54 = vld [vmem:[%s4227_s3 + $0x188] sm:$0xff]  ;;  %v1520_v33 = vpop.f32.mrf.mxu1 }
 0x2af   :  { %v2262_v44 = vadd.f32 %v2198_v18, %v2134_v24  ;;  %v2265_v61 = vadd.f32 %v2201_v39, %v2137_v54  ;;  %v1689_v24 = vadd.f32 %v1688_v3, %v1599_v42  ;;  %v4257_v39 = vld [vmem:[#allocation15_spill] sm:$0xff] }
 0x2b0   :  { %v1696_v35 = vpop.f32.mrf.mxu3 }
 0x2b1   :  { %2326 = vst [vmem:[%s4228_s5 + $0x170] sm:$0xff] %v2262_v44  ;;  %v1987_v18 = vadd.f32 %v1689_v24, %v4256_v7  ;;  %v2020_v44 = vadd.f32 %v1514_v21, %v4257_v39  ;;  %v4263_v7 = vld [vmem:[#allocation19_spill] sm:$0xff] }
 0x2b2   :  { %2329 = vst [vmem:[%s4228_s5 + $0x188] sm:$0xff] %v2265_v61  ;;  %v1607_v25 = vpop.f32.mrf.mxu2 }
 0x2b3   :  { %v2051_v27 = vpack.c.bf16 %v2019_v11, %v1987_v18  ;;  %v2206_v61 = vmul.f32 0.33333334, %v1987_v18  ;;  %v2209_v57 = vmul.f32 0.33333334, %v2020_v44  ;;  %v1431_v32 = vpop.f32.mrf.mxu0  ;;  %v1697_v17 = vadd.f32 %v1696_v35, %v1607_v25 }
 0x2b5   :  { %2083 = vst [vmem:[%s4229_s4 + $0xd8] sm:$0xff] %v2051_v27  ;;  %v1990_v11 = vadd.f32 %v1697_v17, %v4261_v59 }
 0x2b8   :  { %v1698_v60 = vpop.f32.mrf.mxu3 }
 0x2b9   :  { %v2136_v48 = vld [vmem:[%s4227_s3 + $0x180] sm:$0xff]  ;;  %v2139_v14 = vld [vmem:[%s4227_s3 + $0x198] sm:$0xff] }
 0x2ba   :  { %v2264_v36 = vadd.f32 %v2200_v62, %v2136_v48  ;;  %v2267_v12 = vadd.f32 %v2203_v43, %v2139_v14  ;;  %v1692_v48 = vadd.f32 %v1691_v29, %v1602_v20  ;;  %v2021_v43 = vadd.f32 %v1516_v1, %v3574_v15  ;;  %v1609_v45 = vpop.f32.mrf.mxu2 }
 0x2bb   :  { %v1694_v15 = vadd.f32 %v1693_v8, %v1604_v37  ;;  %v1699_v21 = vadd.f32 %v1698_v60, %v1609_v45 }
 0x2bc   :  { %2328 = vst [vmem:[%s4228_s5 + $0x180] sm:$0xff] %v2264_v36  ;;  %v1988_v62 = vadd.f32 %v1692_v48, %v4258_v41  ;;  %v2211_v5 = vmul.f32 0.33333334, %v2021_v43 }
 0x2bd   :  { %2331 = vst [vmem:[%s4228_s5 + $0x198] sm:$0xff] %v2267_v12  ;;  %v1989_v0 = vadd.f32 %v1694_v15, %v4259_v10  ;;  %v1991_v18 = vadd.f32 %v1699_v21, %v4263_v7 }
 0x2be   :  { %v2052_v36 = vpack.c.bf16 %v2020_v44, %v1988_v62  ;;  %v2208_v13 = vmul.f32 0.33333334, %v1988_v62 }
 0x2bf   :  { %v2214_v44 = vmul.f32 0.33333334, %v1991_v18 }
 0x2c0   :  { %2084 = vst [vmem:[%s4229_s4 + $0xe0] sm:$0xff] %v2052_v36 }
 0x2c4   :  { %v2138_v46 = vld [vmem:[%s4227_s3 + $0x190] sm:$0xff]  ;;  %v2141_v52 = vld [vmem:[%s4227_s3 + $0x1a8] sm:$0xff] }
 0x2c5   :  { %v2266_v4 = vadd.f32 %v2202_v58, %v2138_v46  ;;  %v2269_v2 = vadd.f32 %v2205_v31, %v2141_v52  ;;  %v1519_v46 = vadd.f32 %v1518_v16, %v1429_v40  ;;  %v4260_v58 = vld [vmem:[#allocation18_spill] sm:$0xff]  ;;  %v2053_v31 = vpack.c.bf16 %v2021_v43, %v1989_v0 }
 0x2c7   :  { %2330 = vst [vmem:[%s4228_s5 + $0x190] sm:$0xff] %v2266_v4  ;;  %v2022_v52 = vadd.f32 %v1519_v46, %v4260_v58  ;;  %v2210_v4 = vmul.f32 0.33333334, %v1989_v0 }
 0x2c8   :  { %2333 = vst [vmem:[%s4228_s5 + $0x1a8] sm:$0xff] %v2269_v2 }
 0x2c9   :  { %v2213_v2 = vmul.f32 0.33333334, %v2022_v52  ;;  %2085 = vst [vmem:[%s4229_s4 + $0xe8] sm:$0xff] %v2053_v31 }
 0x2cf   :  { %v2140_v28 = vld [vmem:[%s4227_s3 + $0x1a0] sm:$0xff]  ;;  %v2143_v6 = vld [vmem:[%s4227_s3 + $0x1b8] sm:$0xff] }
 0x2d0   :  { %v2268_v63 = vadd.f32 %v2204_v9, %v2140_v28  ;;  %v2271_v23 = vadd.f32 %v2207_v38, %v2143_v6  ;;  %v1521_v28 = vadd.f32 %v1520_v33, %v1431_v32  ;;  %v4262_v9 = vld [vmem:[#allocation20_spill] sm:$0xff]  ;;  %v2054_v38 = vpack.c.bf16 %v2022_v52, %v1990_v11 }
 0x2d2   :  { %2332 = vst [vmem:[%s4228_s5 + $0x1a0] sm:$0xff] %v2268_v63  ;;  %v2023_v6 = vadd.f32 %v1521_v28, %v4262_v9  ;;  %v2212_v63 = vmul.f32 0.33333334, %v1990_v11 }
 0x2d3   :  { %2335 = vst [vmem:[%s4228_s5 + $0x1b8] sm:$0xff] %v2271_v23 }
 0x2d4   :  { %v2215_v23 = vmul.f32 0.33333334, %v2023_v6  ;;  %2086 = vst [vmem:[%s4229_s4 + $0xf0] sm:$0xff] %v2054_v38  ;;  %v2055_v39 = vpack.c.bf16 %v2023_v6, %v1991_v18 }
 0x2d6   :  { %2087 = vst [vmem:[%s4229_s4 + $0xf8] sm:$0xff] %v2055_v39 }
 0x2da   :  { %v2142_v54 = vld [vmem:[%s4227_s3 + $0x1b0] sm:$0xff]  ;;  %v2145_v30 = vld [vmem:[%s4227_s3 + $0x1c8] sm:$0xff] }
 0x2db   :  { %v2270_v47 = vadd.f32 %v2206_v61, %v2142_v54  ;;  %v2273_v22 = vadd.f32 %v2209_v57, %v2145_v30 }
 0x2dd   :  { %2334 = vst [vmem:[%s4228_s5 + $0x1b0] sm:$0xff] %v2270_v47 }
 0x2de   :  { %2337 = vst [vmem:[%s4228_s5 + $0x1c8] sm:$0xff] %v2273_v22 }
 0x2e5   :  { %v2144_v14 = vld [vmem:[%s4227_s3 + $0x1c0] sm:$0xff]  ;;  %v2147_v12 = vld [vmem:[%s4227_s3 + $0x1d8] sm:$0xff] }
 0x2e6   :  { %v2272_v53 = vadd.f32 %v2208_v13, %v2144_v14  ;;  %v2275_v34 = vadd.f32 %v2211_v5, %v2147_v12 }
 0x2e8   :  { %2336 = vst [vmem:[%s4228_s5 + $0x1c0] sm:$0xff] %v2272_v53 }
 0x2e9   :  { %2339 = vst [vmem:[%s4228_s5 + $0x1d8] sm:$0xff] %v2275_v34 }
 0x2f0   :  { %v2146_v49 = vld [vmem:[%s4227_s3 + $0x1d0] sm:$0xff]  ;;  %v2149_v19 = vld [vmem:[%s4227_s3 + $0x1e8] sm:$0xff] }
 0x2f1   :  { %v2274_v56 = vadd.f32 %v2210_v4, %v2146_v49  ;;  %v2277_v50 = vadd.f32 %v2213_v2, %v2149_v19 }
 0x2f3   :  { %2338 = vst [vmem:[%s4228_s5 + $0x1d0] sm:$0xff] %v2274_v56 }
 0x2f4   :  { %2341 = vst [vmem:[%s4228_s5 + $0x1e8] sm:$0xff] %v2277_v50 }
 0x2fb   :  { %v2148_v26 = vld [vmem:[%s4227_s3 + $0x1e0] sm:$0xff]  ;;  %v2151_v42 = vld [vmem:[%s4227_s3 + $0x1f8] sm:$0xff] }
 0x2fc   :  { %v2276_v3 = vadd.f32 %v2212_v63, %v2148_v26  ;;  %v2279_v24 = vadd.f32 %v2215_v23, %v2151_v42 }
 0x2fe   :  { %2340 = vst [vmem:[%s4228_s5 + $0x1e0] sm:$0xff] %v2276_v3 }
 0x2ff   :  { %2343 = vst [vmem:[%s4228_s5 + $0x1f8] sm:$0xff] %v2279_v24 }
 0x306   :  { %v2150_v54 = vld [vmem:[%s4227_s3 + $0x1f0] sm:$0xff] }
 0x307   :  { %v2278_v27 = vadd.f32 %v2214_v44, %v2150_v54 }
 0x309   :  { %2342 = vst [vmem:[%s4228_s5 + $0x1f0] sm:$0xff] %v2278_v27 }

</bundles_post_ra>
